<compile_context>
chip_gen: v5e
topology: v5e:2x2
jax: 0.10.0
libtpu: 0.0.40
codegen_flags: <defaults>
</compile_context>

<pallas_src>
import functools

import jax
import jax.numpy as jnp
from jax.experimental import pallas as pl
from jax.experimental.pallas import tpu as pltpu

DILATIONS = (1, 2, 4, 8, 16, 32, 64, 128, 256, 512)  # module defaults


def _wavenet_kernel(dilations, T, x_ref, wcat_ref, wctr_ref, b_ref,
                    wf_ref, bf_ref, out_ref):
    """One block of NB flattened batch elements per grid step.

    x_ref   : (M, C)       bf16, M = NB * T  (batch-major, time-minor rows)
    wcat_ref: (L, C, 3C)   bf16, [w_left | w_center | w_right] per layer
    wctr_ref: (L, C, C)    bf16, center tap only (used when dilation >= T)
    b_ref   : (L, 1, C)    f32   dilated-conv biases
    wf_ref  : (C, KP)      bf16  final 1x1 conv weight (K padded to 128 lanes)
    bf_ref  : (1, KP)      f32   final bias (padded)
    out_ref : (1, NB, KP)  f32   pooled logits
    """
    M, C = x_ref.shape
    h = x_ref[...].astype(jnp.float32)                         # (M, C)
    # Within-batch time index of each row; hoisted once, reused every layer.
    pos = jax.lax.broadcasted_iota(jnp.int32, (M, 1), 0) % T

    for l, d in enumerate(dilations):
        b = b_ref[l]                                           # (1, C)
        if d < T:
            # One MXU push per layer: shared LHS, taps concatenated on lanes.
            p = jnp.dot(h.astype(jnp.bfloat16), wcat_ref[l],
                        preferred_element_type=jnp.float32)    # (M, 3C)
            # Roll/mask applied to the matmul output slices:
            #   left tap  contributes (h @ w0)[t - d]  where (t % T) >= d
            #   right tap contributes (h @ w2)[t + d]  where (t % T) <  T - d
            # The masks also kill any roll that crossed a batch boundary.
            y = (p[:, C:2 * C] + b
                 + jnp.where(pos >= d,
                             pltpu.roll(p[:, :C], shift=d, axis=0), 0.0)
                 + jnp.where(pos < T - d,
                             pltpu.roll(p[:, 2 * C:], shift=M - d, axis=0),
                             0.0))
        else:
            # dilation >= T: both outer taps only ever see zero padding, so
            # this layer is exactly a 1x1 conv with the center tap (skips 2/3
            # of the MXU work and all roll/mask/select traffic).
            y = jnp.dot(h.astype(jnp.bfloat16), wctr_ref[l],
                        preferred_element_type=jnp.float32) + b
        h = jnp.maximum(y, 0.0)                                # ReLU

    # AdaptiveAvgPool1d(1) commuted with the final 1x1 conv (both linear):
    # mean over time first, then a tiny (NB, C) @ (C, KP) matmul.
    nb = M // T
    m = jnp.mean(h.reshape(nb, T, C), axis=1)                  # (NB, C)
    out_ref[0] = (jnp.dot(m.astype(jnp.bfloat16), wf_ref[...],
                          preferred_element_type=jnp.float32)
                  + bf_ref[...])


def wavenet_forward(x_ncw, W, B, Wf, bf, dilations=DILATIONS,
                    batch_block=None):
    """x_ncw: (N, C_in, T) as in PyTorch.  Returns (N, num_classes) f32.

    W : (L, 3, C, C)  dilated-conv weights, tap-major, each tap (C_in, C_out)
    B : (L, 1, C)     dilated-conv biases
    Wf: (C, K)        final 1x1 conv weight (C_in, C_out)
    bf: (1, K)        final 1x1 conv bias
    """
    N, C, T = x_ncw.shape
    L = W.shape[0]
    K = Wf.shape[1]
    KP = -(-K // 128) * 128                     # lane-dense padded class dim

    # Rows-per-program: aim for >=128 MXU rows, but keep >=2 parallel programs
    # when the batch allows it so both v7x TensorCores are busy.
    if batch_block is None:
        batch_block = max(1, 128 // T) if T < 128 else 1
        while batch_block > 1 and (N % batch_block != 0
                                   or N // batch_block < 2):
            batch_block -= 1
    NB = batch_block
    assert N % NB == 0, (N, NB)
    G = N // NB
    M = NB * T
    # NOTE: at large T/C this single-block-per-program tiling must be re-split
    # along time (with a dilation-sized halo) to respect v7x's 64 MiB VMEM.

    # NTC layout, flattened to (N*T, C); bf16 matmul inputs, f32 accumulation.
    x = jnp.transpose(x_ncw, (0, 2, 1)).reshape(N * T, C).astype(jnp.bfloat16)
    Wcat = jnp.concatenate([W[:, 0], W[:, 1], W[:, 2]],
                           axis=-1).astype(jnp.bfloat16)        # (L, C, 3C)
    Wctr = W[:, 1].astype(jnp.bfloat16)                         # (L, C, C)
    Wf_p = jnp.pad(Wf.astype(jnp.bfloat16), ((0, 0), (0, KP - K)))
    bf_p = jnp.pad(bf.astype(jnp.float32), ((0, 0), (0, KP - K)))
    B = B.astype(jnp.float32)

    kernel = functools.partial(_wavenet_kernel, tuple(dilations), T)
    out = pl.pallas_call(
        kernel,
        out_shape=jax.ShapeDtypeStruct((G, NB, KP), jnp.float32),
        grid=(G,),
        in_specs=[
            pl.BlockSpec((M, C), lambda g: (g, 0)),
            pl.BlockSpec((L, C, 3 * C), lambda g: (0, 0, 0)),
            pl.BlockSpec((L, C, C), lambda g: (0, 0, 0)),
            pl.BlockSpec((L, 1, C), lambda g: (0, 0, 0)),
            pl.BlockSpec((C, KP), lambda g: (0, 0)),
            pl.BlockSpec((1, KP), lambda g: (0, 0)),
        ],
        out_specs=pl.BlockSpec((1, NB, KP), lambda g: (g, 0, 0)),
        compiler_params=pltpu.CompilerParams(
            dimension_semantics=("parallel",)),
    )(x, Wcat, Wctr, B, Wf_p, bf_p)
    return out.reshape(N, KP)[:, :K]


def wavenet_ref(x_ncw, W, B, Wf, bf, dilations=DILATIONS):
    """Plain-JAX reference (same math, f32 HIGHEST-precision matmuls)."""
    x = jnp.transpose(x_ncw, (0, 2, 1))          # (N, T, C)
    N, T, C = x.shape
    hi = jax.lax.Precision.HIGHEST
    h = x
    for l, d in enumerate(dilations):
        xm = jnp.pad(h, ((0, 0), (d, 0), (0, 0)))[:, :T, :]   # x[t - d]
        xp = jnp.pad(h, ((0, 0), (0, d), (0, 0)))[:, d:, :]   # x[t + d]
        y = (jnp.dot(xm, W[l, 0], precision=hi)
             + jnp.dot(h, W[l, 1], precision=hi)
             + jnp.dot(xp, W[l, 2], precision=hi)
             + B[l])
        h = jnp.maximum(y, 0.0)
    z = jnp.dot(h, Wf, precision=hi) + bf
    return jnp.mean(z, axis=1)


if __name__ == "__main__":
    # Module defaults: in_channels=channels=64, kernel_size=3, full default
    # dilation list; num_classes=10.  Small T=64, N=4 (2 batch elements fused
    # per program -> grid of 2 parallel programs).
    N, C, T = 4, 64, 64
    K = 10
    L = len(DILATIONS)

    key = jax.random.PRNGKey(0)
    kx, kw, kb, kwf, kbf = jax.random.split(key, 5)

    # Conv1d weight (C_out, C_in, k) is stored here tap-major, each tap
    # transposed to (C_in, C_out).
    x = jax.random.normal(kx, (N, C, T), dtype=jnp.float32)           # NCW
    W = 0.05 * jax.random.normal(kw, (L, 3, C, C), dtype=jnp.float32)
    B = 0.05 * jax.random.normal(kb, (L, 1, C), dtype=jnp.float32)
    Wf = 0.05 * jax.random.normal(kwf, (C, K), dtype=jnp.float32)
    bf = 0.05 * jax.random.normal(kbf, (1, K), dtype=jnp.float32)

    out = jax.block_until_ready(wavenet_forward(x, W, B, Wf, bf))
    assert out.shape == (N, K), out.shape

    ref = jax.block_until_ready(wavenet_ref(x, W, B, Wf, bf))
    max_err = float(jnp.max(jnp.abs(out - ref)))
    assert jnp.allclose(out, ref, rtol=5e-2, atol=5e-2), max_err

    print("KERNEL_OK")
</pallas_src>

<mosaic_0001>
module attributes {stable_mosaic.version = 11 : i64} {
  func.func @_wavenet_kernel(%arg0: i32, %arg1: memref<128x64xbf16, #tpu.memory_space<vmem>>, %arg2: memref<10x64x192xbf16, #tpu.memory_space<vmem>>, %arg3: memref<10x64x64xbf16, #tpu.memory_space<vmem>>, %arg4: memref<10x1x64xf32, #tpu.memory_space<vmem>>, %arg5: memref<64x128xbf16, #tpu.memory_space<vmem>>, %arg6: memref<1x128xf32, #tpu.memory_space<vmem>>, %arg7: memref<1x2x128xf32, #tpu.memory_space<vmem>>) attributes {dimension_semantics = [#tpu.dimension_semantics<parallel>], iteration_bounds = array<i64: 2>, scalar_prefetch = 0 : i64, scratch_operands = 0 : i64, tpu.core_type = #tpu.core_type<tc>, window_params = [{transform_indices = @transform_0, window_bounds = array<i64: 128, 64>}, {pipeline_mode = #tpu.pipeline_mode<synchronous>, transform_indices = @transform_1, window_bounds = array<i64: 10, 64, 192>}, {pipeline_mode = #tpu.pipeline_mode<synchronous>, transform_indices = @transform_2, window_bounds = array<i64: 10, 64, 64>}, {pipeline_mode = #tpu.pipeline_mode<synchronous>, transform_indices = @transform_3, window_bounds = array<i64: 10, 1, 64>}, {pipeline_mode = #tpu.pipeline_mode<synchronous>, transform_indices = @transform_4, window_bounds = array<i64: 64, 128>}, {pipeline_mode = #tpu.pipeline_mode<synchronous>, transform_indices = @transform_5, window_bounds = array<i64: 1, 128>}, {transform_indices = @transform_6, window_bounds = array<i64: 1, 2, 128>}]} {
    %c0 = arith.constant 0 : index
    %c0_0 = arith.constant 0 : index
    %0 = vector.load %arg1[%c0, %c0_0] : memref<128x64xbf16, #tpu.memory_space<vmem>>, vector<128x64xbf16>
    %1 = arith.extf %0 : vector<128x64xbf16> to vector<128x64xf32>
    %2 = tpu.iota {dimensions = array<i32: 0>} : vector<128x1xi32>
    %c64_i32 = arith.constant 64 : i32
    %c0_i32 = arith.constant 0 : i32
    %3 = arith.cmpi eq, %c64_i32, %c0_i32 : i32
    %c1_i32 = arith.constant 1 : i32
    %4 = arith.select %3, %c1_i32, %c64_i32 : i32
    %5 = vector.broadcast %4 : i32 to vector<128x1xi32>
    %6 = arith.remsi %2, %5 : vector<128x1xi32>
    %c0_i32_1 = arith.constant 0 : i32
    %7 = vector.broadcast %c0_i32_1 : i32 to vector<128x1xi32>
    %8 = arith.cmpi ne, %6, %7 : vector<128x1xi32>
    %c0_i32_2 = arith.constant 0 : i32
    %9 = vector.broadcast %c0_i32_2 : i32 to vector<128x1xi32>
    %10 = arith.cmpi slt, %6, %9 : vector<128x1xi32>
    %c0_i32_3 = arith.constant 0 : i32
    %11 = arith.cmpi slt, %4, %c0_i32_3 : i32
    %12 = vector.broadcast %11 : i1 to vector<128x1xi1>
    %13 = vector.broadcast %12 : vector<128x1xi1> to vector<128x1xi1>
    %14 = arith.xori %10, %13 : vector<128x1xi1>
    %15 = arith.andi %14, %8 : vector<128x1xi1>
    %16 = vector.broadcast %4 : i32 to vector<128x1xi32>
    %17 = arith.addi %6, %16 : vector<128x1xi32>
    %18 = arith.select %15, %17, %6 : vector<128x1xi1>, vector<128x1xi32>
    %c0_4 = arith.constant 0 : index
    %c0_5 = arith.constant 0 : index
    %c0_6 = arith.constant 0 : index
    %19 = vector.load %arg4[%c0_4, %c0_5, %c0_6] : memref<10x1x64xf32, #tpu.memory_space<vmem>>, vector<1x1x64xf32>
    %20 = vector.shape_cast %19 : vector<1x1x64xf32> to vector<1x64xf32>
    %21 = arith.truncf %1 : vector<128x64xf32> to vector<128x64xbf16>
    %c0_7 = arith.constant 0 : index
    %c0_8 = arith.constant 0 : index
    %c0_9 = arith.constant 0 : index
    %22 = vector.load %arg2[%c0_7, %c0_8, %c0_9] : memref<10x64x192xbf16, #tpu.memory_space<vmem>>, vector<1x64x192xbf16>
    %23 = vector.shape_cast %22 : vector<1x64x192xbf16> to vector<64x192xbf16>
    %cst = arith.constant dense<0.000000e+00> : vector<128x192xf32>
    %24 = tpu.matmul %21, %23, %cst {dimension_numbers = #tpu.dot_dimension_numbers<[1], [0], [0], [1], [0, 0, 1, 1], [], []>} : vector<128x64xbf16>, vector<64x192xbf16>, vector<128x192xf32> -> vector<128x192xf32>
    %25 = vector.extract_strided_slice %24 {offsets = [0, 64], sizes = [128, 64], strides = [1, 1]} : vector<128x192xf32> to vector<128x64xf32>
    %26 = vector.broadcast %20 : vector<1x64xf32> to vector<128x64xf32>
    %27 = arith.addf %25, %26 : vector<128x64xf32>
    %c1_i32_10 = arith.constant 1 : i32
    %28 = vector.broadcast %c1_i32_10 : i32 to vector<128x1xi32>
    %29 = arith.cmpi sge, %18, %28 : vector<128x1xi32>
    %30 = vector.extract_strided_slice %24 {offsets = [0, 0], sizes = [128, 64], strides = [1, 1]} : vector<128x192xf32> to vector<128x64xf32>
    %c1_i32_11 = arith.constant 1 : i32
    %31 = tpu.dynamic_rotate %30 by %c1_i32_11 dim 0 : vector<128x64xf32>, i32 -> vector<128x64xf32>
    %cst_12 = arith.constant 0.000000e+00 : f32
    %32 = vector.shape_cast %29 : vector<128x1xi1> to vector<128x1xi1>
    %33 = vector.broadcast %32 : vector<128x1xi1> to vector<128x64xi1>
    %34 = vector.broadcast %cst_12 : f32 to vector<128x64xf32>
    %35 = arith.select %33, %31, %34 : vector<128x64xi1>, vector<128x64xf32>
    %36 = arith.addf %27, %35 : vector<128x64xf32>
    %c63_i32 = arith.constant 63 : i32
    %37 = vector.broadcast %c63_i32 : i32 to vector<128x1xi32>
    %38 = arith.cmpi slt, %18, %37 : vector<128x1xi32>
    %39 = vector.extract_strided_slice %24 {offsets = [0, 128], sizes = [128, 64], strides = [1, 1]} : vector<128x192xf32> to vector<128x64xf32>
    %c127_i32 = arith.constant 127 : i32
    %40 = tpu.dynamic_rotate %39 by %c127_i32 dim 0 : vector<128x64xf32>, i32 -> vector<128x64xf32>
    %cst_13 = arith.constant 0.000000e+00 : f32
    %41 = vector.shape_cast %38 : vector<128x1xi1> to vector<128x1xi1>
    %42 = vector.broadcast %41 : vector<128x1xi1> to vector<128x64xi1>
    %43 = vector.broadcast %cst_13 : f32 to vector<128x64xf32>
    %44 = arith.select %42, %40, %43 : vector<128x64xi1>, vector<128x64xf32>
    %45 = arith.addf %36, %44 : vector<128x64xf32>
    %cst_14 = arith.constant 0.000000e+00 : f32
    %46 = vector.broadcast %cst_14 : f32 to vector<128x64xf32>
    %47 = arith.maximumf %45, %46 : vector<128x64xf32>
    %c1 = arith.constant 1 : index
    %c0_15 = arith.constant 0 : index
    %c0_16 = arith.constant 0 : index
    %48 = vector.load %arg4[%c1, %c0_15, %c0_16] : memref<10x1x64xf32, #tpu.memory_space<vmem>>, vector<1x1x64xf32>
    %49 = vector.shape_cast %48 : vector<1x1x64xf32> to vector<1x64xf32>
    %50 = arith.truncf %47 : vector<128x64xf32> to vector<128x64xbf16>
    %c1_17 = arith.constant 1 : index
    %c0_18 = arith.constant 0 : index
    %c0_19 = arith.constant 0 : index
    %51 = vector.load %arg2[%c1_17, %c0_18, %c0_19] : memref<10x64x192xbf16, #tpu.memory_space<vmem>>, vector<1x64x192xbf16>
    %52 = vector.shape_cast %51 : vector<1x64x192xbf16> to vector<64x192xbf16>
    %cst_20 = arith.constant dense<0.000000e+00> : vector<128x192xf32>
    %53 = tpu.matmul %50, %52, %cst_20 {dimension_numbers = #tpu.dot_dimension_numbers<[1], [0], [0], [1], [0, 0, 1, 1], [], []>} : vector<128x64xbf16>, vector<64x192xbf16>, vector<128x192xf32> -> vector<128x192xf32>
    %54 = vector.extract_strided_slice %53 {offsets = [0, 64], sizes = [128, 64], strides = [1, 1]} : vector<128x192xf32> to vector<128x64xf32>
    %55 = vector.broadcast %49 : vector<1x64xf32> to vector<128x64xf32>
    %56 = arith.addf %54, %55 : vector<128x64xf32>
    %c2_i32 = arith.constant 2 : i32
    %57 = vector.broadcast %c2_i32 : i32 to vector<128x1xi32>
    %58 = arith.cmpi sge, %18, %57 : vector<128x1xi32>
    %59 = vector.extract_strided_slice %53 {offsets = [0, 0], sizes = [128, 64], strides = [1, 1]} : vector<128x192xf32> to vector<128x64xf32>
    %c2_i32_21 = arith.constant 2 : i32
    %60 = tpu.dynamic_rotate %59 by %c2_i32_21 dim 0 : vector<128x64xf32>, i32 -> vector<128x64xf32>
    %cst_22 = arith.constant 0.000000e+00 : f32
    %61 = vector.shape_cast %58 : vector<128x1xi1> to vector<128x1xi1>
    %62 = vector.broadcast %61 : vector<128x1xi1> to vector<128x64xi1>
    %63 = vector.broadcast %cst_22 : f32 to vector<128x64xf32>
    %64 = arith.select %62, %60, %63 : vector<128x64xi1>, vector<128x64xf32>
    %65 = arith.addf %56, %64 : vector<128x64xf32>
    %c62_i32 = arith.constant 62 : i32
    %66 = vector.broadcast %c62_i32 : i32 to vector<128x1xi32>
    %67 = arith.cmpi slt, %18, %66 : vector<128x1xi32>
    %68 = vector.extract_strided_slice %53 {offsets = [0, 128], sizes = [128, 64], strides = [1, 1]} : vector<128x192xf32> to vector<128x64xf32>
    %c126_i32 = arith.constant 126 : i32
    %69 = tpu.dynamic_rotate %68 by %c126_i32 dim 0 : vector<128x64xf32>, i32 -> vector<128x64xf32>
    %cst_23 = arith.constant 0.000000e+00 : f32
    %70 = vector.shape_cast %67 : vector<128x1xi1> to vector<128x1xi1>
    %71 = vector.broadcast %70 : vector<128x1xi1> to vector<128x64xi1>
    %72 = vector.broadcast %cst_23 : f32 to vector<128x64xf32>
    %73 = arith.select %71, %69, %72 : vector<128x64xi1>, vector<128x64xf32>
    %74 = arith.addf %65, %73 : vector<128x64xf32>
    %cst_24 = arith.constant 0.000000e+00 : f32
    %75 = vector.broadcast %cst_24 : f32 to vector<128x64xf32>
    %76 = arith.maximumf %74, %75 : vector<128x64xf32>
    %c2 = arith.constant 2 : index
    %c0_25 = arith.constant 0 : index
    %c0_26 = arith.constant 0 : index
    %77 = vector.load %arg4[%c2, %c0_25, %c0_26] : memref<10x1x64xf32, #tpu.memory_space<vmem>>, vector<1x1x64xf32>
    %78 = vector.shape_cast %77 : vector<1x1x64xf32> to vector<1x64xf32>
    %79 = arith.truncf %76 : vector<128x64xf32> to vector<128x64xbf16>
    %c2_27 = arith.constant 2 : index
    %c0_28 = arith.constant 0 : index
    %c0_29 = arith.constant 0 : index
    %80 = vector.load %arg2[%c2_27, %c0_28, %c0_29] : memref<10x64x192xbf16, #tpu.memory_space<vmem>>, vector<1x64x192xbf16>
    %81 = vector.shape_cast %80 : vector<1x64x192xbf16> to vector<64x192xbf16>
    %cst_30 = arith.constant dense<0.000000e+00> : vector<128x192xf32>
    %82 = tpu.matmul %79, %81, %cst_30 {dimension_numbers = #tpu.dot_dimension_numbers<[1], [0], [0], [1], [0, 0, 1, 1], [], []>} : vector<128x64xbf16>, vector<64x192xbf16>, vector<128x192xf32> -> vector<128x192xf32>
    %83 = vector.extract_strided_slice %82 {offsets = [0, 64], sizes = [128, 64], strides = [1, 1]} : vector<128x192xf32> to vector<128x64xf32>
    %84 = vector.broadcast %78 : vector<1x64xf32> to vector<128x64xf32>
    %85 = arith.addf %83, %84 : vector<128x64xf32>
    %c4_i32 = arith.constant 4 : i32
    %86 = vector.broadcast %c4_i32 : i32 to vector<128x1xi32>
    %87 = arith.cmpi sge, %18, %86 : vector<128x1xi32>
    %88 = vector.extract_strided_slice %82 {offsets = [0, 0], sizes = [128, 64], strides = [1, 1]} : vector<128x192xf32> to vector<128x64xf32>
    %c4_i32_31 = arith.constant 4 : i32
    %89 = tpu.dynamic_rotate %88 by %c4_i32_31 dim 0 : vector<128x64xf32>, i32 -> vector<128x64xf32>
    %cst_32 = arith.constant 0.000000e+00 : f32
    %90 = vector.shape_cast %87 : vector<128x1xi1> to vector<128x1xi1>
    %91 = vector.broadcast %90 : vector<128x1xi1> to vector<128x64xi1>
    %92 = vector.broadcast %cst_32 : f32 to vector<128x64xf32>
    %93 = arith.select %91, %89, %92 : vector<128x64xi1>, vector<128x64xf32>
    %94 = arith.addf %85, %93 : vector<128x64xf32>
    %c60_i32 = arith.constant 60 : i32
    %95 = vector.broadcast %c60_i32 : i32 to vector<128x1xi32>
    %96 = arith.cmpi slt, %18, %95 : vector<128x1xi32>
    %97 = vector.extract_strided_slice %82 {offsets = [0, 128], sizes = [128, 64], strides = [1, 1]} : vector<128x192xf32> to vector<128x64xf32>
    %c124_i32 = arith.constant 124 : i32
    %98 = tpu.dynamic_rotate %97 by %c124_i32 dim 0 : vector<128x64xf32>, i32 -> vector<128x64xf32>
    %cst_33 = arith.constant 0.000000e+00 : f32
    %99 = vector.shape_cast %96 : vector<128x1xi1> to vector<128x1xi1>
    %100 = vector.broadcast %99 : vector<128x1xi1> to vector<128x64xi1>
    %101 = vector.broadcast %cst_33 : f32 to vector<128x64xf32>
    %102 = arith.select %100, %98, %101 : vector<128x64xi1>, vector<128x64xf32>
    %103 = arith.addf %94, %102 : vector<128x64xf32>
    %cst_34 = arith.constant 0.000000e+00 : f32
    %104 = vector.broadcast %cst_34 : f32 to vector<128x64xf32>
    %105 = arith.maximumf %103, %104 : vector<128x64xf32>
    %c3 = arith.constant 3 : index
    %c0_35 = arith.constant 0 : index
    %c0_36 = arith.constant 0 : index
    %106 = vector.load %arg4[%c3, %c0_35, %c0_36] : memref<10x1x64xf32, #tpu.memory_space<vmem>>, vector<1x1x64xf32>
    %107 = vector.shape_cast %106 : vector<1x1x64xf32> to vector<1x64xf32>
    %108 = arith.truncf %105 : vector<128x64xf32> to vector<128x64xbf16>
    %c3_37 = arith.constant 3 : index
    %c0_38 = arith.constant 0 : index
    %c0_39 = arith.constant 0 : index
    %109 = vector.load %arg2[%c3_37, %c0_38, %c0_39] : memref<10x64x192xbf16, #tpu.memory_space<vmem>>, vector<1x64x192xbf16>
    %110 = vector.shape_cast %109 : vector<1x64x192xbf16> to vector<64x192xbf16>
    %cst_40 = arith.constant dense<0.000000e+00> : vector<128x192xf32>
    %111 = tpu.matmul %108, %110, %cst_40 {dimension_numbers = #tpu.dot_dimension_numbers<[1], [0], [0], [1], [0, 0, 1, 1], [], []>} : vector<128x64xbf16>, vector<64x192xbf16>, vector<128x192xf32> -> vector<128x192xf32>
    %112 = vector.extract_strided_slice %111 {offsets = [0, 64], sizes = [128, 64], strides = [1, 1]} : vector<128x192xf32> to vector<128x64xf32>
    %113 = vector.broadcast %107 : vector<1x64xf32> to vector<128x64xf32>
    %114 = arith.addf %112, %113 : vector<128x64xf32>
    %c8_i32 = arith.constant 8 : i32
    %115 = vector.broadcast %c8_i32 : i32 to vector<128x1xi32>
    %116 = arith.cmpi sge, %18, %115 : vector<128x1xi32>
    %117 = vector.extract_strided_slice %111 {offsets = [0, 0], sizes = [128, 64], strides = [1, 1]} : vector<128x192xf32> to vector<128x64xf32>
    %c8_i32_41 = arith.constant 8 : i32
    %118 = tpu.dynamic_rotate %117 by %c8_i32_41 dim 0 : vector<128x64xf32>, i32 -> vector<128x64xf32>
    %cst_42 = arith.constant 0.000000e+00 : f32
    %119 = vector.shape_cast %116 : vector<128x1xi1> to vector<128x1xi1>
    %120 = vector.broadcast %119 : vector<128x1xi1> to vector<128x64xi1>
    %121 = vector.broadcast %cst_42 : f32 to vector<128x64xf32>
    %122 = arith.select %120, %118, %121 : vector<128x64xi1>, vector<128x64xf32>
    %123 = arith.addf %114, %122 : vector<128x64xf32>
    %c56_i32 = arith.constant 56 : i32
    %124 = vector.broadcast %c56_i32 : i32 to vector<128x1xi32>
    %125 = arith.cmpi slt, %18, %124 : vector<128x1xi32>
    %126 = vector.extract_strided_slice %111 {offsets = [0, 128], sizes = [128, 64], strides = [1, 1]} : vector<128x192xf32> to vector<128x64xf32>
    %c120_i32 = arith.constant 120 : i32
    %127 = tpu.dynamic_rotate %126 by %c120_i32 dim 0 : vector<128x64xf32>, i32 -> vector<128x64xf32>
    %cst_43 = arith.constant 0.000000e+00 : f32
    %128 = vector.shape_cast %125 : vector<128x1xi1> to vector<128x1xi1>
    %129 = vector.broadcast %128 : vector<128x1xi1> to vector<128x64xi1>
    %130 = vector.broadcast %cst_43 : f32 to vector<128x64xf32>
    %131 = arith.select %129, %127, %130 : vector<128x64xi1>, vector<128x64xf32>
    %132 = arith.addf %123, %131 : vector<128x64xf32>
    %cst_44 = arith.constant 0.000000e+00 : f32
    %133 = vector.broadcast %cst_44 : f32 to vector<128x64xf32>
    %134 = arith.maximumf %132, %133 : vector<128x64xf32>
    %c4 = arith.constant 4 : index
    %c0_45 = arith.constant 0 : index
    %c0_46 = arith.constant 0 : index
    %135 = vector.load %arg4[%c4, %c0_45, %c0_46] : memref<10x1x64xf32, #tpu.memory_space<vmem>>, vector<1x1x64xf32>
    %136 = vector.shape_cast %135 : vector<1x1x64xf32> to vector<1x64xf32>
    %137 = arith.truncf %134 : vector<128x64xf32> to vector<128x64xbf16>
    %c4_47 = arith.constant 4 : index
    %c0_48 = arith.constant 0 : index
    %c0_49 = arith.constant 0 : index
    %138 = vector.load %arg2[%c4_47, %c0_48, %c0_49] : memref<10x64x192xbf16, #tpu.memory_space<vmem>>, vector<1x64x192xbf16>
    %139 = vector.shape_cast %138 : vector<1x64x192xbf16> to vector<64x192xbf16>
    %cst_50 = arith.constant dense<0.000000e+00> : vector<128x192xf32>
    %140 = tpu.matmul %137, %139, %cst_50 {dimension_numbers = #tpu.dot_dimension_numbers<[1], [0], [0], [1], [0, 0, 1, 1], [], []>} : vector<128x64xbf16>, vector<64x192xbf16>, vector<128x192xf32> -> vector<128x192xf32>
    %141 = vector.extract_strided_slice %140 {offsets = [0, 64], sizes = [128, 64], strides = [1, 1]} : vector<128x192xf32> to vector<128x64xf32>
    %142 = vector.broadcast %136 : vector<1x64xf32> to vector<128x64xf32>
    %143 = arith.addf %141, %142 : vector<128x64xf32>
    %c16_i32 = arith.constant 16 : i32
    %144 = vector.broadcast %c16_i32 : i32 to vector<128x1xi32>
    %145 = arith.cmpi sge, %18, %144 : vector<128x1xi32>
    %146 = vector.extract_strided_slice %140 {offsets = [0, 0], sizes = [128, 64], strides = [1, 1]} : vector<128x192xf32> to vector<128x64xf32>
    %c16_i32_51 = arith.constant 16 : i32
    %147 = tpu.dynamic_rotate %146 by %c16_i32_51 dim 0 : vector<128x64xf32>, i32 -> vector<128x64xf32>
    %cst_52 = arith.constant 0.000000e+00 : f32
    %148 = vector.shape_cast %145 : vector<128x1xi1> to vector<128x1xi1>
    %149 = vector.broadcast %148 : vector<128x1xi1> to vector<128x64xi1>
    %150 = vector.broadcast %cst_52 : f32 to vector<128x64xf32>
    %151 = arith.select %149, %147, %150 : vector<128x64xi1>, vector<128x64xf32>
    %152 = arith.addf %143, %151 : vector<128x64xf32>
    %c48_i32 = arith.constant 48 : i32
    %153 = vector.broadcast %c48_i32 : i32 to vector<128x1xi32>
    %154 = arith.cmpi slt, %18, %153 : vector<128x1xi32>
    %155 = vector.extract_strided_slice %140 {offsets = [0, 128], sizes = [128, 64], strides = [1, 1]} : vector<128x192xf32> to vector<128x64xf32>
    %c112_i32 = arith.constant 112 : i32
    %156 = tpu.dynamic_rotate %155 by %c112_i32 dim 0 : vector<128x64xf32>, i32 -> vector<128x64xf32>
    %cst_53 = arith.constant 0.000000e+00 : f32
    %157 = vector.shape_cast %154 : vector<128x1xi1> to vector<128x1xi1>
    %158 = vector.broadcast %157 : vector<128x1xi1> to vector<128x64xi1>
    %159 = vector.broadcast %cst_53 : f32 to vector<128x64xf32>
    %160 = arith.select %158, %156, %159 : vector<128x64xi1>, vector<128x64xf32>
    %161 = arith.addf %152, %160 : vector<128x64xf32>
    %cst_54 = arith.constant 0.000000e+00 : f32
    %162 = vector.broadcast %cst_54 : f32 to vector<128x64xf32>
    %163 = arith.maximumf %161, %162 : vector<128x64xf32>
    %c5 = arith.constant 5 : index
    %c0_55 = arith.constant 0 : index
    %c0_56 = arith.constant 0 : index
    %164 = vector.load %arg4[%c5, %c0_55, %c0_56] : memref<10x1x64xf32, #tpu.memory_space<vmem>>, vector<1x1x64xf32>
    %165 = vector.shape_cast %164 : vector<1x1x64xf32> to vector<1x64xf32>
    %166 = arith.truncf %163 : vector<128x64xf32> to vector<128x64xbf16>
    %c5_57 = arith.constant 5 : index
    %c0_58 = arith.constant 0 : index
    %c0_59 = arith.constant 0 : index
    %167 = vector.load %arg2[%c5_57, %c0_58, %c0_59] : memref<10x64x192xbf16, #tpu.memory_space<vmem>>, vector<1x64x192xbf16>
    %168 = vector.shape_cast %167 : vector<1x64x192xbf16> to vector<64x192xbf16>
    %cst_60 = arith.constant dense<0.000000e+00> : vector<128x192xf32>
    %169 = tpu.matmul %166, %168, %cst_60 {dimension_numbers = #tpu.dot_dimension_numbers<[1], [0], [0], [1], [0, 0, 1, 1], [], []>} : vector<128x64xbf16>, vector<64x192xbf16>, vector<128x192xf32> -> vector<128x192xf32>
    %170 = vector.extract_strided_slice %169 {offsets = [0, 64], sizes = [128, 64], strides = [1, 1]} : vector<128x192xf32> to vector<128x64xf32>
    %171 = vector.broadcast %165 : vector<1x64xf32> to vector<128x64xf32>
    %172 = arith.addf %170, %171 : vector<128x64xf32>
    %c32_i32 = arith.constant 32 : i32
    %173 = vector.broadcast %c32_i32 : i32 to vector<128x1xi32>
    %174 = arith.cmpi sge, %18, %173 : vector<128x1xi32>
    %175 = vector.extract_strided_slice %169 {offsets = [0, 0], sizes = [128, 64], strides = [1, 1]} : vector<128x192xf32> to vector<128x64xf32>
    %c32_i32_61 = arith.constant 32 : i32
    %176 = tpu.dynamic_rotate %175 by %c32_i32_61 dim 0 : vector<128x64xf32>, i32 -> vector<128x64xf32>
    %cst_62 = arith.constant 0.000000e+00 : f32
    %177 = vector.shape_cast %174 : vector<128x1xi1> to vector<128x1xi1>
    %178 = vector.broadcast %177 : vector<128x1xi1> to vector<128x64xi1>
    %179 = vector.broadcast %cst_62 : f32 to vector<128x64xf32>
    %180 = arith.select %178, %176, %179 : vector<128x64xi1>, vector<128x64xf32>
    %181 = arith.addf %172, %180 : vector<128x64xf32>
    %c32_i32_63 = arith.constant 32 : i32
    %182 = vector.broadcast %c32_i32_63 : i32 to vector<128x1xi32>
    %183 = arith.cmpi slt, %18, %182 : vector<128x1xi32>
    %184 = vector.extract_strided_slice %169 {offsets = [0, 128], sizes = [128, 64], strides = [1, 1]} : vector<128x192xf32> to vector<128x64xf32>
    %c96_i32 = arith.constant 96 : i32
    %185 = tpu.dynamic_rotate %184 by %c96_i32 dim 0 : vector<128x64xf32>, i32 -> vector<128x64xf32>
    %cst_64 = arith.constant 0.000000e+00 : f32
    %186 = vector.shape_cast %183 : vector<128x1xi1> to vector<128x1xi1>
    %187 = vector.broadcast %186 : vector<128x1xi1> to vector<128x64xi1>
    %188 = vector.broadcast %cst_64 : f32 to vector<128x64xf32>
    %189 = arith.select %187, %185, %188 : vector<128x64xi1>, vector<128x64xf32>
    %190 = arith.addf %181, %189 : vector<128x64xf32>
    %cst_65 = arith.constant 0.000000e+00 : f32
    %191 = vector.broadcast %cst_65 : f32 to vector<128x64xf32>
    %192 = arith.maximumf %190, %191 : vector<128x64xf32>
    %c6 = arith.constant 6 : index
    %c0_66 = arith.constant 0 : index
    %c0_67 = arith.constant 0 : index
    %193 = vector.load %arg4[%c6, %c0_66, %c0_67] : memref<10x1x64xf32, #tpu.memory_space<vmem>>, vector<1x1x64xf32>
    %194 = vector.shape_cast %193 : vector<1x1x64xf32> to vector<1x64xf32>
    %195 = arith.truncf %192 : vector<128x64xf32> to vector<128x64xbf16>
    %c6_68 = arith.constant 6 : index
    %c0_69 = arith.constant 0 : index
    %c0_70 = arith.constant 0 : index
    %196 = vector.load %arg3[%c6_68, %c0_69, %c0_70] : memref<10x64x64xbf16, #tpu.memory_space<vmem>>, vector<1x64x64xbf16>
    %197 = vector.shape_cast %196 : vector<1x64x64xbf16> to vector<64x64xbf16>
    %cst_71 = arith.constant dense<0.000000e+00> : vector<128x64xf32>
    %198 = tpu.matmul %195, %197, %cst_71 {dimension_numbers = #tpu.dot_dimension_numbers<[1], [0], [0], [1], [0, 0, 1, 1], [], []>} : vector<128x64xbf16>, vector<64x64xbf16>, vector<128x64xf32> -> vector<128x64xf32>
    %199 = vector.broadcast %194 : vector<1x64xf32> to vector<128x64xf32>
    %200 = arith.addf %198, %199 : vector<128x64xf32>
    %cst_72 = arith.constant 0.000000e+00 : f32
    %201 = vector.broadcast %cst_72 : f32 to vector<128x64xf32>
    %202 = arith.maximumf %200, %201 : vector<128x64xf32>
    %c7 = arith.constant 7 : index
    %c0_73 = arith.constant 0 : index
    %c0_74 = arith.constant 0 : index
    %203 = vector.load %arg4[%c7, %c0_73, %c0_74] : memref<10x1x64xf32, #tpu.memory_space<vmem>>, vector<1x1x64xf32>
    %204 = vector.shape_cast %203 : vector<1x1x64xf32> to vector<1x64xf32>
    %205 = arith.truncf %202 : vector<128x64xf32> to vector<128x64xbf16>
    %c7_75 = arith.constant 7 : index
    %c0_76 = arith.constant 0 : index
    %c0_77 = arith.constant 0 : index
    %206 = vector.load %arg3[%c7_75, %c0_76, %c0_77] : memref<10x64x64xbf16, #tpu.memory_space<vmem>>, vector<1x64x64xbf16>
    %207 = vector.shape_cast %206 : vector<1x64x64xbf16> to vector<64x64xbf16>
    %cst_78 = arith.constant dense<0.000000e+00> : vector<128x64xf32>
    %208 = tpu.matmul %205, %207, %cst_78 {dimension_numbers = #tpu.dot_dimension_numbers<[1], [0], [0], [1], [0, 0, 1, 1], [], []>} : vector<128x64xbf16>, vector<64x64xbf16>, vector<128x64xf32> -> vector<128x64xf32>
    %209 = vector.broadcast %204 : vector<1x64xf32> to vector<128x64xf32>
    %210 = arith.addf %208, %209 : vector<128x64xf32>
    %cst_79 = arith.constant 0.000000e+00 : f32
    %211 = vector.broadcast %cst_79 : f32 to vector<128x64xf32>
    %212 = arith.maximumf %210, %211 : vector<128x64xf32>
    %c8 = arith.constant 8 : index
    %c0_80 = arith.constant 0 : index
    %c0_81 = arith.constant 0 : index
    %213 = vector.load %arg4[%c8, %c0_80, %c0_81] : memref<10x1x64xf32, #tpu.memory_space<vmem>>, vector<1x1x64xf32>
    %214 = vector.shape_cast %213 : vector<1x1x64xf32> to vector<1x64xf32>
    %215 = arith.truncf %212 : vector<128x64xf32> to vector<128x64xbf16>
    %c8_82 = arith.constant 8 : index
    %c0_83 = arith.constant 0 : index
    %c0_84 = arith.constant 0 : index
    %216 = vector.load %arg3[%c8_82, %c0_83, %c0_84] : memref<10x64x64xbf16, #tpu.memory_space<vmem>>, vector<1x64x64xbf16>
    %217 = vector.shape_cast %216 : vector<1x64x64xbf16> to vector<64x64xbf16>
    %cst_85 = arith.constant dense<0.000000e+00> : vector<128x64xf32>
    %218 = tpu.matmul %215, %217, %cst_85 {dimension_numbers = #tpu.dot_dimension_numbers<[1], [0], [0], [1], [0, 0, 1, 1], [], []>} : vector<128x64xbf16>, vector<64x64xbf16>, vector<128x64xf32> -> vector<128x64xf32>
    %219 = vector.broadcast %214 : vector<1x64xf32> to vector<128x64xf32>
    %220 = arith.addf %218, %219 : vector<128x64xf32>
    %cst_86 = arith.constant 0.000000e+00 : f32
    %221 = vector.broadcast %cst_86 : f32 to vector<128x64xf32>
    %222 = arith.maximumf %220, %221 : vector<128x64xf32>
    %c9 = arith.constant 9 : index
    %c0_87 = arith.constant 0 : index
    %c0_88 = arith.constant 0 : index
    %223 = vector.load %arg4[%c9, %c0_87, %c0_88] : memref<10x1x64xf32, #tpu.memory_space<vmem>>, vector<1x1x64xf32>
    %224 = vector.shape_cast %223 : vector<1x1x64xf32> to vector<1x64xf32>
    %225 = arith.truncf %222 : vector<128x64xf32> to vector<128x64xbf16>
    %c9_89 = arith.constant 9 : index
    %c0_90 = arith.constant 0 : index
    %c0_91 = arith.constant 0 : index
    %226 = vector.load %arg3[%c9_89, %c0_90, %c0_91] : memref<10x64x64xbf16, #tpu.memory_space<vmem>>, vector<1x64x64xbf16>
    %227 = vector.shape_cast %226 : vector<1x64x64xbf16> to vector<64x64xbf16>
    %cst_92 = arith.constant dense<0.000000e+00> : vector<128x64xf32>
    %228 = tpu.matmul %225, %227, %cst_92 {dimension_numbers = #tpu.dot_dimension_numbers<[1], [0], [0], [1], [0, 0, 1, 1], [], []>} : vector<128x64xbf16>, vector<64x64xbf16>, vector<128x64xf32> -> vector<128x64xf32>
    %229 = vector.broadcast %224 : vector<1x64xf32> to vector<128x64xf32>
    %230 = arith.addf %228, %229 : vector<128x64xf32>
    %cst_93 = arith.constant 0.000000e+00 : f32
    %231 = vector.broadcast %cst_93 : f32 to vector<128x64xf32>
    %232 = arith.maximumf %230, %231 : vector<128x64xf32>
    %233 = vector.shape_cast %232 : vector<128x64xf32> to vector<2x64x64xf32>
    %cst_94 = arith.constant dense<0.000000e+00> : vector<2x64xf32>
    %234 = vector.multi_reduction <add>, %233, %cst_94 [1] : vector<2x64x64xf32> to vector<2x64xf32>
    %cst_95 = arith.constant 6.400000e+01 : f32
    %235 = vector.broadcast %cst_95 : f32 to vector<2x64xf32>
    %236 = arith.divf %234, %235 : vector<2x64xf32>
    %237 = arith.truncf %236 : vector<2x64xf32> to vector<2x64xbf16>
    %c0_96 = arith.constant 0 : index
    %c0_97 = arith.constant 0 : index
    %238 = vector.load %arg5[%c0_96, %c0_97] : memref<64x128xbf16, #tpu.memory_space<vmem>>, vector<64x128xbf16>
    %cst_98 = arith.constant dense<0.000000e+00> : vector<2x128xf32>
    %239 = tpu.matmul %237, %238, %cst_98 {dimension_numbers = #tpu.dot_dimension_numbers<[1], [0], [0], [1], [0, 0, 1, 1], [], []>} : vector<2x64xbf16>, vector<64x128xbf16>, vector<2x128xf32> -> vector<2x128xf32>
    %c0_99 = arith.constant 0 : index
    %c0_100 = arith.constant 0 : index
    %240 = vector.load %arg6[%c0_99, %c0_100] : memref<1x128xf32, #tpu.memory_space<vmem>>, vector<1x128xf32>
    %241 = vector.broadcast %240 : vector<1x128xf32> to vector<2x128xf32>
    %242 = arith.addf %239, %241 : vector<2x128xf32>
    %c0_101 = arith.constant 0 : index
    %c0_102 = arith.constant 0 : index
    %c0_103 = arith.constant 0 : index
    %243 = vector.load %arg7[%c0_101, %c0_102, %c0_103] : memref<1x2x128xf32, #tpu.memory_space<vmem>>, vector<1x2x128xf32>
    %244 = vector.shape_cast %243 : vector<1x2x128xf32> to vector<2x128xf32>
    %245 = vector.shape_cast %242 : vector<2x128xf32> to vector<1x2x128xf32>
    tpu.vector_store %arg7[%c0_101, %c0_102, %c0_103], %245 {strides = array<i32>} : memref<1x2x128xf32, #tpu.memory_space<vmem>>, vector<1x2x128xf32>,
    return
  }
  func.func @transform_0(%arg0: i32) -> (i32, i32) {
    %c0_i32 = arith.constant 0 : i32
    %c0_i32_0 = arith.constant 0 : i32
    return %arg0, %c0_i32 : i32, i32
  }
  func.func @transform_1(%arg0: i32) -> (i32, i32, i32) {
    %c0_i32 = arith.constant 0 : i32
    %c0_i32_0 = arith.constant 0 : i32
    %c0_i32_1 = arith.constant 0 : i32
    %c0_i32_2 = arith.constant 0 : i32
    return %c0_i32, %c0_i32_0, %c0_i32_1 : i32, i32, i32
  }
  func.func @transform_2(%arg0: i32) -> (i32, i32, i32) {
    %c0_i32 = arith.constant 0 : i32
    %c0_i32_0 = arith.constant 0 : i32
    %c0_i32_1 = arith.constant 0 : i32
    %c0_i32_2 = arith.constant 0 : i32
    return %c0_i32, %c0_i32_0, %c0_i32_1 : i32, i32, i32
  }
  func.func @transform_3(%arg0: i32) -> (i32, i32, i32) {
    %c0_i32 = arith.constant 0 : i32
    %c0_i32_0 = arith.constant 0 : i32
    %c0_i32_1 = arith.constant 0 : i32
    %c0_i32_2 = arith.constant 0 : i32
    return %c0_i32, %c0_i32_0, %c0_i32_1 : i32, i32, i32
  }
  func.func @transform_4(%arg0: i32) -> (i32, i32) {
    %c0_i32 = arith.constant 0 : i32
    %c0_i32_0 = arith.constant 0 : i32
    %c0_i32_1 = arith.constant 0 : i32
    return %c0_i32, %c0_i32_0 : i32, i32
  }
  func.func @transform_5(%arg0: i32) -> (i32, i32) {
    %c0_i32 = arith.constant 0 : i32
    %c0_i32_0 = arith.constant 0 : i32
    %c0_i32_1 = arith.constant 0 : i32
    return %c0_i32, %c0_i32_0 : i32, i32
  }
  func.func @transform_6(%arg0: i32) -> (i32, i32, i32) {
    %c0_i32 = arith.constant 0 : i32
    %c0_i32_0 = arith.constant 0 : i32
    %c0_i32_1 = arith.constant 0 : i32
    return %arg0, %c0_i32, %c0_i32_0 : i32, i32, i32
  }
}

</mosaic_0001>

<bundles_post_ra>
// kernel: tpu_custom_call.1
= control target key start
LH: loop header
LB: loop body
LE: loop exit
PB: predicated region body
PF: predicated region fallthrough
CT: control target
= control target key end

     0   :  { %11 = vsyncpa [#allocation3], 0  ;;  %s6958_s0 = inlined_call_operand.vmem [shape: bf16[256,64], index: 0, kind: input, shape index: {}]   ;;  %s6959_s1 = inlined_call_operand.hbm [shape: bf16[10,64,192], index: 1, kind: input, shape index: {}]   ;;  %s6960_s2 = inlined_call_operand.hbm [shape: bf16[10,64,64], index: 2, kind: input, shape index: {}]   ;;  %s6961_s3 = inlined_call_operand.vmem [shape: f32[10,1,64], index: 3, kind: input, shape index: {}]   ;;  %s6962_s4 = inlined_call_operand.vmem [shape: bf16[64,128], index: 4, kind: input, shape index: {}]   ;;  %s6963_s5 = inlined_call_operand.vmem [shape: f32[1,128], index: 5, kind: input, shape index: {}]   ;;  %s6964_s6 = inlined_call_operand.hbm [shape: f32[2,2,128], index: 6, kind: output, shape index: {}]  }
   0x1   :  { %12 = vsyncpa [#allocation6], 0 }
   0x2   :  { %13 = vsyncpa [#allocation4], 0 }
   0x3   :  { %15 = vsyncpa [#allocation4 + $0x1], 0  ;;  %s5519_s21 = smov 0   ;;  %s5521_s22 = smov 0  }
   0x4   :  { %s5523_s23 = smov 0   ;;  %s5525_s24 = smov 0  }
   0x5 LB: > { %s5540_s25 = sadd.s32 4294967295, %s5473_s24   ;;  %s4670_s26 = sadd.s32 4294967294, %s5473_s24   ;;  %s5473_s24 = sphi %s5525_s24, %s6971_s24   ;;  %s5469_s23 = sphi %s5523_s23, %s6970_s23   ;;  %s5465_s22 = sphi %s5521_s22, %s6969_s22   ;;  %s5461_s21 = sphi %s5519_s21, %s6968_s21  }
   0x6   : > { %s5544_s27 = sadd.s32 1, %s5473_s24   ;;  %s159_s28 = sadd.s32 1, %s5469_s23 }
   0x7   : > { %s156_s29 = ssub.s32 %s5473_s24, %s5544_s27  ;;  %p169_p0 = scmp.ne.s32.totalorder %s5469_s23, %s5465_s22 }
   0x8   : > { %p157_p1 = scmp.eq.s32.totalorder %s156_s29, 0  ;;  %p170_p2 = scmp.eq.s32.totalorder %s5540_s25, 1 }
   0x9   : > { %p175_p3 = scmp.ne.s32.totalorder %s5465_s22, %s5461_s21  ;;  %p176_p4 = scmp.eq.s32.totalorder %s4670_s26, 1 }
   0xa   : > { %s5555_s30 = scalar_select %p157_p1, %s5469_s23, %s159_s28  }
   0xb   : > { %p5557_p5 = por %p170_p2, %p169_p0  ;;  %p5561_p6 = por %p176_p4, %p175_p3 }
   0xc   : > { %p4671_p7 = scmp.ge.s32.totalorder %s5473_s24, 1  ;;  %p183_p8 = scmp.lt.s32.totalorder %s5473_s24, 3 }
   0xd   : > { %p5224_p9 = scmp.eq.s32.totalorder %s5540_s25, 0  ;;  %s194_s12 = sshll.u32 %s6959_s1, 4  ;;  %s195_s12 = int_to_ptr.hbm [resolvable:$true] %s194_s12 }
   0xe   : > { %p5568_p10 = pnand %p4671_p7, %p183_p8  ;;  %s5475_s13 = smov [#allocation2]  }
   0xf   : > { %s196_s14 = sshll.u32 %s5475_s13, 4  ;;  %s208_s17 = sshll.u32 %s6960_s2, 4  ;;  %s197_s14 = int_to_ptr.vmem [resolvable:$true] %s196_s14  ;;  %s209_s17 = int_to_ptr.hbm [resolvable:$true] %s208_s17 }
  0x10   : > { %p5213_p11 = pneg %p5568_p10  ;;  %s5476_s18 = smov 128  }
  0x11   : > { %s5477_s19 = smov 8   ;;  %s5478_s20 = smov [#allocation5]  }
  0x12   : > { %p5214_p12 = pnand %p5224_p9, %p5213_p11  ;;  %s210_s26 = sshll.u32 %s5478_s20, 4  ;;  %s211_s26 = int_to_ptr.vmem [resolvable:$true] %s210_s26 }
  0x13   : > { %s5479_s28 = smov 64   ;;  %s5480_s29 = smov 4  }
  0x14   : > { %5216 = dma.hbm_to_vmem [thread:$0]  (!%p5214_p12), %s195_s12, 10240, %s197_s14, [#allocation3], %s5476_s18, %s5476_s18, %s5477_s19  }
  0x15   : > { %5219 = dma.hbm_to_vmem [thread:$0]  (!%p5214_p12), %s209_s17, 5120, %s211_s26, [#allocation6], %s5479_s28, %s5479_s28, %s5480_s29  }
  0x16   : > { %244 = sbr.rel (%p5568_p10) target bundleno = 4088 (0xff8), region = 44 }
  0x1b   : > { %5448 = dma.done.wait (%p5224_p9), [#allocation3], 10240  }
  0x1c   : > { %5450 = vsyncadd (%p5224_p9), [#allocation3], 4294957056 }
  0x1d   : > { %5452 = dma.done.wait (%p5224_p9), [#allocation6], 5120  }
  0x1e   : > { %5454 = vsyncadd (%p5224_p9), [#allocation6], 4294962176  ;;  %s4679_s10 = sshll.u32 %s5540_s25, 4  ;;  %v4739_v0 = vld [vmem:[#allocation2 + $0x30] sm:$0xf]  ;;  %s5481_s13 = smov 64   ;;  %v303_v34 = vlaneseq }
  0x1f   : > { %p281_p13 = scmp.lt.s32.totalorder %s4679_s10, 31  ;;  %v5142_v1 = vld [vmem:[#allocation2 + $0x34] sm:$0xf0]  ;;  %v5141_v2 = vld [vmem:[#allocation2 + $0x34] sm:$0xf]  ;;  %vm601_vm0 = vcmask 523264  }
  0x20   : > { %v4740_v3 = vor.u32 %v5142_v1, %v4739_v0  ;;  %v4741_v4 = vld [vmem:[#allocation2 + $0x38] sm:$0xf0]  ;;  %v4731_v5 = vld [vmem:[#allocation2 + $0x20] sm:$0xf]  ;;  %v5140_v6 = vld [vmem:[#allocation2 + $0x24] sm:$0xf0] }
  0x21   : > { %s6973_s10 = smov (!%p281_p13, %s4679_s10), 31  ;;  %v4744_v7 = vor.u32 %v5141_v2, %v4741_v4  ;;  %v5139_v8 = vld [vmem:[#allocation2 + $0x24] sm:$0xf]  ;;  %v4733_v9 = vld [vmem:[#allocation2 + $0x28] sm:$0xf0]  ;;  %v4732_v10 = vor.u32 %v5140_v6, %v4731_v5  ;;  %v5623_v36 = vshrl.u32 %v303_v34, 7 }
  0x22   : > { %630 = vmatpush.bf16.msra.mxu0 %v4740_v3  ;;  %v4736_v11 = vor.u32 %v5139_v8, %v4733_v9  ;;  %v4723_v12 = vld [vmem:[#allocation2 + $0x10] sm:$0xf]  ;;  %v5138_v13 = vld [vmem:[#allocation2 + $0x14] sm:$0xf0]  ;;  %s4680_s9 = sshll.u32 %s6973_s10, 2  ;;  %s277_s14 = sand.u32 1, %s5465_s22  }
  0x23   : > { %679 = vmatpush.bf16.msra.mxu1 %v4744_v7  ;;  %v5137_v14 = vld [vmem:[#allocation2 + $0x14] sm:$0xf]  ;;  %v4725_v15 = vld [vmem:[#allocation2 + $0x18] sm:$0xf0]  ;;  %v4715_v16 = vld [vmem:[#allocation2] sm:$0xf]  ;;  %v4724_v19 = vor.u32 %v5138_v13, %v4723_v12  ;;  %s284_s16 = scalar_lea.vmem %s6958_s0, %s4680_s9 }
  0x24   : > { %v5136_v17 = vld [vmem:[#allocation2 + $0x4] sm:$0xf0]  ;;  %v5330_v18 = vld [vmem:[%s6961_s3] ss:$0 sm:$0xff]  ;;  %v5135_v20 = vld [vmem:[#allocation2 + $0x4] sm:$0xf]  ;;  %v4728_v22 = vor.u32 %v5137_v14, %v4725_v15 }
  0x25   : > { %v4717_v21 = vld [vmem:[#allocation2 + $0x8] sm:$0xf0]  ;;  %726 = vrot.lane.b32.xlu0 %v5330_v18, %s5481_s13  ;;  %v4716_v23 = vor.u32 %v5136_v17, %v4715_v16  ;;  %v5127_v25 = vld [vmem:[%s284_s16] sm:$0xff]  ;;  %v5129_v27 = vld [vmem:[%s284_s16 + $0x10] sm:$0xff]  ;;  %vm777_vm1 = vcmp.lt.s32.totalorder %v5623_v36, 1  ;;  %vm954_vm2 = vcmp.lt.s32.totalorder %v5623_v36, 7 }
  0x26   : > { %631 = vmatpush.bf16.msra.mxu0 %v4732_v10  ;;  %v4720_v24 = vor.u32 %v5135_v20, %v4717_v21  ;;  %v5128_v26 = vld [vmem:[%s284_s16 + $0x8] sm:$0xff]  ;;  %v5130_v28 = vld [vmem:[%s284_s16 + $0x18] sm:$0xff]  ;;  %v5131_v29 = vld [vmem:[%s284_s16 + $0x20] sm:$0xff]  ;;  %v311_v8 = vadd.s32 56, %v5623_v36  ;;  %vm1550_vm7 = vcmp.lt.s32.totalorder %v5623_v36, 6  ;;  %vm1373_vm8 = vcmp.lt.s32.totalorder %v5623_v36, 2 }
  0x27   : > { %680 = vmatpush.bf16.msra.mxu1 %v4736_v11  ;;  %v5132_v30 = vld [vmem:[%s284_s16 + $0x28] sm:$0xff]  ;;  %v5133_v31 = vld [vmem:[%s284_s16 + $0x30] sm:$0xff]  ;;  %v5134_v32 = vld [vmem:[%s284_s16 + $0x38] sm:$0xff]  ;;  %vm1969_vm13 = vcmp.lt.s32.totalorder %v5623_v36, 4  ;;  %s4678_s15 = sshll.u32 %s277_s14, 1  ;;  %s4574_s10 = scalar_lea.sflag [#allocation4], %s277_s14 }
  0x28   : > { %v5686_v9 = vand.u32 63, %v311_v8  ;;  %s279_s26 = scalar_lea.vmem [#allocation7], %s4678_s15 }
  0x29   : > { %s4586_s28 = sshll.u32 %s279_s26, 4  ;;  %s4587_s28 = int_to_ptr.vmem [resolvable:$true] %s4586_s28 }
  0x2a   : > { %632 = vmatpush.bf16.msra.mxu0 %v4724_v19  ;;  %vm929_vm3 = vcmp.lt.s32.totalorder %v5686_v9, 63  ;;  %vm1525_vm9 = vcmp.lt.s32.totalorder %v5686_v9, 62  ;;  %vm2121_vm14 = vcmp.lt.s32.totalorder %v5686_v9, 60 }
  0x2b   : > { %681 = vmatpush.bf16.msra.mxu1 %v4728_v22 }
  0x2e   : > { %633 = vmatpush.bf16.msra.mxu0 %v4716_v23 }
  0x2f   : > { %682 = vmatpush.bf16.msra.mxu1 %v4720_v24 }
  0x31   : > { %4745 = vmatmul.msk.bf16.vlgmr.msra.gmra.mxu0 %vm601_vm0, %v5127_v25 }
  0x32   : > { %4753 = vmatmul.msk.bf16.vlgmr.msra.gmra.mxu1 %vm601_vm0, %v5127_v25 }
  0x41   : > { %4746 = vmatmul.msk.bf16.gmra.mxu0 %vm601_vm0, %v5128_v26 }
  0x42   : > { %4754 = vmatmul.msk.bf16.gmra.mxu1 %vm601_vm0, %v5128_v26 }
  0x51   : > { %4747 = vmatmul.msk.bf16.gmra.mxu0 %vm601_vm0, %v5129_v27 }
  0x52   : > { %4755 = vmatmul.msk.bf16.gmra.mxu1 %vm601_vm0, %v5129_v27 }
  0x61   : > { %4748 = vmatmul.msk.bf16.gmra.mxu0 %vm601_vm0, %v5130_v28 }
  0x62   : > { %4756 = vmatmul.msk.bf16.gmra.mxu1 %vm601_vm0, %v5130_v28 }
  0x71   : > { %4749 = vmatmul.msk.bf16.gmra.mxu0 %vm601_vm0, %v5131_v29 }
  0x72   : > { %4757 = vmatmul.msk.bf16.gmra.mxu1 %vm601_vm0, %v5131_v29 }
  0x81   : > { %4750 = vmatmul.msk.bf16.gmra.mxu0 %vm601_vm0, %v5132_v30 }
  0x82   : > { %4758 = vmatmul.msk.bf16.gmra.mxu1 %vm601_vm0, %v5132_v30 }
  0x91   : > { %4751 = vmatmul.msk.bf16.gmra.mxu0 %vm601_vm0, %v5133_v31 }
  0x92   : > { %4759 = vmatmul.msk.bf16.gmra.mxu1 %vm601_vm0, %v5133_v31 }
  0xa1   : > { %4752 = vmatmul.msk.bf16.gmra.mxu0 %vm601_vm0, %v5134_v32 }
  0xa2   : > { %4760 = vmatmul.msk.bf16.gmra.mxu1 %vm601_vm0, %v5134_v32  ;;  %v5740_v32 = vand.u32 63, %v5623_v36 }
  0xa4   : > { %vm745_vm4 = vcmp.ge.s32.totalorder %v5740_v32, 1  ;;  %vm1341_vm10 = vcmp.ge.s32.totalorder %v5740_v32, 2  ;;  %vm1937_vm15 = vcmp.ge.s32.totalorder %v5740_v32, 4 }
  0xae   : > { %v5619_v33 = vpop.f32.mrf.mxu0 }
  0xaf   : > { %v5621_v35 = vpop.f32.mrf.mxu1  ;;  %v761_v38 = vrot.slane %v5619_v33, 7 }
  0xb0   : > { %v938_v42 = vrot.slane %v5621_v35, 1  ;;  %v5331_v35 = vld [vmem:[%s6961_s3 + $0x1] ss:$0 sm:$0xff] }
  0xb6   : > { %v5625_v37 = vpop.f32.mrf.mxu0 }
  0xb7   : > { %v762_v39 = vrot.slane %v5625_v37, 7  ;;  %v686_v40 = vpop.f32.mrf.mxu1 }
  0xb8   : > { %v939_v43 = vrot.slane %v686_v40, 1 }
  0xb9   : > { %v792_v41 = vsel %vm777_vm1, %v761_v38, %v762_v39 }
  0xba   : > { %860 = vrot.lane.b32.xlu1 %v792_v41, %s5481_s13  ;;  %v969_v46 = vsel %vm954_vm2, %v938_v42, %v939_v43 }
  0xbe   : > { %v5637_v44 = vpop.f32.mrf.mxu0 }
  0xbf   : > { %v689_v45 = vpop.f32.mrf.mxu1  ;;  %v763_v49 = vrot.slane %v5637_v44, 7 }
  0xc0   : > { %v940_v47 = vrot.slane %v689_v45, 1 }
  0xc1   : > { %v791_v54 = vsel %vm777_vm1, %v762_v39, %v763_v49 }
  0xc2   : > { %v968_v48 = vsel %vm954_vm2, %v939_v43, %v940_v47  ;;  %1035 = vrot.lane.b32.xlu1 %v969_v46, %s5481_s13 }
  0xc3   : > { %1037 = vrot.lane.b32.xlu2 %v968_v48, %s5481_s13 }
  0xc6   : > { %v5648_v50 = vpop.f32.mrf.mxu0 }
  0xc7   : > { %v691_v51 = vpop.f32.mrf.mxu1  ;;  %v764_v45 = vrot.slane %v5648_v50, 7 }
  0xc8   : > { %v941_v52 = vrot.slane %v691_v51, 1 }
  0xc9   : > { %v790_v46 = vsel %vm777_vm1, %v763_v49, %v764_v45 }
  0xca   : > { %v967_v53 = vsel %vm954_vm2, %v940_v47, %v941_v52 }
  0xcb   : > { %1039 = vrot.lane.b32.xlu1 %v967_v53, %s5481_s13  ;;  %862 = vrot.lane.b32.xlu2 %v791_v54, %s5481_s13  ;;  %v5771_v53 = vpop.permute.xlu0 %726 }
  0xcc   : > { %v730_v54 = vadd.f32 %v5771_v53, %v5625_v37  ;;  %v732_v37 = vadd.f32 %v5771_v53, %v5648_v50 }
  0xce   : > { %v5658_v55 = vpop.f32.mrf.mxu0 }
  0xcf   : > { %v694_v56 = vpop.f32.mrf.mxu1  ;;  %v765_v60 = vrot.slane %v5658_v55, 7 }
  0xd0   : > { %v942_v57 = vrot.slane %v694_v56, 1 }
  0xd1   : > { %v789_v47 = vsel %vm777_vm1, %v764_v45, %v765_v60 }
  0xd2   : > { %v966_v58 = vsel %vm954_vm2, %v941_v52, %v942_v57 }
  0xd3   : > { %1041 = vrot.lane.b32.xlu2 %v966_v58, %s5481_s13 }
  0xd6   : > { %v5663_v59 = vpop.f32.mrf.mxu0 }
  0xd7   : > { %v766_v61 = vrot.slane %v5663_v59, 7  ;;  %v696_v62 = vpop.f32.mrf.mxu1 }
  0xd8   : > { %v943_v63 = vrot.slane %v696_v62, 1 }
  0xd9   : > { %v788_v0 = vsel %vm777_vm1, %v765_v60, %v766_v61  ;;  %v729_v60 = vadd.f32 %v5771_v53, %v5619_v33 }
  0xda   : > { %v965_v1 = vsel %vm954_vm2, %v942_v57, %v943_v63  ;;  %868 = vrot.lane.b32.xlu1 %v788_v0, %s5481_s13 }
  0xdb   : > { %1043 = vrot.lane.b32.xlu2 %v965_v1, %s5481_s13 }
  0xde   : > { %v5673_v2 = vpop.f32.mrf.mxu0 }
  0xdf   : > { %v767_v3 = vrot.slane %v5673_v2, 7  ;;  %v5676_v4 = vpop.f32.mrf.mxu1 }
  0xe1   : > { %v787_v5 = vsel %vm777_vm1, %v766_v61, %v767_v3 }
  0xe3   : > { %870 = vrot.lane.b32.xlu2 %v787_v5, %s5481_s13 }
  0xe6   : > { %v5681_v6 = vpop.f32.mrf.mxu0 }
  0xe7   : > { %v5683_v7 = vpop.f32.mrf.mxu1  ;;  %v768_v12 = vrot.slane %v5681_v6, 7 }
  0xe8   : > { %v945_v10 = vrot.slane %v5683_v7, 1 }
  0xe9   : > { %v786_v51 = vsel %vm777_vm1, %v767_v3, %v768_v12  ;;  %v731_v3 = vadd.f32 %v5771_v53, %v5637_v44  ;;  %v312_v44 = vadd.s32 64, %v5623_v36 }
  0xee   : > { %v5689_v11 = vpop.f32.mrf.mxu0 }
  0xef   : > { %v769_v13 = vrot.slane %v5689_v11, 7  ;;  %v5693_v14 = vpop.f32.mrf.mxu1 }
  0xf0   : > { %v946_v15 = vrot.slane %v5693_v14, 1  ;;  %v5149_v14 = vld [vmem:[#allocation2 + $0x74] sm:$0xf] }
  0xf1   : > { %v5699_v16 = vsel %vm777_vm1, %v768_v12, %v769_v13 }
  0xf2   : > { %v962_v17 = vsel %vm954_vm2, %v945_v10, %v946_v15 }
  0xf3   : > { %v1010_v18 = vsel %vm929_vm3, %v962_v17, 0.0 }
  0xf4   : > { %1049 = vrot.lane.b32.xlu2 %v1010_v18, %s5481_s13 }
  0xf6   : > { %v5708_v19 = vpop.f32.mrf.mxu0 }
  0xf7   : > { %v770_v20 = vrot.slane %v5708_v19, 7  ;;  %v706_v57 = vpop.f32.mrf.mxu1 }
  0xf9   : > { %v784_v21 = vsel %vm777_vm1, %v769_v13, %v770_v20 }
  0xfc   : > { %876 = vrot.lane.b32.xlu2 %v784_v21, %s5481_s13 }
  0xfe   : > { %v5714_v22 = vpop.f32.mrf.mxu0 }
  0xff   : > { %v771_v23 = vrot.slane %v5714_v22, 7  ;;  %v5781_v12 = vpop.f32.mrf.mxu1 }
 0x101   : > { %v5721_v24 = vsel %vm777_vm1, %v770_v20, %v771_v23 }
 0x106   : > { %v5723_v25 = vpop.f32.mrf.mxu0 }
 0x10e   : > { %v5725_v26 = vpop.f32.mrf.mxu0 }
 0x116   : > { %v5727_v27 = vpop.f32.mrf.mxu0 }
 0x117   : > { %v774_v29 = vrot.slane %v5727_v27, 7 }
 0x11d   : > { %v1038_v52 = vpop.permute.xlu2 %1037 }
 0x11e   : > { %v5729_v28 = vpop.f32.mrf.mxu0 }
 0x11f   : > { %v775_v30 = vrot.slane %v5729_v28, 7 }
 0x121   : > { %v5737_v31 = vsel %vm777_vm1, %v774_v29, %v775_v30 }
 0x125   : > { %v863_v61 = vpop.permute.xlu2 %862 }
 0x126   : > { %v5742_v34 = vpop.f32.mrf.mxu0  ;;  %v908_v13 = vadd.f32 %v863_v61, %v731_v3  ;;  %v4790_v3 = vld [vmem:[#allocation2 + $0x78] sm:$0xf0] }
 0x127   : > { %v776_v39 = vrot.slane %v5742_v34, 7 }
 0x129   : > { %v793_v40 = vsel %vm777_vm1, %v776_v39, %v761_v38  ;;  %v5752_v41 = vsel %vm777_vm1, %v775_v30, %v776_v39  ;;  %v944_v38 = vrot.slane %v5676_v4, 1 }
 0x12a   : > { %v826_v43 = vsel %vm745_vm4, %v793_v40, 0.0  ;;  %vm4529_vm4 = vcmask 1041409  }
 0x12b   : > { %858 = vrot.lane.b32.xlu0 %v826_v43, %s5481_s13  ;;  %v964_v48 = vsel %vm954_vm2, %v943_v63, %v944_v38  ;;  %v963_v50 = vsel %vm954_vm2, %v944_v38, %v945_v10 }
 0x12c   : > { %v861_v49 = vpop.permute.xlu1 %860 }
 0x12d   : > { %v907_v58 = vadd.f32 %v861_v49, %v730_v54  ;;  %v1042_v21 = vpop.permute.xlu2 %1041  ;;  %v947_v49 = vrot.slane %v706_v57, 1  ;;  %v734_v54 = vadd.f32 %v5771_v53, %v5663_v59 }
 0x12f   : > { %v1084_v63 = vadd.f32 %v1038_v52, %v907_v58  ;;  %v961_v58 = vsel %vm954_vm2, %v946_v15, %v947_v49 }
 0x131   : > { %v1100_v4 = vmax.f32 %v1084_v63, 0.0 }
 0x133   : > { %864 = vrot.lane.b32.xlu0 %v790_v46, %s5481_s13  ;;  %v733_v46 = vadd.f32 %v5771_v53, %v5658_v55 }
 0x134   : > { %v1036_v56 = vpop.permute.xlu1 %1035 }
 0x135   : > { %v1044_v7 = vpop.permute.xlu2 %1043 }
 0x13b   : > { %866 = vrot.lane.b32.xlu0 %v789_v47, %s5481_s13  ;;  %v711_v47 = vpop.f32.mrf.mxu1 }
 0x13d   : > { %v1040_v8 = vpop.permute.xlu1 %1039 }
 0x13e   : > { %v1085_v33 = vadd.f32 %v1040_v8, %v908_v13  ;;  %v4793_v8 = vor.u32 %v5149_v14, %v4790_v3  ;;  %v949_v13 = vrot.slane %v711_v47, 1 }
 0x140   : > { %v1101_v39 = vmax.f32 %v1085_v33, 0.0  ;;  %1275 = vmatpush.bf16.msra.mxu3 %v4793_v8  ;;  %v4772_v33 = vld [vmem:[#allocation2 + $0x50] sm:$0xf] }
 0x143   : > { %1045 = vrot.lane.b32.xlu0 %v964_v48, %s5481_s13  ;;  %v5793_v48 = vand.u32 63, %v312_v44  ;;  %v5805_v57 = vpop.f32.mrf.mxu1 }
 0x145   : > { %vm753_vm5 = vcmp.ge.s32.totalorder %v5793_v48, 1  ;;  %vm1349_vm11 = vcmp.ge.s32.totalorder %v5793_v48, 2 }
 0x146   : > { %v834_v55 = vsel %vm753_vm5, %v5699_v16, 0.0  ;;  %v4788_v16 = vld [vmem:[#allocation2 + $0x70] sm:$0xf] }
 0x14b   : > { %872 = vrot.lane.b32.xlu0 %v786_v51, %s5481_s13  ;;  %v716_v44 = vpop.f32.mrf.mxu1 }
 0x14c   : > { %v869_v52 = vpop.permute.xlu1 %868 }
 0x14d   : > { %v911_v10 = vadd.f32 %v869_v52, %v734_v54  ;;  %v4766_v52 = vld [vmem:[#allocation2 + $0x48] sm:$0xf0]  ;;  %v773_v54 = vrot.slane %v5725_v26, 7 }
 0x19d   : > { %v859_v62 = vpop.permute.xlu0 %858 }
 0x19e   : > { %v906_v0 = vadd.f32 %v859_v62, %v729_v60  ;;  %v948_v62 = vrot.slane %v5781_v12, 1  ;;  %v4782_v12 = vld [vmem:[#allocation2 + $0x68] sm:$0xf0] }
 0x1a0   : > { %v1083_v1 = vadd.f32 %v1036_v56, %v906_v0  ;;  %v5150_v0 = vld [vmem:[#allocation2 + $0x74] sm:$0xf0]  ;;  %v960_v15 = vsel %vm954_vm2, %v947_v49, %v948_v62  ;;  %v5143_v49 = vld [vmem:[#allocation2 + $0x44] sm:$0xf] }
 0x1a2   : > { %v1099_v5 = vmax.f32 %v1083_v1, 0.0  ;;  %v4789_v1 = vor.u32 %v5150_v0, %v4788_v16  ;;  %v735_v0 = vadd.f32 %v5771_v53, %v5673_v2 }
 0x1a4   : > { %v1117_v17 = vpack.c.bf16 %v1100_v4, %v1099_v5  ;;  %v4780_v4 = vld [vmem:[#allocation2 + $0x60] sm:$0xf]  ;;  %v5148_v5 = vld [vmem:[#allocation2 + $0x64] sm:$0xf0]  ;;  %1226 = vmatpush.bf16.msra.mxu2 %v4789_v1 }
 0x1a5   : > { %v865_v18 = vpop.permute.xlu0 %864 }
 0x1a6   : > { %v909_v20 = vadd.f32 %v865_v18, %v732_v37  ;;  %1142 = vrot.lane.b32.xlu1 %v1117_v17, %s5481_s13  ;;  %v5147_v37 = vld [vmem:[#allocation2 + $0x64] sm:$0xf]  ;;  %v4781_v17 = vor.u32 %v5148_v5, %v4780_v4 }
 0x1a7   : > { %v4785_v18 = vor.u32 %v5147_v37, %v4782_v12 }
 0x1a8   : > { %v1086_v30 = vadd.f32 %v1042_v21, %v909_v20  ;;  %v5146_v20 = vld [vmem:[#allocation2 + $0x54] sm:$0xf0]  ;;  %v772_v21 = vrot.slane %v5723_v25, 7  ;;  %1227 = vmatpush.bf16.msra.mxu2 %v4781_v17  ;;  %v738_v17 = vadd.f32 %v5771_v53, %v5708_v19  ;;  %v319_v19 = vadd.s32 120, %v5623_v36 }
 0x1a9   : > { %1276 = vmatpush.bf16.msra.mxu3 %v4785_v18 }
 0x1aa   : > { %v1102_v40 = vmax.f32 %v1086_v30, 0.0  ;;  %v950_v30 = vrot.slane %v5805_v57, 1  ;;  %v782_v47 = vsel %vm777_vm1, %v771_v23, %v772_v21  ;;  %v781_v23 = vsel %vm777_vm1, %v772_v21, %v773_v54 }
 0x1ac   : > { %v1118_v43 = vpack.c.bf16 %v1102_v40, %v1101_v39  ;;  %v5145_v39 = vld [vmem:[#allocation2 + $0x54] sm:$0xf]  ;;  %v4774_v40 = vld [vmem:[#allocation2 + $0x58] sm:$0xf0] }
 0x1ad   : > { %v867_v45 = vpop.permute.xlu0 %866 }
 0x1ae   : > { %1047 = vrot.lane.b32.xlu1 %v963_v50, %s5481_s13  ;;  %1144 = vrot.lane.b32.xlu0 %v1118_v43, %s5481_s13  ;;  %v910_v51 = vadd.f32 %v867_v45, %v733_v46  ;;  %v4773_v43 = vor.u32 %v5146_v20, %v4772_v33  ;;  %v4777_v45 = vor.u32 %v5145_v39, %v4774_v40  ;;  %v4764_v50 = vld [vmem:[#allocation2 + $0x40] sm:$0xf]  ;;  %v5144_v46 = vld [vmem:[#allocation2 + $0x44] sm:$0xf0] }
 0x1b0   : > { %v1087_v38 = vadd.f32 %v1044_v7, %v910_v51  ;;  %v958_v51 = vsel %vm954_vm2, %v949_v13, %v950_v30  ;;  %1228 = vmatpush.bf16.msra.mxu2 %v4773_v43  ;;  %v4765_v7 = vor.u32 %v5144_v46, %v4764_v50  ;;  %1277 = vmatpush.bf16.msra.mxu3 %v4777_v45 }
 0x1b2   : > { %v1103_v59 = vmax.f32 %v1087_v38, 0.0  ;;  %v5832_v38 = vpop.f32.mrf.mxu1 }
 0x1b4   : > { %1229 = vmatpush.bf16.msra.mxu2 %v4765_v7 }
 0x1b5   : > { %v1046_v56 = vpop.permute.xlu0 %1045 }
 0x1b6   : > { %v1088_v60 = vadd.f32 %v1046_v56, %v911_v10  ;;  %874 = vrot.lane.b32.xlu1 %v834_v55, %s5481_s13  ;;  %1051 = vrot.lane.b32.xlu0 %v961_v58, %s5481_s13  ;;  %v4769_v10 = vor.u32 %v5143_v49, %v4766_v52  ;;  %v951_v56 = vrot.slane %v716_v44, 1  ;;  %v952_v55 = vrot.slane %v5832_v38, 1 }
 0x1b7   : > { %v780_v58 = vsel %vm777_vm1, %v773_v54, %v774_v29  ;;  %v739_v44 = vadd.f32 %v5771_v53, %v5714_v22  ;;  %v742_v38 = vadd.f32 %v5771_v53, %v5727_v27  ;;  %vm1945_vm1 = vcmp.ge.s32.totalorder %v5793_v48, 4  ;;  %v5159_v48 = vld [vmem:[#allocation2 + $0xc4] sm:$0xf] }
 0x1b8   : > { %v1104_v61 = vmax.f32 %v1088_v60, 0.0  ;;  %1278 = vmatpush.bf16.msra.mxu3 %v4769_v10  ;;  %v956_v60 = vsel %vm954_vm2, %v951_v56, %v952_v55  ;;  %v957_v33 = vsel %vm954_vm2, %v950_v30, %v951_v56  ;;  %v740_v30 = vadd.f32 %v5771_v53, %v5723_v25 }
 0x1ba   : > { %v1119_v63 = vpack.c.bf16 %v1104_v61, %v1103_v59  ;;  %v871_v59 = vpop.permute.xlu2 %870  ;;  %v721_v45 = vpop.f32.mrf.mxu1 }
 0x1bb   : > { %v912_v14 = vadd.f32 %v871_v59, %v735_v0  ;;  %v953_v46 = vrot.slane %v721_v45, 1 }
 0x1bc   : > { %1146 = vrot.lane.b32.xlu2 %v1119_v63, %s5481_s13  ;;  %v736_v63 = vadd.f32 %v5771_v53, %v5681_v6 }
 0x1bd   : > { %v873_v61 = vpop.permute.xlu0 %872  ;;  %v970_v25 = vsel %vm954_vm2, %v953_v46, %v938_v42  ;;  %v955_v56 = vsel %vm954_vm2, %v952_v55, %v953_v46 }
 0x1be   : > { %1053 = vrot.lane.b32.xlu1 %v960_v15, %s5481_s13  ;;  %878 = vrot.lane.b32.xlu0 %v5721_v24, %s5481_s13  ;;  %v959_v24 = vsel %vm954_vm2, %v948_v62, %v949_v13  ;;  %v913_v29 = vadd.f32 %v873_v61, %v736_v63  ;;  %v737_v13 = vadd.f32 %v5771_v53, %v5689_v11 }
 0x1bf   : > { %v741_v63 = vadd.f32 %v5771_v53, %v5725_v26 }
 0x1c2   : > { %v1050_v16 = vpop.permute.xlu2 %1049 }
 0x1c3   : > { %v1090_v15 = vadd.f32 %v1050_v16, %v913_v29 }
 0x1c4   : > { %1055 = vrot.lane.b32.xlu2 %v959_v24, %s5481_s13 }
 0x1c5   : > { %v1106_v4 = vmax.f32 %v1090_v15, 0.0 }
 0x1c6   : > { %880 = vrot.lane.b32.xlu1 %v782_v47, %s5481_s13  ;;  %1057 = vrot.lane.b32.xlu0 %v958_v51, %s5481_s13  ;;  %v5874_v47 = vand.u32 63, %v319_v19 }
 0x1c8   : > { %vm937_vm6 = vcmp.lt.s32.totalorder %v5874_v47, 63  ;;  %vm1533_vm12 = vcmp.lt.s32.totalorder %v5874_v47, 62  ;;  %vm2129_vm2 = vcmp.lt.s32.totalorder %v5874_v47, 60 }
 0x1ca   : > { %v877_v37 = vpop.permute.xlu2 %876 }
 0x1cb   : > { %v915_v20 = vadd.f32 %v877_v37, %v738_v17 }
 0x1cc   : > { %882 = vrot.lane.b32.xlu2 %v781_v23, %s5481_s13  ;;  %v1018_v23 = vsel %vm937_vm6, %v970_v25, 0.0 }
 0x1ce   : > { %884 = vrot.lane.b32.xlu0 %v780_v58, %s5481_s13 }
 0x1d4   : > { %1061 = vrot.lane.b32.xlu2 %v956_v60, %s5481_s13 }
 0x1dc   : > { %888 = vrot.lane.b32.xlu2 %v5752_v41, %s5481_s13 }
 0x216   : > { %v1147_v18 = vpop.permute.xlu2 %1146 }
 0x218   : > { %v1143_v62 = vpop.permute.xlu1 %1142 }
 0x219   : > { %4794 = vmatmul.msk.bf16.vlgmr.msra.gmra.mxu2 %vm601_vm0, %v1143_v62  ;;  %4802 = vmatmul.msk.bf16.vlgmr.msra.gmra.mxu3 %vm601_vm0, %v1143_v62 }
 0x21e   : > { %v1056_v51 = vpop.permute.xlu2 %1055 }
 0x220   : > { %v1048_v1 = vpop.permute.xlu1 %1047  ;;  %v1145_v3 = vpop.permute.xlu0 %1144 }
 0x221   : > { %v1089_v41 = vadd.f32 %v1048_v1, %v912_v14 }
 0x223   : > { %v1105_v5 = vmax.f32 %v1089_v41, 0.0 }
 0x225   : > { %v1120_v8 = vpack.c.bf16 %v1106_v4, %v1105_v5 }
 0x226   : > { %v883_v42 = vpop.permute.xlu2 %882 }
 0x227   : > { %1148 = vrot.lane.b32.xlu1 %v1120_v8, %s5481_s13  ;;  %v918_v16 = vadd.f32 %v883_v42, %v741_v63 }
 0x228   : > { %v875_v6 = vpop.permute.xlu1 %874  ;;  %v1052_v12 = vpop.permute.xlu0 %1051 }
 0x229   : > { %4795 = vmatmul.msk.bf16.gmra.mxu2 %vm601_vm0, %v1145_v3  ;;  %4803 = vmatmul.msk.bf16.gmra.mxu3 %vm601_vm0, %v1145_v3  ;;  %v914_v2 = vadd.f32 %v875_v6, %v737_v13 }
 0x22b   : > { %v1091_v21 = vadd.f32 %v1052_v12, %v914_v2 }
 0x22d   : > { %v1107_v24 = vmax.f32 %v1091_v21, 0.0 }
 0x22e   : > { %v1062_v29 = vpop.permute.xlu2 %1061 }
 0x22f   : > { %1059 = vrot.lane.b32.xlu1 %v957_v33, %s5481_s13  ;;  %v744_v33 = vadd.f32 %v5771_v53, %v5742_v34 }
 0x230   : > { %v1054_v39 = vpop.permute.xlu1 %1053  ;;  %v879_v11 = vpop.permute.xlu0 %878 }
 0x231   : > { %v1092_v40 = vadd.f32 %v1054_v39, %v915_v20  ;;  %v916_v50 = vadd.f32 %v879_v11, %v739_v44 }
 0x233   : > { %v1108_v43 = vmax.f32 %v1092_v40, 0.0  ;;  %v1093_v49 = vadd.f32 %v1056_v51, %v916_v50 }
 0x235   : > { %v1121_v57 = vpack.c.bf16 %v1108_v43, %v1107_v24 }
 0x236   : > { %v889_v2 = vpop.permute.xlu2 %888 }
 0x237   : > { %886 = vrot.lane.b32.xlu1 %v5737_v31, %s5481_s13  ;;  %1150 = vrot.lane.b32.xlu0 %v1121_v57, %s5481_s13  ;;  %v1109_v31 = vmax.f32 %v1093_v49, 0.0  ;;  %v921_v21 = vadd.f32 %v889_v2, %v744_v33 }
 0x238   : > { %v881_v22 = vpop.permute.xlu1 %880  ;;  %v1058_v54 = vpop.permute.xlu0 %1057 }
 0x239   : > { %v917_v52 = vadd.f32 %v881_v22, %v740_v30  ;;  %4796 = vmatmul.msk.bf16.gmra.mxu2 %vm601_vm0, %v1147_v18  ;;  %4804 = vmatmul.msk.bf16.gmra.mxu3 %vm601_vm0, %v1147_v18  ;;  %v743_v18 = vadd.f32 %v5771_v53, %v5729_v28 }
 0x23b   : > { %v1094_v7 = vadd.f32 %v1058_v54, %v917_v52 }
 0x23d   : > { %v1110_v10 = vmax.f32 %v1094_v7, 0.0 }
 0x23f   : > { %1065 = vrot.lane.b32.xlu1 %v1018_v23, %s5481_s13  ;;  %1063 = vrot.lane.b32.xlu0 %v955_v56, %s5481_s13  ;;  %v1122_v58 = vpack.c.bf16 %v1110_v10, %v1109_v31 }
 0x240   : > { %v885_v60 = vpop.permute.xlu0 %884 }
 0x241   : > { %1152 = vrot.lane.b32.xlu2 %v1122_v58, %s5481_s13  ;;  %v919_v55 = vadd.f32 %v885_v60, %v742_v38 }
 0x243   : > { %v1096_v0 = vadd.f32 %v1062_v29, %v919_v55 }
 0x245   : > { %v1112_v1 = vmax.f32 %v1096_v0, 0.0 }
 0x249   : > { %1322 = vrot.lane.b32.xlu2 %v5331_v35, %s5481_s13 }
 0x299   : > { %v1149_v59 = vpop.permute.xlu1 %1148 }
 0x29a   : > { %4797 = vmatmul.msk.bf16.gmra.mxu2 %vm601_vm0, %v1149_v59  ;;  %4805 = vmatmul.msk.bf16.gmra.mxu3 %vm601_vm0, %v1149_v59 }
 0x29b   : > { %v1153_v51 = vpop.permute.xlu2 %1152 }
 0x29c   : > { %v5898_v61 = vpop.f32.mrf.mxu2  ;;  %v5900_v62 = vpop.f32.mrf.mxu3 }
 0x29d   : > { %v1534_v4 = vrot.slane %v5900_v62, 2  ;;  %v1357_v52 = vrot.slane %v5898_v61, 6  ;;  %v5332_v62 = vld [vmem:[%s6961_s3 + $0x2] ss:$0 sm:$0xff] }
 0x2a1   : > { %v1060_v14 = vpop.permute.xlu1 %1059 }
 0x2a2   : > { %v1095_v15 = vadd.f32 %v1060_v14, %v918_v16 }
 0x2a4   : > { %v1111_v3 = vmax.f32 %v1095_v15, 0.0  ;;  %v5904_v27 = vpop.f32.mrf.mxu2  ;;  %v1282_v41 = vpop.f32.mrf.mxu3 }
 0x2a5   : > { %v1535_v5 = vrot.slane %v1282_v41, 2  ;;  %v1358_v22 = vrot.slane %v5904_v27, 6 }
 0x2a6   : > { %v1123_v8 = vpack.c.bf16 %v1112_v1, %v1111_v3 }
 0x2a7   : > { %v1565_v26 = vsel %vm1550_vm7, %v1534_v4, %v1535_v5  ;;  %v1388_v25 = vsel %vm1373_vm8, %v1357_v52, %v1358_v22 }
 0x2a8   : > { %1154 = vrot.lane.b32.xlu0 %v1123_v8, %s5481_s13  ;;  %1631 = vrot.lane.b32.xlu2 %v1565_v26, %s5481_s13 }
 0x2a9   : > { %v887_v37 = vpop.permute.xlu1 %886  ;;  %v1151_v6 = vpop.permute.xlu0 %1150 }
 0x2aa   : > { %4798 = vmatmul.msk.bf16.gmra.mxu2 %vm601_vm0, %v1151_v6  ;;  %4806 = vmatmul.msk.bf16.gmra.mxu3 %vm601_vm0, %v1151_v6  ;;  %v920_v39 = vadd.f32 %v887_v37, %v743_v18 }
 0x2ac   : > { %v5916_v12 = vpop.f32.mrf.mxu2  ;;  %v1285_v13 = vpop.f32.mrf.mxu3 }
 0x2ad   : > { %v1536_v17 = vrot.slane %v1285_v13, 2  ;;  %v1359_v28 = vrot.slane %v5916_v12, 6 }
 0x2af   : > { %v5924_v20 = vsel %vm1550_vm7, %v1535_v5, %v1536_v17  ;;  %v1387_v10 = vsel %vm1373_vm8, %v1358_v22, %v1359_v28 }
 0x2b1   : > { %v1066_v11 = vpop.permute.xlu1 %1065  ;;  %v1064_v40 = vpop.permute.xlu0 %1063 }
 0x2b2   : > { %v1098_v44 = vadd.f32 %v1066_v11, %v921_v21  ;;  %v1097_v24 = vadd.f32 %v1064_v40, %v920_v39 }
 0x2b4   : > { %v1114_v43 = vmax.f32 %v1098_v44, 0.0  ;;  %v1113_v19 = vmax.f32 %v1097_v24, 0.0  ;;  %v5926_v45 = vpop.f32.mrf.mxu2  ;;  %v1287_v50 = vpop.f32.mrf.mxu3 }
 0x2b5   : > { %v1360_v57 = vrot.slane %v5926_v45, 6  ;;  %v1537_v34 = vrot.slane %v1287_v50, 2 }
 0x2b6   : > { %v1124_v53 = vpack.c.bf16 %v1114_v43, %v1113_v19 }
 0x2b7   : > { %v1386_v30 = vsel %vm1373_vm8, %v1359_v28, %v1360_v57  ;;  %v5935_v46 = vsel %vm1550_vm7, %v1536_v17, %v1537_v34 }
 0x2b8   : > { %1460 = vrot.lane.b32.xlu2 %v1386_v30, %s5481_s13  ;;  %1156 = vrot.lane.b32.xlu1 %v1124_v53, %s5481_s13 }
 0x2ba   : > { %4799 = vmatmul.msk.bf16.gmra.mxu2 %vm601_vm0, %v1153_v51  ;;  %4807 = vmatmul.msk.bf16.gmra.mxu3 %vm601_vm0, %v1153_v51 }
 0x2bc   : > { %v5942_v49 = vpop.f32.mrf.mxu2  ;;  %v1290_v31 = vpop.f32.mrf.mxu3 }
 0x2bd   : > { %v1361_v54 = vrot.slane %v5942_v49, 6  ;;  %v1538_v23 = vrot.slane %v1290_v31, 2 }
 0x2bf   : > { %v1385_v7 = vsel %vm1373_vm8, %v1360_v57, %v1361_v54  ;;  %v1562_v56 = vsel %vm1550_vm7, %v1537_v34, %v1538_v23 }
 0x2c0   : > { %1462 = vrot.lane.b32.xlu2 %v1385_v7, %s5481_s13  ;;  %1456 = vrot.lane.b32.xlu1 %v1388_v25, %s5481_s13 }
 0x2c4   : > { %v1292_v58 = vpop.f32.mrf.mxu3  ;;  %v5965_v60 = vpop.f32.mrf.mxu2 }
 0x2c5   : > { %v1539_v35 = vrot.slane %v1292_v58, 2  ;;  %v1362_v63 = vrot.slane %v5965_v60, 6 }
 0x2c7   : > { %v1561_v42 = vsel %vm1550_vm7, %v1538_v23, %v1539_v35 }
 0x2c8   : > { %1458 = vrot.lane.b32.xlu1 %v1387_v10, %s5481_s13 }
 0x2d0   : > { %1637 = vrot.lane.b32.xlu1 %v1562_v56, %s5481_s13 }
 0x2d8   : > { %1639 = vrot.lane.b32.xlu1 %v1561_v42, %s5481_s13 }
 0x31a   : > { %v1155_v59 = vpop.permute.xlu0 %1154 }
 0x31b   : > { %4800 = vmatmul.msk.bf16.gmra.mxu2 %vm601_vm0, %v1155_v59  ;;  %4808 = vmatmul.msk.bf16.gmra.mxu3 %vm601_vm0, %v1155_v59 }
 0x31d   : > { %v5969_v38 = vpop.f32.mrf.mxu2  ;;  %v1295_v55 = vpop.f32.mrf.mxu3 }
 0x31e   : > { %v1363_v29 = vrot.slane %v5969_v38, 6  ;;  %v1540_v16 = vrot.slane %v1295_v55, 2  ;;  %v1384_v55 = vsel %vm1373_vm8, %v1361_v54, %v1362_v63 }
 0x320   : > { %v1560_v0 = vsel %vm1550_vm7, %v1539_v35, %v1540_v16  ;;  %v1383_v14 = vsel %vm1373_vm8, %v1362_v63, %v1363_v29 }
 0x321   : > { %1641 = vrot.lane.b32.xlu2 %v1560_v0, %s5481_s13  ;;  %1466 = vrot.lane.b32.xlu1 %v1383_v14, %s5481_s13 }
 0x325   : > { %v5979_v15 = vpop.f32.mrf.mxu2  ;;  %v1297_v1 = vpop.f32.mrf.mxu3 }
 0x326   : > { %v1364_v3 = vrot.slane %v5979_v15, 6  ;;  %v1541_v41 = vrot.slane %v1297_v1, 2 }
 0x328   : > { %v1382_v5 = vsel %vm1373_vm8, %v1363_v29, %v1364_v3  ;;  %v5986_v8 = vsel %vm1550_vm7, %v1540_v16, %v1541_v41 }
 0x329   : > { %1468 = vrot.lane.b32.xlu2 %v1382_v5, %s5481_s13 }
 0x32a   : > { %v1157_v26 = vpop.permute.xlu1 %1156 }
 0x32b   : > { %4801 = vmatmul.msk.bf16.gmra.mxu2 %vm601_vm0, %v1157_v26  ;;  %4809 = vmatmul.msk.bf16.gmra.mxu3 %vm601_vm0, %v1157_v26 }
 0x32d   : > { %v5991_v37 = vpop.f32.mrf.mxu2  ;;  %v5993_v6 = vpop.f32.mrf.mxu3 }
 0x32e   : > { %v1365_v13 = vrot.slane %v5991_v37, 6  ;;  %v1542_v2 = vrot.slane %v5993_v6, 2 }
 0x330   : > { %v1558_v17 = vsel %vm1550_vm7, %v1541_v41, %v1542_v2  ;;  %v6004_v18 = vsel %vm1373_vm8, %v1364_v3, %v1365_v13 }
 0x331   : > { %v1606_v33 = vsel %vm1525_vm9, %v1558_v17, 0.0 }
 0x332   : > { %1645 = vrot.lane.b32.xlu1 %v1606_v33, %s5481_s13  ;;  %v1457_v29 = vpop.permute.xlu1 %1456 }
 0x335   : > { %v6007_v21 = vpop.f32.mrf.mxu2  ;;  %v6022_v43 = vpop.f32.mrf.mxu3 }
 0x336   : > { %v1366_v39 = vrot.slane %v6007_v21, 6 }
 0x338   : > { %v1380_v11 = vsel %vm1373_vm8, %v1365_v13, %v1366_v39 }
 0x33a   : > { %1472 = vrot.lane.b32.xlu1 %v1380_v11, %s5481_s13  ;;  %v1459_v1 = vpop.permute.xlu1 %1458 }
 0x33d   : > { %v6013_v40 = vpop.f32.mrf.mxu2  ;;  %v6024_v19 = vpop.f32.mrf.mxu3 }
 0x33e   : > { %v1367_v44 = vrot.slane %v6013_v40, 6 }
 0x340   : > { %v6020_v24 = vsel %vm1373_vm8, %v1366_v39, %v1367_v44 }
 0x342   : > { %v1638_v33 = vpop.permute.xlu1 %1637 }
 0x345   : > { %v6026_v50 = vpop.f32.mrf.mxu2  ;;  %v6028_v28 = vpop.f32.mrf.mxu3 }
 0x39e   : > { %v6030_v57 = vpop.f32.mrf.mxu2  ;;  %v6032_v34 = vpop.f32.mrf.mxu3 }
 0x39f   : > { %v1546_v51 = vrot.slane %v6032_v34, 2 }
 0x3a6   : > { %v6034_v53 = vpop.f32.mrf.mxu2  ;;  %v6036_v30 = vpop.f32.mrf.mxu3 }
 0x3a7   : > { %v1547_v22 = vrot.slane %v6036_v30, 2  ;;  %v1370_v31 = vrot.slane %v6034_v53, 6 }
 0x3a9   : > { %v6046_v7 = vsel %vm1550_vm7, %v1546_v51, %v1547_v22 }
 0x3ae   : > { %v6048_v25 = vpop.f32.mrf.mxu2 }
 0x3af   : > { %v1371_v10 = vrot.slane %v6048_v25, 6 }
 0x3b1   : > { %v6056_v23 = vsel %vm1373_vm8, %v1370_v31, %v1371_v10 }
 0x3b6   : > { %v6058_v56 = vpop.f32.mrf.mxu2 }
 0x3b7   : > { %v1372_v58 = vrot.slane %v6058_v56, 6 }
 0x3b9   : > { %v1389_v35 = vsel %vm1373_vm8, %v1372_v58, %v1357_v52  ;;  %v6068_v42 = vsel %vm1373_vm8, %v1371_v10, %v1372_v58  ;;  %v6080_v52 = vpop.permute.xlu2 %1322 }
 0x3ba   : > { %v1422_v59 = vsel %vm1341_vm10, %v1389_v35, 0.0  ;;  %v1325_v14 = vadd.f32 %v6080_v52, %v5898_v61  ;;  %v1328_v63 = vadd.f32 %v6080_v52, %v5926_v45  ;;  %v1327_v39 = vadd.f32 %v6080_v52, %v5916_v12 }
 0x3bb   : > { %1454 = vrot.lane.b32.xlu0 %v1422_v59, %s5481_s13  ;;  %v1329_v45 = vadd.f32 %v6080_v52, %v5942_v49 }
 0x3bc   : > { %v1504_v10 = vadd.f32 %v1459_v1, %v1327_v39  ;;  %v5158_v39 = vld [vmem:[#allocation2 + $0xb4] sm:$0xf0] }
 0x3c1   : > { %v1632_v16 = vpop.permute.xlu2 %1631 }
 0x3c3   : > { %1633 = vrot.lane.b32.xlu0 %v5924_v20, %s5481_s13 }
 0x3c9   : > { %v1461_v5 = vpop.permute.xlu2 %1460 }
 0x3ca   : > { %v1505_v61 = vadd.f32 %v1461_v5, %v1328_v63  ;;  %v1545_v63 = vrot.slane %v6028_v28, 2 }
 0x3cb   : > { %1635 = vrot.lane.b32.xlu0 %v5935_v46, %s5481_s13  ;;  %v1326_v46 = vadd.f32 %v6080_v52, %v5904_v27 }
 0x3cc   : > { %v1682_v58 = vadd.f32 %v1638_v33, %v1505_v61  ;;  %v1554_v28 = vsel %vm1550_vm7, %v1545_v63, %v1546_v51  ;;  %v4837_v51 = vld [vmem:[#allocation2 + $0xb0] sm:$0xf]  ;;  %v5157_v61 = vld [vmem:[#allocation2 + $0xb4] sm:$0xf] }
 0x3cd   : > { %v1503_v3 = vadd.f32 %v1457_v29, %v1326_v46 }
 0x3d1   : > { %v1463_v59 = vpop.permute.xlu2 %1462 }
 0x3d2   : > { %v1506_v12 = vadd.f32 %v1463_v59, %v1329_v45  ;;  %v4831_v59 = vld [vmem:[#allocation2 + $0xa8] sm:$0xf0]  ;;  %v5153_v45 = vld [vmem:[#allocation2 + $0x94] sm:$0xf] }
 0x3d3   : > { %1464 = vrot.lane.b32.xlu0 %v1384_v55, %s5481_s13  ;;  %v1698_v55 = vmax.f32 %v1682_v58, 0.0  ;;  %v5156_v58 = vld [vmem:[#allocation2 + $0xa4] sm:$0xf0] }
 0x42d   : > { %v1455_v0 = vpop.permute.xlu0 %1454 }
 0x42e   : > { %v1502_v20 = vadd.f32 %v1455_v0, %v1325_v14  ;;  %v1640_v0 = vpop.permute.xlu1 %1639  ;;  %v1330_v14 = vadd.f32 %v6080_v52, %v5965_v60 }
 0x430   : > { %v1679_v41 = vadd.f32 %v1632_v16, %v1502_v20  ;;  %v1683_v20 = vadd.f32 %v1640_v0, %v1506_v12  ;;  %v4813_v0 = vld [vmem:[#allocation2 + $0x80] sm:$0xf] }
 0x432   : > { %v1695_v13 = vmax.f32 %v1679_v41, 0.0  ;;  %v1642_v41 = vpop.permute.xlu2 %1641  ;;  %v1699_v49 = vmax.f32 %v1683_v20, 0.0  ;;  %v4815_v20 = vld [vmem:[#allocation2 + $0x88] sm:$0xf0] }
 0x435   : > { %v1634_v26 = vpop.permute.xlu0 %1633 }
 0x436   : > { %v1680_v54 = vadd.f32 %v1634_v26, %v1503_v3  ;;  %v1543_v3 = vrot.slane %v6022_v43, 2  ;;  %v1544_v43 = vrot.slane %v6024_v19, 2 }
 0x438   : > { %v1696_v17 = vmax.f32 %v1680_v54, 0.0  ;;  %v1430_v54 = vsel %vm1349_vm11, %v6004_v18, 0.0  ;;  %v1557_v60 = vsel %vm1550_vm7, %v1542_v2, %v1543_v3  ;;  %v1555_v6 = vsel %vm1550_vm7, %v1544_v43, %v1545_v63 }
 0x439   : > { %v1368_v2 = vrot.slane %v6026_v50, 6  ;;  %v1369_v18 = vrot.slane %v6030_v57, 6 }
 0x43a   : > { %v1713_v11 = vpack.c.bf16 %v1696_v17, %v1695_v13  ;;  %v1556_v13 = vsel %vm1550_vm7, %v1543_v3, %v1544_v43  ;;  %v6132_v17 = vpop.f32.mrf.mxu3 }
 0x43b   : > { %v1378_v19 = vsel %vm1373_vm8, %v1367_v44, %v1368_v2  ;;  %v1548_v33 = vrot.slane %v6132_v17, 2  ;;  %v1376_v44 = vsel %vm1373_vm8, %v1369_v18, %v1370_v31  ;;  %v4829_v31 = vld [vmem:[#allocation2 + $0xa0] sm:$0xf] }
 0x43c   : > { %1738 = vrot.lane.b32.xlu0 %v1713_v11, %s5481_s13  ;;  %v4838_v11 = vor.u32 %v5158_v39, %v4837_v51  ;;  %v4830_v30 = vor.u32 %v5156_v58, %v4829_v31  ;;  %v1334_v39 = vadd.f32 %v6080_v52, %v6007_v21 }
 0x43d   : > { %v1636_v27 = vpop.permute.xlu0 %1635  ;;  %v1552_v34 = vsel %vm1550_vm7, %v1547_v22, %v1548_v33  ;;  %v4821_v22 = vld [vmem:[#allocation2 + $0x90] sm:$0xf] }
 0x43e   : > { %v1681_v35 = vadd.f32 %v1636_v27, %v1504_v10  ;;  %v4839_v10 = vld [vmem:[#allocation2 + $0xb8] sm:$0xf0]  ;;  %1822 = vmatpush.bf16.msrb.mxu0 %v4838_v11 }
 0x43f   : > { %v4842_v27 = vor.u32 %v5157_v61, %v4839_v10 }
 0x440   : > { %v1697_v29 = vmax.f32 %v1681_v35, 0.0  ;;  %v5155_v35 = vld [vmem:[#allocation2 + $0xa4] sm:$0xf] }
 0x441   : > { %1871 = vmatpush.bf16.msrb.mxu1 %v4842_v27 }
 0x442   : > { %v1714_v16 = vpack.c.bf16 %v1698_v55, %v1697_v29  ;;  %v4834_v55 = vor.u32 %v5155_v35, %v4831_v59  ;;  %1823 = vmatpush.bf16.msrb.mxu0 %v4830_v30  ;;  %v5154_v29 = vld [vmem:[#allocation2 + $0x94] sm:$0xf0]  ;;  %v1335_v59 = vadd.f32 %v6080_v52, %v6013_v40 }
 0x444   : > { %1643 = vrot.lane.b32.xlu0 %v5986_v8, %s5481_s13  ;;  %1740 = vrot.lane.b32.xlu2 %v1714_v16, %s5481_s13  ;;  %v4823_v16 = vld [vmem:[#allocation2 + $0x98] sm:$0xf0] }
 0x445   : > { %v1465_v1 = vpop.permute.xlu0 %1464  ;;  %1872 = vmatpush.bf16.msrb.mxu1 %v4834_v55  ;;  %v4826_v12 = vor.u32 %v5153_v45, %v4823_v16 }
 0x446   : > { %v1507_v46 = vadd.f32 %v1465_v1, %v1330_v14  ;;  %v5152_v14 = vld [vmem:[#allocation2 + $0x84] sm:$0xf0]  ;;  %v5151_v1 = vld [vmem:[#allocation2 + $0x84] sm:$0xf] }
 0x447   : > { %v4818_v3 = vor.u32 %v5151_v1, %v4815_v20 }
 0x448   : > { %v1684_v5 = vadd.f32 %v1642_v41, %v1507_v46  ;;  %v4814_v46 = vor.u32 %v5152_v14, %v4813_v0  ;;  %v1467_v41 = vpop.permute.xlu1 %1466 }
 0x449   : > { %1873 = vmatpush.bf16.msrb.mxu1 %v4826_v12 }
 0x44a   : > { %v1700_v26 = vmax.f32 %v1684_v5, 0.0  ;;  %v1469_v5 = vpop.permute.xlu2 %1468 }
 0x44c   : > { %1470 = vrot.lane.b32.xlu0 %v1430_v54, %s5481_s13  ;;  %1647 = vrot.lane.b32.xlu2 %v1557_v60, %s5481_s13  ;;  %v1715_v8 = vpack.c.bf16 %v1700_v26, %v1699_v49  ;;  %v1332_v54 = vadd.f32 %v6080_v52, %v5979_v15  ;;  %v1333_v15 = vadd.f32 %v6080_v52, %v5991_v37  ;;  %v1317_v37 = vpop.f32.mrf.mxu3 }
 0x44d   : > { %1874 = vmatpush.bf16.msrb.mxu1 %v4818_v3  ;;  %v1549_v21 = vrot.slane %v1317_v37, 2  ;;  %v1338_v3 = vadd.f32 %v6080_v52, %v6034_v53 }
 0x44e   : > { %1742 = vrot.lane.b32.xlu1 %v1715_v8, %s5481_s13  ;;  %v1331_v8 = vadd.f32 %v6080_v52, %v5969_v38  ;;  %v1509_v43 = vadd.f32 %v1469_v5, %v1332_v54  ;;  %v1337_v5 = vadd.f32 %v6080_v52, %v6030_v57 }
 0x44f   : > { %v1551_v12 = vsel %vm1550_vm7, %v1548_v33, %v1549_v21 }
 0x450   : > { %v1646_v26 = vpop.permute.xlu1 %1645  ;;  %v1508_v63 = vadd.f32 %v1467_v41, %v1331_v8 }
 0x454   : > { %1649 = vrot.lane.b32.xlu0 %v1556_v13, %s5481_s13  ;;  %1474 = vrot.lane.b32.xlu2 %v6020_v24, %s5481_s13  ;;  %v1377_v24 = vsel %vm1373_vm8, %v1368_v2, %v1369_v18  ;;  %v1686_v13 = vadd.f32 %v1646_v26, %v1509_v43 }
 0x456   : > { %1651 = vrot.lane.b32.xlu1 %v1555_v6, %s5481_s13  ;;  %v1702_v18 = vmax.f32 %v1686_v13, 0.0 }
 0x45c   : > { %1476 = vrot.lane.b32.xlu0 %v1378_v19, %s5481_s13  ;;  %1653 = vrot.lane.b32.xlu2 %v1554_v28, %s5481_s13  ;;  %v1473_v28 = vpop.permute.xlu1 %1472 }
 0x45d   : > { %v1511_v61 = vadd.f32 %v1473_v28, %v1334_v39 }
 0x45e   : > { %1478 = vrot.lane.b32.xlu1 %v1377_v24, %s5481_s13 }
 0x464   : > { %1480 = vrot.lane.b32.xlu2 %v1376_v44, %s5481_s13 }
 0x466   : > { %1657 = vrot.lane.b32.xlu1 %v1552_v34, %s5481_s13 }
 0x46e   : > { %1484 = vrot.lane.b32.xlu1 %v6068_v42, %s5481_s13  ;;  %v4822_v42 = vor.u32 %v5154_v29, %v4821_v22  ;;  %v1336_v22 = vadd.f32 %v6080_v52, %v6026_v50  ;;  %v1566_v50 = vsel %vm1550_vm7, %v1549_v21, %v1534_v4 }
 0x46f   : > { %v1614_v14 = vsel %vm1533_vm12, %v1566_v50, 0.0 }
 0x470   : > { %1824 = vmatpush.bf16.msrb.mxu0 %v4822_v42 }
 0x474   : > { %1825 = vmatpush.bf16.msrb.mxu0 %v4814_v46 }
 0x49e   : > { %v1741_v60 = vpop.permute.xlu2 %1740 }
 0x4a6   : > { %v1648_v44 = vpop.permute.xlu2 %1647 }
 0x4ae   : > { %v1739_v49 = vpop.permute.xlu0 %1738  ;;  %v1475_v10 = vpop.permute.xlu2 %1474 }
 0x4af   : > { %4843 = vmatmul.msk.bf16.vlgmr.msrb.gmra.mxu0 %vm601_vm0, %v1739_v49  ;;  %4851 = vmatmul.msk.bf16.vlgmr.msrb.gmra.mxu1 %vm601_vm0, %v1739_v49  ;;  %v1512_v29 = vadd.f32 %v1475_v10, %v1335_v59 }
 0x4b6   : > { %v1644_v6 = vpop.permute.xlu0 %1643  ;;  %v1654_v40 = vpop.permute.xlu2 %1653 }
 0x4b7   : > { %v1685_v2 = vadd.f32 %v1644_v6, %v1508_v63 }
 0x4b9   : > { %v1701_v19 = vmax.f32 %v1685_v2, 0.0 }
 0x4bb   : > { %v1716_v24 = vpack.c.bf16 %v1702_v18, %v1701_v19 }
 0x4bd   : > { %1744 = vrot.lane.b32.xlu0 %v1716_v24, %s5481_s13 }
 0x4be   : > { %v1471_v34 = vpop.permute.xlu0 %1470  ;;  %v1481_v33 = vpop.permute.xlu2 %1480 }
 0x4bf   : > { %4844 = vmatmul.msk.bf16.gmra.mxu0 %vm601_vm0, %v1741_v60  ;;  %4852 = vmatmul.msk.bf16.gmra.mxu1 %vm601_vm0, %v1741_v60  ;;  %v1510_v38 = vadd.f32 %v1471_v34, %v1333_v15  ;;  %v1515_v49 = vadd.f32 %v1481_v33, %v1338_v3 }
 0x4c0   : > { %v1743_v51 = vpop.permute.xlu1 %1742 }
 0x4c1   : > { %v1687_v11 = vadd.f32 %v1648_v44, %v1510_v38  ;;  %v1339_v38 = vadd.f32 %v6080_v52, %v6048_v25 }
 0x4c3   : > { %v1703_v27 = vmax.f32 %v1687_v11, 0.0 }
 0x4c5   : > { %1655 = vrot.lane.b32.xlu0 %v6046_v7, %s5481_s13 }
 0x4c6   : > { %v1650_v31 = vpop.permute.xlu0 %1649 }
 0x4c7   : > { %v1688_v58 = vadd.f32 %v1650_v31, %v1511_v61  ;;  %v1340_v61 = vadd.f32 %v6080_v52, %v6058_v56 }
 0x4c8   : > { %v1652_v55 = vpop.permute.xlu1 %1651 }
 0x4c9   : > { %v1704_v35 = vmax.f32 %v1688_v58, 0.0  ;;  %v1689_v45 = vadd.f32 %v1652_v55, %v1512_v29 }
 0x4cb   : > { %v1717_v30 = vpack.c.bf16 %v1704_v35, %v1703_v27  ;;  %v1705_v0 = vmax.f32 %v1689_v45, 0.0 }
 0x4cd   : > { %1482 = vrot.lane.b32.xlu0 %v6056_v23, %s5481_s13  ;;  %1746 = vrot.lane.b32.xlu2 %v1717_v30, %s5481_s13 }
 0x4ce   : > { %v1477_v7 = vpop.permute.xlu0 %1476 }
 0x4cf   : > { %v1513_v42 = vadd.f32 %v1477_v7, %v1336_v22  ;;  %4845 = vmatmul.msk.bf16.gmra.mxu0 %vm601_vm0, %v1743_v51  ;;  %4853 = vmatmul.msk.bf16.gmra.mxu1 %vm601_vm0, %v1743_v51 }
 0x4d0   : > { %v1479_v4 = vpop.permute.xlu1 %1478 }
 0x4d1   : > { %v1690_v16 = vadd.f32 %v1654_v40, %v1513_v42  ;;  %v1514_v43 = vadd.f32 %v1479_v4, %v1337_v5 }
 0x4d3   : > { %v1706_v23 = vmax.f32 %v1690_v16, 0.0 }
 0x4d5   : > { %1661 = vrot.lane.b32.xlu0 %v1614_v14, %s5481_s13  ;;  %1659 = vrot.lane.b32.xlu2 %v1551_v12, %s5481_s13  ;;  %v1718_v1 = vpack.c.bf16 %v1706_v23, %v1705_v0 }
 0x4d7   : > { %1748 = vrot.lane.b32.xlu1 %v1718_v1, %s5481_s13 }
 0x4d8   : > { %v1658_v41 = vpop.permute.xlu1 %1657 }
 0x4d9   : > { %v1692_v63 = vadd.f32 %v1658_v41, %v1515_v49 }
 0x4db   : > { %v1708_v2 = vmax.f32 %v1692_v63, 0.0 }
 0x4df   : > { %1918 = vrot.lane.b32.xlu1 %v5332_v62, %s5481_s13 }
 0x4e0   : > { %v1485_v39 = vpop.permute.xlu1 %1484 }
 0x4e1   : > { %v1517_v37 = vadd.f32 %v1485_v39, %v1340_v61 }
 0x527   : > { %v1747_v18 = vpop.permute.xlu2 %1746 }
 0x52c   : > { %v6190_v20 = vpop.f32.mrf.mxu0  ;;  %v6192_v17 = vpop.f32.mrf.mxu1 }
 0x52d   : > { %v2130_v60 = vrot.slane %v6192_v17, 4  ;;  %v1953_v16 = vrot.slane %v6190_v20, 4 }
 0x52f   : > { %v1745_v46 = vpop.permute.xlu0 %1744  ;;  %v1660_v31 = vpop.permute.xlu2 %1659 }
 0x530   : > { %4846 = vmatmul.msk.bf16.gmra.mxu0 %vm601_vm0, %v1745_v46  ;;  %4854 = vmatmul.msk.bf16.gmra.mxu1 %vm601_vm0, %v1745_v46 }
 0x534   : > { %v6201_v26 = vpop.f32.mrf.mxu0  ;;  %v1878_v54 = vpop.f32.mrf.mxu1 }
 0x535   : > { %v2131_v8 = vrot.slane %v1878_v54, 4  ;;  %v1954_v40 = vrot.slane %v6201_v26, 4 }
 0x537   : > { %v1656_v13 = vpop.permute.xlu0 %1655  ;;  %v2160_v53 = vsel %vm1969_vm13, %v2130_v60, %v2131_v8  ;;  %v1984_v50 = vsel %vm1969_vm13, %v1953_v16, %v1954_v40 }
 0x538   : > { %v1691_v6 = vadd.f32 %v1656_v13, %v1514_v43  ;;  %2226 = vrot.lane.b32.xlu1 %v2160_v53, %s5481_s13 }
 0x53a   : > { %v1707_v57 = vmax.f32 %v1691_v6, 0.0 }
 0x53c   : > { %v6209_v19 = vpop.f32.mrf.mxu0  ;;  %v1881_v28 = vpop.f32.mrf.mxu1  ;;  %v1719_v24 = vpack.c.bf16 %v1708_v2, %v1707_v57 }
 0x53d   : > { %v2132_v44 = vrot.slane %v1881_v28, 4  ;;  %v1955_v58 = vrot.slane %v6209_v19, 4 }
 0x53e   : > { %1750 = vrot.lane.b32.xlu2 %v1719_v24, %s5481_s13 }
 0x53f   : > { %v1483_v34 = vpop.permute.xlu0 %1482  ;;  %v6214_v15 = vsel %vm1969_vm13, %v2131_v8, %v2132_v44  ;;  %v1983_v23 = vsel %vm1969_vm13, %v1954_v40, %v1955_v58 }
 0x540   : > { %4847 = vmatmul.msk.bf16.gmra.mxu0 %vm601_vm0, %v1747_v18  ;;  %4855 = vmatmul.msk.bf16.gmra.mxu1 %vm601_vm0, %v1747_v18  ;;  %v1516_v51 = vadd.f32 %v1483_v34, %v1339_v38 }
 0x542   : > { %v1693_v25 = vadd.f32 %v1660_v31, %v1516_v51 }
 0x544   : > { %v6222_v11 = vpop.f32.mrf.mxu0  ;;  %v1883_v10 = vpop.f32.mrf.mxu1  ;;  %v1709_v52 = vmax.f32 %v1693_v25, 0.0 }
 0x545   : > { %v1956_v27 = vrot.slane %v6222_v11, 4  ;;  %v2133_v35 = vrot.slane %v1883_v10, 4 }
 0x547   : > { %v1662_v59 = vpop.permute.xlu0 %1661  ;;  %v1982_v30 = vsel %vm1969_vm13, %v1955_v58, %v1956_v27  ;;  %v6230_v55 = vsel %vm1969_vm13, %v2132_v44, %v2133_v35 }
 0x548   : > { %v1694_v56 = vadd.f32 %v1662_v59, %v1517_v37  ;;  %2056 = vrot.lane.b32.xlu1 %v1982_v30, %s5481_s13 }
 0x549   : > { %v1749_v45 = vpop.permute.xlu1 %1748 }
 0x54a   : > { %v1710_v22 = vmax.f32 %v1694_v56, 0.0 }
 0x54c   : > { %v6233_v21 = vpop.f32.mrf.mxu0  ;;  %v1720_v29 = vpack.c.bf16 %v1710_v22, %v1709_v52  ;;  %v1886_v0 = vpop.f32.mrf.mxu1 }
 0x54d   : > { %v1957_v7 = vrot.slane %v6233_v21, 4  ;;  %v2134_v14 = vrot.slane %v1886_v0, 4 }
 0x54e   : > { %1752 = vrot.lane.b32.xlu0 %v1720_v29, %s5481_s13 }
 0x54f   : > { %v1981_v42 = vsel %vm1969_vm13, %v1956_v27, %v1957_v7  ;;  %v2157_v12 = vsel %vm1969_vm13, %v2133_v35, %v2134_v14 }
 0x550   : > { %2058 = vrot.lane.b32.xlu1 %v1981_v42, %s5481_s13  ;;  %4848 = vmatmul.msk.bf16.gmra.mxu0 %vm601_vm0, %v1749_v45 }
 0x551   : > { %4856 = vmatmul.msk.bf16.gmra.mxu1 %vm601_vm0, %v1749_v45 }
 0x554   : > { %v1888_v1 = vpop.f32.mrf.mxu1  ;;  %v6262_v33 = vpop.f32.mrf.mxu0 }
 0x555   : > { %v2135_v62 = vrot.slane %v1888_v1, 4  ;;  %v1958_v5 = vrot.slane %v6262_v33, 4 }
 0x556   : > { %2052 = vrot.lane.b32.xlu0 %v1984_v50, %s5481_s13 }
 0x557   : > { %v2156_v4 = vsel %vm1969_vm13, %v2134_v14, %v2135_v62  ;;  %v5165_v14 = vld [vmem:[#allocation2 + $0xf4] sm:$0xf]  ;;  %v1980_v32 = vsel %vm1969_vm13, %v1957_v7, %v1958_v5 }
 0x55e   : > { %2054 = vrot.lane.b32.xlu0 %v1983_v23, %s5481_s13 }
 0x566   : > { %2232 = vrot.lane.b32.xlu0 %v2157_v12, %s5481_s13  ;;  %v4888_v12 = vld [vmem:[#allocation2 + $0xf8] sm:$0xf0] }
 0x567   : > { %v4891_v1 = vor.u32 %v5165_v14, %v4888_v12 }
 0x569   : > { %2466 = vmatpush.bf16.msrb.mxu3 %v4891_v1 }
 0x56e   : > { %2234 = vrot.lane.b32.xlu0 %v2156_v4, %s5481_s13 }
 0x598   : > { %v1751_v46 = vpop.permute.xlu2 %1750 }
 0x599   : > { %4849 = vmatmul.msk.bf16.gmra.mxu0 %vm601_vm0, %v1751_v46  ;;  %4857 = vmatmul.msk.bf16.gmra.mxu1 %vm601_vm0, %v1751_v46 }
 0x5ad   : > { %v6264_v3 = vpop.f32.mrf.mxu0  ;;  %v1891_v41 = vpop.f32.mrf.mxu1 }
 0x5ae   : > { %v1959_v49 = vrot.slane %v6264_v3, 4  ;;  %v2136_v54 = vrot.slane %v1891_v41, 4 }
 0x5b0   : > { %v2155_v8 = vsel %vm1969_vm13, %v2135_v62, %v2136_v54  ;;  %v1979_v43 = vsel %vm1969_vm13, %v1958_v5, %v1959_v49 }
 0x5b1   : > { %2236 = vrot.lane.b32.xlu1 %v2155_v8, %s5481_s13  ;;  %2062 = vrot.lane.b32.xlu0 %v1979_v43, %s5481_s13  ;;  %v5163_v8 = vld [vmem:[#allocation2 + $0xe4] sm:$0xf]  ;;  %v4880_v43 = vld [vmem:[#allocation2 + $0xe8] sm:$0xf0] }
 0x5b5   : > { %v6274_v63 = vpop.f32.mrf.mxu0  ;;  %v1893_v13 = vpop.f32.mrf.mxu1 }
 0x5b6   : > { %v1960_v53 = vrot.slane %v6274_v63, 4  ;;  %v2137_v6 = vrot.slane %v1893_v13, 4  ;;  %v4883_v13 = vor.u32 %v5163_v8, %v4880_v43 }
 0x5b8   : > { %v1978_v2 = vsel %vm1969_vm13, %v1959_v49, %v1960_v53  ;;  %v6281_v57 = vsel %vm1969_vm13, %v2136_v54, %v2137_v6  ;;  %2467 = vmatpush.bf16.msrb.mxu3 %v4883_v13 }
 0x5b9   : > { %2064 = vrot.lane.b32.xlu1 %v1978_v2, %s5481_s13 }
 0x5bd   : > { %v6284_v18 = vpop.f32.mrf.mxu0  ;;  %v6286_v28 = vpop.f32.mrf.mxu1 }
 0x5be   : > { %v1961_v24 = vrot.slane %v6284_v18, 4  ;;  %v2138_v44 = vrot.slane %v6286_v28, 4 }
 0x5c0   : > { %v1753_v34 = vpop.permute.xlu0 %1752  ;;  %v2153_v38 = vsel %vm1969_vm13, %v2137_v6, %v2138_v44  ;;  %v6297_v51 = vsel %vm1969_vm13, %v1960_v53, %v1961_v24  ;;  %v4886_v53 = vld [vmem:[#allocation2 + $0xf0] sm:$0xf]  ;;  %v5166_v6 = vld [vmem:[#allocation2 + $0xf4] sm:$0xf0] }
 0x5c1   : > { %4850 = vmatmul.msk.bf16.gmra.mxu0 %vm601_vm0, %v1753_v34  ;;  %4858 = vmatmul.msk.bf16.gmra.mxu1 %vm601_vm0, %v1753_v34  ;;  %v2201_v39 = vsel %vm2121_vm14, %v2153_v38, 0.0 }
 0x5c2   : > { %2240 = vrot.lane.b32.xlu0 %v2201_v39, %s5481_s13 }
 0x5c5   : > { %v6302_v61 = vpop.f32.mrf.mxu0  ;;  %v6317_v35 = vpop.f32.mrf.mxu1 }
 0x5c6   : > { %v1962_v9 = vrot.slane %v6302_v61, 4 }
 0x5c8   : > { %v1976_v10 = vsel %vm1969_vm13, %v1961_v24, %v1962_v9  ;;  %v2053_v54 = vpop.permute.xlu0 %2052  ;;  %v4887_v24 = vor.u32 %v5166_v6, %v4886_v53 }
 0x5ca   : > { %2068 = vrot.lane.b32.xlu0 %v1976_v10, %s5481_s13  ;;  %2417 = vmatpush.bf16.msrb.mxu2 %v4887_v24 }
 0x5cd   : > { %v6308_v31 = vpop.f32.mrf.mxu0 }
 0x5ce   : > { %v1963_v58 = vrot.slane %v6308_v31, 4  ;;  %v6319_v37 = vpop.f32.mrf.mxu1 }
 0x5d0   : > { %v6315_v27 = vsel %vm1969_vm13, %v1962_v9, %v1963_v58  ;;  %v2055_v34 = vpop.permute.xlu0 %2054 }
 0x5d5   : > { %v6337_v29 = vpop.f32.mrf.mxu0 }
 0x5d6   : > { %v6321_v25 = vpop.f32.mrf.mxu1 }
 0x616   : > { %v6323_v59 = vpop.f32.mrf.mxu1  ;;  %v6339_v45 = vpop.f32.mrf.mxu0 }
 0x617   : > { %v2142_v56 = vrot.slane %v6323_v59, 4 }
 0x61e   : > { %v6325_v30 = vpop.f32.mrf.mxu1  ;;  %v6341_v42 = vpop.f32.mrf.mxu0 }
 0x61f   : > { %v2143_v52 = vrot.slane %v6325_v30, 4  ;;  %v1966_v50 = vrot.slane %v6341_v42, 4 }
 0x621   : > { %v6335_v22 = vsel %vm1969_vm13, %v2142_v56, %v2143_v52 }
 0x63e   : > { %v6343_v40 = vpop.f32.mrf.mxu0 }
 0x63f   : > { %v1967_v0 = vrot.slane %v6343_v40, 4 }
 0x641   : > { %v6351_v23 = vsel %vm1969_vm13, %v1966_v50, %v1967_v0 }
 0x646   : > { %v6353_v62 = vpop.f32.mrf.mxu0 }
 0x647   : > { %v1968_v4 = vrot.slane %v6353_v62, 4 }
 0x649   : > { %v1985_v46 = vsel %vm1969_vm13, %v1968_v4, %v1953_v16  ;;  %v6363_v41 = vsel %vm1969_vm13, %v1967_v0, %v1968_v4  ;;  %v6375_v16 = vpop.permute.xlu1 %1918  ;;  %v2233_v4 = vpop.permute.xlu0 %2232 }
 0x64a   : > { %v2018_v49 = vsel %vm1937_vm15, %v1985_v46, 0.0  ;;  %v1922_v5 = vadd.f32 %v6375_v16, %v6201_v26  ;;  %v1924_v14 = vadd.f32 %v6375_v16, %v6222_v11  ;;  %v1925_v11 = vadd.f32 %v6375_v16, %v6233_v21 }
 0x64b   : > { %2050 = vrot.lane.b32.xlu2 %v2018_v49, %s5481_s13  ;;  %v1927_v30 = vadd.f32 %v6375_v16, %v6264_v3 }
 0x64c   : > { %v2099_v38 = vadd.f32 %v2053_v54, %v1922_v5  ;;  %v4872_v5 = vld [vmem:[#allocation2 + $0xd8] sm:$0xf0] }
 0x651   : > { %v2227_v2 = vpop.permute.xlu1 %2226 }
 0x653   : > { %2228 = vrot.lane.b32.xlu2 %v6214_v15, %s5481_s13 }
 0x659   : > { %v2057_v9 = vpop.permute.xlu1 %2056 }
 0x65a   : > { %v2101_v46 = vadd.f32 %v2057_v9, %v1924_v14 }
 0x65b   : > { %2230 = vrot.lane.b32.xlu2 %v6230_v55, %s5481_s13  ;;  %v1921_v55 = vadd.f32 %v6375_v16, %v6190_v20  ;;  %v1923_v20 = vadd.f32 %v6375_v16, %v6209_v19  ;;  %v1926_v19 = vadd.f32 %v6375_v16, %v6262_v33  ;;  %v2026_v33 = vsel %vm1945_vm1, %v6297_v51, 0.0  ;;  %v4862_v51 = vld [vmem:[#allocation2 + $0xc0] sm:$0xf] }
 0x65c   : > { %v2277_v8 = vadd.f32 %v2233_v4, %v2101_v46  ;;  %v2140_v4 = vrot.slane %v6319_v37, 4  ;;  %v4864_v46 = vld [vmem:[#allocation2 + $0xc8] sm:$0xf0] }
 0x65e   : > { %v2293_v13 = vmax.f32 %v2277_v8, 0.0  ;;  %v5160_v8 = vld [vmem:[#allocation2 + $0xc4] sm:$0xf0] }
 0x661   : > { %v2059_v43 = vpop.permute.xlu1 %2058 }
 0x663   : > { %2060 = vrot.lane.b32.xlu2 %v1980_v32, %s5481_s13  ;;  %v2100_v32 = vadd.f32 %v2055_v34, %v1923_v20  ;;  %v4870_v20 = vld [vmem:[#allocation2 + $0xd0] sm:$0xf] }
 0x669   : > { %v2237_v21 = vpop.permute.xlu1 %2236 }
 0x6a5   : > { %v2051_v15 = vpop.permute.xlu2 %2050 }
 0x6a6   : > { %v2098_v7 = vadd.f32 %v2051_v15, %v1921_v55  ;;  %v2102_v15 = vadd.f32 %v2059_v43, %v1925_v11  ;;  %v1964_v43 = vrot.slane %v6337_v29, 4  ;;  %v1911_v11 = vpop.f32.mrf.mxu1 }
 0x6a8   : > { %v2274_v39 = vadd.f32 %v2227_v2, %v2098_v7  ;;  %v2235_v2 = vpop.permute.xlu0 %2234  ;;  %v5161_v7 = vld [vmem:[#allocation2 + $0xd4] sm:$0xf] }
 0x6a9   : > { %v2278_v55 = vadd.f32 %v2235_v2, %v2102_v15  ;;  %v4875_v9 = vor.u32 %v5161_v7, %v4872_v5  ;;  %v2065_v15 = vpop.permute.xlu1 %2064 }
 0x6aa   : > { %v2290_v12 = vmax.f32 %v2274_v39, 0.0  ;;  %v2139_v39 = vrot.slane %v6317_v35, 4 }
 0x6ab   : > { %2468 = vmatpush.bf16.msrb.mxu3 %v4875_v9  ;;  %v2294_v14 = vmax.f32 %v2278_v55, 0.0 }
 0x6ad   : > { %v2229_v10 = vpop.permute.xlu2 %2228 }
 0x6ae   : > { %v2275_v0 = vadd.f32 %v2229_v10, %v2099_v38  ;;  %v4878_v38 = vld [vmem:[#allocation2 + $0xe0] sm:$0xf]  ;;  %v5164_v10 = vld [vmem:[#allocation2 + $0xe4] sm:$0xf0] }
 0x6b0   : > { %v2291_v1 = vmax.f32 %v2275_v0, 0.0 }
 0x6b2   : > { %v2308_v49 = vpack.c.bf16 %v2291_v1, %v2290_v12  ;;  %v2152_v1 = vsel %vm1969_vm13, %v2138_v44, %v2139_v39  ;;  %v4863_v44 = vor.u32 %v5160_v8, %v4862_v51 }
 0x6b4   : > { %2333 = vrot.lane.b32.xlu2 %v2308_v49, %s5481_s13  ;;  %v4867_v49 = vor.u32 %v5159_v48, %v4864_v46 }
 0x6b5   : > { %v2231_v26 = vpop.permute.xlu2 %2230 }
 0x6b6   : > { %v2276_v54 = vadd.f32 %v2231_v26, %v2100_v32  ;;  %v5162_v32 = vld [vmem:[#allocation2 + $0xd4] sm:$0xf0]  ;;  %v2141_v26 = vrot.slane %v6321_v25, 4  ;;  %2469 = vmatpush.bf16.msrb.mxu3 %v4867_v49  ;;  %v1965_v25 = vrot.slane %v6339_v45, 4  ;;  %v1932_v49 = vadd.f32 %v6375_v16, %v6337_v29 }
 0x6b7   : > { %v4871_v28 = vor.u32 %v5162_v32, %v4870_v20 }
 0x6b8   : > { %v2292_v53 = vmax.f32 %v2276_v54, 0.0  ;;  %v2151_v54 = vsel %vm1969_vm13, %v2139_v39, %v2140_v4  ;;  %v2150_v37 = vsel %vm1969_vm13, %v2140_v4, %v2141_v26 }
 0x6ba   : > { %v2309_v6 = vpack.c.bf16 %v2293_v13, %v2292_v53  ;;  %v1974_v13 = vsel %vm1969_vm13, %v1963_v58, %v1964_v43  ;;  %v1973_v53 = vsel %vm1969_vm13, %v1964_v43, %v1965_v25  ;;  %v1972_v58 = vsel %vm1969_vm13, %v1965_v25, %v1966_v50 }
 0x6bb   : > { %v1928_v50 = vadd.f32 %v6375_v16, %v6274_v63  ;;  %v1934_v25 = vadd.f32 %v6375_v16, %v6341_v42 }
 0x6bc   : > { %2238 = vrot.lane.b32.xlu2 %v6281_v57, %s5481_s13  ;;  %2335 = vrot.lane.b32.xlu1 %v2309_v6, %s5481_s13  ;;  %v4879_v57 = vor.u32 %v5164_v10, %v4878_v38  ;;  %v2144_v6 = vrot.slane %v1911_v11, 4  ;;  %v1930_v10 = vadd.f32 %v6375_v16, %v6302_v61 }
 0x6bd   : > { %v2061_v24 = vpop.permute.xlu2 %2060 }
 0x6be   : > { %v2103_v34 = vadd.f32 %v2061_v24, %v1926_v19  ;;  %2418 = vmatpush.bf16.msrb.mxu2 %v4879_v57  ;;  %v2147_v59 = vsel %vm1969_vm13, %v2143_v52, %v2144_v6  ;;  %v2105_v52 = vadd.f32 %v2065_v15, %v1928_v50  ;;  %v5482_v50 = vmov 0.0  }
 0x6c0   : > { %v2279_v0 = vadd.f32 %v2237_v21, %v2103_v34  ;;  %v1913_v21 = vpop.f32.mrf.mxu1 }
 0x6c1   : > { %v2145_v63 = vrot.slane %v1913_v21, 4 }
 0x6c2   : > { %v2295_v12 = vmax.f32 %v2279_v0, 0.0  ;;  %2419 = vmatpush.bf16.msrb.mxu2 %v4871_v28 }
 0x6c3   : > { %v2146_v32 = vsel %vm1969_vm13, %v2144_v6, %v2145_v63 }
 0x6c4   : > { %2066 = vrot.lane.b32.xlu2 %v2026_v33, %s5481_s13  ;;  %2242 = vrot.lane.b32.xlu1 %v2152_v1, %s5481_s13  ;;  %v2310_v35 = vpack.c.bf16 %v2295_v12, %v2294_v14 }
 0x6c6   : > { %2337 = vrot.lane.b32.xlu0 %v2310_v35, %s5481_s13  ;;  %2420 = vmatpush.bf16.msrb.mxu2 %v4863_v44 }
 0x6cc   : > { %2244 = vrot.lane.b32.xlu2 %v2151_v54, %s5481_s13  ;;  %2070 = vrot.lane.b32.xlu1 %v6315_v27, %s5481_s13  ;;  %v2149_v27 = vsel %vm1969_vm13, %v2141_v26, %v2142_v56  ;;  %v2063_v56 = vpop.permute.xlu0 %2062 }
 0x6cd   : > { %v2104_v24 = vadd.f32 %v2063_v56, %v1927_v30 }
 0x6ce   : > { %2246 = vrot.lane.b32.xlu0 %v2150_v37, %s5481_s13  ;;  %v5333_v37 = vld [vmem:[%s6961_s3 + $0x3] ss:$0 sm:$0xff] }
 0x6d4   : > { %2072 = vrot.lane.b32.xlu2 %v1974_v13, %s5481_s13  ;;  %2248 = vrot.lane.b32.xlu1 %v2149_v27, %s5481_s13  ;;  %v2241_v19 = vpop.permute.xlu0 %2240 }
 0x6d5   : > { %v2281_v55 = vadd.f32 %v2241_v19, %v2105_v52 }
 0x6d6   : > { %2074 = vrot.lane.b32.xlu0 %v1973_v53, %s5481_s13  ;;  %v1933_v53 = vadd.f32 %v6375_v16, %v6339_v45 }
 0x6dc   : > { %2076 = vrot.lane.b32.xlu1 %v1972_v58, %s5481_s13  ;;  %v2069_v9 = vpop.permute.xlu0 %2068 }
 0x6dd   : > { %v2107_v57 = vadd.f32 %v2069_v9, %v1930_v10 }
 0x6de   : > { %2252 = vrot.lane.b32.xlu0 %v2147_v59, %s5481_s13 }
 0x6e6   : > { %2080 = vrot.lane.b32.xlu0 %v6363_v41, %s5481_s13  ;;  %v2297_v41 = vmax.f32 %v2281_v55, 0.0 }
 0x70e   : > { %v2334_v2 = vpop.permute.xlu2 %2333 }
 0x70f   : > { %4892 = vmatmul.msk.bf16.vlgmr.msrb.gmra.mxu2 %vm601_vm0, %v2334_v2  ;;  %4900 = vmatmul.msk.bf16.vlgmr.msrb.gmra.mxu3 %vm601_vm0, %v2334_v2 }
 0x716   : > { %v2239_v34 = vpop.permute.xlu2 %2238 }
 0x717   : > { %v2280_v7 = vadd.f32 %v2239_v34, %v2104_v24  ;;  %v1936_v34 = vadd.f32 %v6375_v16, %v6353_v62 }
 0x719   : > { %v2296_v5 = vmax.f32 %v2280_v7, 0.0 }
 0x71b   : > { %v2311_v38 = vpack.c.bf16 %v2297_v41, %v2296_v5 }
 0x71d   : > { %2339 = vrot.lane.b32.xlu2 %v2311_v38, %s5481_s13  ;;  %v1935_v38 = vadd.f32 %v6375_v16, %v6343_v40 }
 0x71e   : > { %v2067_v39 = vpop.permute.xlu2 %2066 }
 0x725   : > { %2250 = vrot.lane.b32.xlu2 %v6335_v22, %s5481_s13  ;;  %v2161_v22 = vsel %vm1969_vm13, %v2145_v63, %v2130_v60  ;;  %v1931_v60 = vadd.f32 %v6375_v16, %v6308_v31 }
 0x726   : > { %v2245_v0 = vpop.permute.xlu2 %2244  ;;  %v2209_v14 = vsel %vm2129_vm2, %v2161_v22, 0.0 }
 0x727   : > { %v2283_v33 = vadd.f32 %v2245_v0, %v2107_v57 }
 0x729   : > { %v2299_v4 = vmax.f32 %v2283_v33, 0.0 }
 0x72d   : > { %2078 = vrot.lane.b32.xlu2 %v6351_v23, %s5481_s13  ;;  %v1929_v23 = vadd.f32 %v6375_v16, %v6284_v18 }
 0x72e   : > { %v2336_v3 = vpop.permute.xlu1 %2335  ;;  %v2073_v46 = vpop.permute.xlu2 %2072 }
 0x72f   : > { %4893 = vmatmul.msk.bf16.gmra.mxu2 %vm601_vm0, %v2336_v3  ;;  %4901 = vmatmul.msk.bf16.gmra.mxu3 %vm601_vm0, %v2336_v3  ;;  %v2106_v12 = vadd.f32 %v2067_v39, %v1929_v23  ;;  %v2109_v51 = vadd.f32 %v2073_v46, %v1932_v49 }
 0x735   : > { %2256 = vrot.lane.b32.xlu2 %v2209_v14, %s5481_s13 }
 0x736   : > { %v2243_v1 = vpop.permute.xlu1 %2242 }
 0x737   : > { %v2282_v35 = vadd.f32 %v2243_v1, %v2106_v12 }
 0x738   : > { %v2338_v61 = vpop.permute.xlu0 %2337 }
 0x739   : > { %v2298_v47 = vmax.f32 %v2282_v35, 0.0 }
 0x73b   : > { %v2312_v48 = vpack.c.bf16 %v2299_v4, %v2298_v47 }
 0x73d   : > { %2341 = vrot.lane.b32.xlu1 %v2312_v48, %s5481_s13 }
 0x73e   : > { %v2071_v17 = vpop.permute.xlu1 %2070 }
 0x73f   : > { %4894 = vmatmul.msk.bf16.gmra.mxu2 %vm601_vm0, %v2338_v61  ;;  %4902 = vmatmul.msk.bf16.gmra.mxu3 %vm601_vm0, %v2338_v61  ;;  %v2108_v18 = vadd.f32 %v2071_v17, %v1931_v60 }
 0x740   : > { %v2247_v20 = vpop.permute.xlu0 %2246 }
 0x741   : > { %v2284_v8 = vadd.f32 %v2247_v20, %v2108_v18 }
 0x743   : > { %v2300_v31 = vmax.f32 %v2284_v8, 0.0 }
 0x745   : > { %2254 = vrot.lane.b32.xlu1 %v2146_v32, %s5481_s13 }
 0x746   : > { %v2249_v28 = vpop.permute.xlu1 %2248 }
 0x747   : > { %v2285_v26 = vadd.f32 %v2249_v28, %v2109_v51 }
 0x748   : > { %v2075_v29 = vpop.permute.xlu0 %2074 }
 0x749   : > { %v2301_v44 = vmax.f32 %v2285_v26, 0.0  ;;  %v2110_v11 = vadd.f32 %v2075_v29, %v1933_v53 }
 0x74b   : > { %v2313_v54 = vpack.c.bf16 %v2301_v44, %v2300_v31 }
 0x74d   : > { %2343 = vrot.lane.b32.xlu0 %v2313_v54, %s5481_s13 }
 0x74e   : > { %v2077_v36 = vpop.permute.xlu1 %2076 }
 0x74f   : > { %v2111_v13 = vadd.f32 %v2077_v36, %v1934_v25 }
 0x750   : > { %v2253_v27 = vpop.permute.xlu0 %2252 }
 0x751   : > { %v2287_v6 = vadd.f32 %v2253_v27, %v2111_v13 }
 0x753   : > { %v2303_v56 = vmax.f32 %v2287_v6, 0.0 }
 0x755   : > { %2513 = vrot.lane.b32.xlu0 %v5333_v37, %s5481_s13 }
 0x758   : > { %v2081_v55 = vpop.permute.xlu0 %2080 }
 0x759   : > { %v2113_v39 = vadd.f32 %v2081_v55, %v1936_v34  ;;  %v4935_v55 = vld [vmem:[#allocation2 + $0x130] sm:$0xf]  ;;  %v5174_v34 = vld [vmem:[#allocation2 + $0x134] sm:$0xf0] }
 0x777   : > { %v2340_v43 = vpop.permute.xlu2 %2339 }
 0x778   : > { %4895 = vmatmul.msk.bf16.gmra.mxu2 %vm601_vm0, %v2340_v43  ;;  %4903 = vmatmul.msk.bf16.gmra.mxu3 %vm601_vm0, %v2340_v43 }
 0x77f   : > { %v2251_v58 = vpop.permute.xlu2 %2250 }
 0x780   : > { %v2286_v59 = vadd.f32 %v2251_v58, %v2110_v11 }
 0x782   : > { %v2302_v2 = vmax.f32 %v2286_v59, 0.0 }
 0x784   : > { %v2314_v15 = vpack.c.bf16 %v2303_v56, %v2302_v2 }
 0x786   : > { %2345 = vrot.lane.b32.xlu1 %v2314_v15, %s5481_s13 }
 0x787   : > { %v2079_v52 = vpop.permute.xlu2 %2078 }
 0x788   : > { %v2112_v21 = vadd.f32 %v2079_v52, %v1935_v38  ;;  %v5173_v52 = vld [vmem:[#allocation2 + $0x134] sm:$0xf] }
 0x78e   : > { %2612 = vrot.lane.b32.xlu1 %v5482_v50, %s5481_s13 }
 0x78f   : > { %v2257_v5 = vpop.permute.xlu2 %2256 }
 0x790   : > { %v2289_v63 = vadd.f32 %v2257_v5, %v2113_v39 }
 0x792   : > { %v2471_v42 = vpop.f32.mrf.mxu3  ;;  %v2422_v30 = vpop.f32.mrf.mxu2  ;;  %v2305_v10 = vmax.f32 %v2289_v63, 0.0 }
 0x79a   : > { %v2473_v19 = vpop.f32.mrf.mxu3  ;;  %v2424_v45 = vpop.f32.mrf.mxu2 }
 0x79b   : > { %2756 = vrot.lane.b32.xlu0 %v2473_v19, %s5481_s13 }
 0x7af   : > { %v2342_v24 = vpop.permute.xlu1 %2341 }
 0x7b0   : > { %4896 = vmatmul.msk.bf16.gmra.mxu2 %vm601_vm0, %v2342_v24  ;;  %4904 = vmatmul.msk.bf16.gmra.mxu3 %vm601_vm0, %v2342_v24 }
 0x7b2   : > { %v2427_v7 = vpop.f32.mrf.mxu2  ;;  %v2476_v41 = vpop.f32.mrf.mxu3 }
 0x7b3   : > { %2618 = vrot.lane.b32.xlu0 %v2427_v7, %s5481_s13  ;;  %2758 = vrot.lane.b32.xlu1 %v2476_v41, %s5481_s13  ;;  %v4936_v41 = vor.u32 %v5174_v34, %v4935_v55 }
 0x7b5   : > { %2947 = vmatpush.bf16.msra.mxu0 %v4936_v41 }
 0x7b7   : > { %v2255_v3 = vpop.permute.xlu1 %2254 }
 0x7b8   : > { %v2288_v9 = vadd.f32 %v2255_v3, %v2112_v21 }
 0x7ba   : > { %v2304_v22 = vmax.f32 %v2288_v9, 0.0  ;;  %v2429_v0 = vpop.f32.mrf.mxu2  ;;  %v2478_v23 = vpop.f32.mrf.mxu3 }
 0x7bb   : > { %2620 = vrot.lane.b32.xlu0 %v2429_v0, %s5481_s13  ;;  %2760 = vrot.lane.b32.xlu1 %v2478_v23, %s5481_s13  ;;  %v4929_v23 = vld [vmem:[#allocation2 + $0x128] sm:$0xf0] }
 0x7bc   : > { %v2315_v62 = vpack.c.bf16 %v2305_v10, %v2304_v22 }
 0x7be   : > { %2347 = vrot.lane.b32.xlu2 %v2315_v62, %s5481_s13  ;;  %v4927_v62 = vld [vmem:[#allocation2 + $0x120] sm:$0xf] }
 0x7bf   : > { %v2344_v57 = vpop.permute.xlu0 %2343 }
 0x7c0   : > { %4897 = vmatmul.msk.bf16.gmra.mxu2 %vm601_vm0, %v2344_v57  ;;  %4905 = vmatmul.msk.bf16.gmra.mxu3 %vm601_vm0, %v2344_v57 }
 0x7c2   : > { %v6501_v40 = vpop.f32.mrf.mxu2  ;;  %v2481_v16 = vpop.f32.mrf.mxu3 }
 0x7c3   : > { %2622 = vrot.lane.b32.xlu1 %v6501_v40, %s5481_s13 }
 0x7c6   : > { %2614 = vrot.lane.b32.xlu2 %v2422_v30, %s5481_s13 }
 0x7c7   : > { %v6522_v4 = vpop.permute.xlu0 %2513 }
 0x7c8   : > { %v2516_v48 = vadd.f32 %v6522_v4, %v2422_v30  ;;  %v2517_v46 = vadd.f32 %v6522_v4, %v2424_v45  ;;  %v2518_v37 = vadd.f32 %v6522_v4, %v2427_v7  ;;  %v2519_v36 = vadd.f32 %v6522_v4, %v2429_v0  ;;  %v5171_v0 = vld [vmem:[#allocation2 + $0x124] sm:$0xf] }
 0x7c9   : > { %v2520_v5 = vadd.f32 %v6522_v4, %v6501_v40  ;;  %v4932_v57 = vor.u32 %v5171_v0, %v4929_v23 }
 0x7ca   : > { %v2483_v14 = vpop.f32.mrf.mxu3  ;;  %v6509_v12 = vpop.f32.mrf.mxu2 }
 0x7cb   : > { %v2521_v63 = vadd.f32 %v6522_v4, %v6509_v12 }
 0x7ce   : > { %2616 = vrot.lane.b32.xlu2 %v2424_v45, %s5481_s13  ;;  %v4937_v45 = vld [vmem:[#allocation2 + $0x138] sm:$0xf0] }
 0x7cf   : > { %v4940_v24 = vor.u32 %v5173_v52, %v4937_v45 }
 0x7d1   : > { %2996 = vmatpush.bf16.msra.mxu1 %v4940_v24 }
 0x7d5   : > { %2997 = vmatpush.bf16.msra.mxu1 %v4932_v57 }
 0x7d6   : > { %2762 = vrot.lane.b32.xlu2 %v2481_v16, %s5481_s13  ;;  %v5172_v16 = vld [vmem:[#allocation2 + $0x124] sm:$0xf0] }
 0x7d7   : > { %v4928_v40 = vor.u32 %v5172_v16, %v4927_v62 }
 0x7d9   : > { %2948 = vmatpush.bf16.msra.mxu0 %v4928_v40 }
 0x7de   : > { %2764 = vrot.lane.b32.xlu2 %v2483_v14, %s5481_s13  ;;  %v4919_v14 = vld [vmem:[#allocation2 + $0x110] sm:$0xf] }
 0x7e6   : > { %2624 = vrot.lane.b32.xlu2 %v6509_v12, %s5481_s13 }
 0x7ee   : > { %2770 = vrot.lane.b32.xlu2 %v5482_v50, %s5481_s13 }
 0x7f8   : > { %v2346_v33 = vpop.permute.xlu1 %2345 }
 0x7f9   : > { %4898 = vmatmul.msk.bf16.gmra.mxu2 %vm601_vm0, %v2346_v33  ;;  %4906 = vmatmul.msk.bf16.gmra.mxu3 %vm601_vm0, %v2346_v33  ;;  %v5170_v33 = vld [vmem:[#allocation2 + $0x114] sm:$0xf0] }
 0x7fa   : > { %v4920_v12 = vor.u32 %v5170_v33, %v4919_v14 }
 0x7fb   : > { %v2486_v1 = vpop.f32.mrf.mxu3  ;;  %v6518_v35 = vpop.f32.mrf.mxu2 }
 0x7fc   : > { %2766 = vrot.lane.b32.xlu0 %v2486_v1, %s5481_s13  ;;  %2949 = vmatpush.bf16.msra.mxu0 %v4920_v12 }
 0x800   : > { %v2613_v47 = vpop.permute.xlu1 %2612 }
 0x801   : > { %v2660_v18 = vadd.f32 %v2613_v47, %v2516_v48  ;;  %v5169_v47 = vld [vmem:[#allocation2 + $0x114] sm:$0xf]  ;;  %v4921_v48 = vld [vmem:[#allocation2 + $0x118] sm:$0xf0] }
 0x803   : > { %v6528_v44 = vpop.f32.mrf.mxu2  ;;  %v2488_v54 = vpop.f32.mrf.mxu3 }
 0x804   : > { %2626 = vrot.lane.b32.xlu0 %v6518_v35, %s5481_s13 }
 0x80d   : > { %v2757_v60 = vpop.permute.xlu0 %2756 }
 0x80e   : > { %v2804_v20 = vadd.f32 %v2757_v60, %v2660_v18 }
 0x810   : > { %v2820_v8 = vmax.f32 %v2804_v20, 0.0  ;;  %v5168_v20 = vld [vmem:[#allocation2 + $0x104] sm:$0xf0] }
 0x818   : > { %v2348_v61 = vpop.permute.xlu2 %2347 }
 0x819   : > { %4899 = vmatmul.msk.bf16.gmra.mxu2 %vm601_vm0, %v2348_v61  ;;  %4907 = vmatmul.msk.bf16.gmra.mxu3 %vm601_vm0, %v2348_v61 }
 0x820   : > { %v2615_v17 = vpop.permute.xlu2 %2614 }
 0x821   : > { %v2661_v49 = vadd.f32 %v2615_v17, %v2517_v46  ;;  %v4924_v17 = vor.u32 %v5169_v47, %v4921_v48  ;;  %v4911_v46 = vld [vmem:[#allocation2 + $0x100] sm:$0xf]  ;;  %v5334_v48 = vld [vmem:[%s6961_s3 + $0x4] ss:$0 sm:$0xff] }
 0x823   : > { %2998 = vmatpush.bf16.msra.mxu1 %v4924_v17 }
 0x825   : > { %v2759_v32 = vpop.permute.xlu1 %2758  ;;  %v2619_v29 = vpop.permute.xlu0 %2618 }
 0x826   : > { %v2805_v51 = vadd.f32 %v2759_v32, %v2661_v49  ;;  %v2663_v13 = vadd.f32 %v2619_v29, %v2519_v36  ;;  %v5167_v49 = vld [vmem:[#allocation2 + $0x104] sm:$0xf]  ;;  %v4912_v32 = vor.u32 %v5168_v20, %v4911_v46 }
 0x828   : > { %v2821_v28 = vmax.f32 %v2805_v51, 0.0  ;;  %v2617_v26 = vpop.permute.xlu2 %2616  ;;  %v4913_v51 = vld [vmem:[#allocation2 + $0x108] sm:$0xf0]  ;;  %2950 = vmatpush.bf16.msra.mxu0 %v4912_v32 }
 0x829   : > { %v2662_v43 = vadd.f32 %v2617_v26, %v2518_v37  ;;  %v4916_v26 = vor.u32 %v5167_v49, %v4913_v51 }
 0x82a   : > { %v2838_v31 = vpack.c.bf16 %v2821_v28, %v2820_v8 }
 0x82b   : > { %2999 = vmatpush.bf16.msra.mxu1 %v4916_v26 }
 0x82c   : > { %2863 = vrot.lane.b32.xlu1 %v2838_v31, %s5481_s13 }
 0x82d   : > { %v2761_v25 = vpop.permute.xlu1 %2760  ;;  %v2621_v7 = vpop.permute.xlu0 %2620 }
 0x82e   : > { %v2806_v27 = vadd.f32 %v2761_v25, %v2662_v43  ;;  %v2664_v21 = vadd.f32 %v2621_v7, %v2520_v5 }
 0x830   : > { %v2763_v53 = vpop.permute.xlu2 %2762  ;;  %v2822_v6 = vmax.f32 %v2806_v27, 0.0 }
 0x831   : > { %v2807_v11 = vadd.f32 %v2763_v53, %v2663_v13  ;;  %v2523_v13 = vadd.f32 %v6522_v4, %v6528_v44 }
 0x833   : > { %v2823_v58 = vmax.f32 %v2807_v11, 0.0  ;;  %v6533_v59 = vpop.f32.mrf.mxu2  ;;  %v2491_v56 = vpop.f32.mrf.mxu3  ;;  %v2522_v11 = vadd.f32 %v6522_v4, %v6518_v35 }
 0x834   : > { %2630 = vrot.lane.b32.xlu2 %v6533_v59, %s5481_s13  ;;  %2768 = vrot.lane.b32.xlu1 %v2488_v54, %s5481_s13  ;;  %v2524_v55 = vadd.f32 %v6522_v4, %v6533_v59 }
 0x835   : > { %v2839_v2 = vpack.c.bf16 %v2823_v58, %v2822_v6  ;;  %v2623_v38 = vpop.permute.xlu1 %2622 }
 0x836   : > { %v2665_v3 = vadd.f32 %v2623_v38, %v2521_v63 }
 0x837   : > { %2865 = vrot.lane.b32.xlu0 %v2839_v2, %s5481_s13 }
 0x838   : > { %v2765_v39 = vpop.permute.xlu2 %2764 }
 0x839   : > { %v2808_v9 = vadd.f32 %v2765_v39, %v2664_v21 }
 0x83b   : > { %v2493_v15 = vpop.f32.mrf.mxu3  ;;  %v6542_v42 = vpop.f32.mrf.mxu2  ;;  %v2824_v1 = vmax.f32 %v2808_v9, 0.0 }
 0x83c   : > { %2628 = vrot.lane.b32.xlu1 %v5482_v50, %s5481_s13  ;;  %v2525_v41 = vadd.f32 %v6522_v4, %v6542_v42 }
 0x83f   : > { %2772 = vrot.lane.b32.xlu0 %v2493_v15, %s5481_s13 }
 0x840   : > { %v2625_v37 = vpop.permute.xlu2 %2624 }
 0x841   : > { %v2666_v58 = vadd.f32 %v2625_v37, %v2522_v11 }
 0x843   : > { %v2496_v19 = vpop.f32.mrf.mxu3  ;;  %v6547_v30 = vpop.f32.mrf.mxu2 }
 0x844   : > { %2774 = vrot.lane.b32.xlu1 %v2496_v19, %s5481_s13 }
 0x847   : > { %2632 = vrot.lane.b32.xlu0 %v6542_v42, %s5481_s13 }
 0x848   : > { %v2771_v53 = vpop.permute.xlu2 %2770 }
 0x84b   : > { %v2498_v18 = vpop.f32.mrf.mxu3  ;;  %v6556_v8 = vpop.f32.mrf.mxu2 }
 0x84c   : > { %2634 = vrot.lane.b32.xlu1 %v6547_v30, %s5481_s13  ;;  %v2527_v57 = vadd.f32 %v6522_v4, %v6556_v8 }
 0x86e   : > { %v2767_v10 = vpop.permute.xlu0 %2766 }
 0x86f   : > { %v2809_v22 = vadd.f32 %v2767_v10, %v2665_v3 }
 0x871   : > { %v2825_v61 = vmax.f32 %v2809_v22, 0.0  ;;  %v2526_v22 = vadd.f32 %v6522_v4, %v6547_v30 }
 0x873   : > { %v2840_v60 = vpack.c.bf16 %v2825_v61, %v2824_v1 }
 0x875   : > { %2867 = vrot.lane.b32.xlu2 %v2840_v60, %s5481_s13 }
 0x876   : > { %v2627_v43 = vpop.permute.xlu0 %2626 }
 0x877   : > { %v2667_v27 = vadd.f32 %v2627_v43, %v2523_v13 }
 0x879   : > { %v2811_v56 = vadd.f32 %v2771_v53, %v2667_v27 }
 0x87b   : > { %v2827_v19 = vmax.f32 %v2811_v56, 0.0 }
 0x87c   : > { %v2501_v28 = vpop.f32.mrf.mxu3  ;;  %v6560_v31 = vpop.f32.mrf.mxu2 }
 0x87d   : > { %2778 = vrot.lane.b32.xlu0 %v2501_v28, %s5481_s13  ;;  %2776 = vrot.lane.b32.xlu2 %v2498_v18, %s5481_s13  ;;  %v2528_v20 = vadd.f32 %v6522_v4, %v6560_v31 }
 0x884   : > { %v2503_v54 = vpop.f32.mrf.mxu3  ;;  %v6566_v29 = vpop.f32.mrf.mxu2 }
 0x885   : > { %2638 = vrot.lane.b32.xlu0 %v6560_v31, %s5481_s13  ;;  %2636 = vrot.lane.b32.xlu2 %v6556_v8, %s5481_s13  ;;  %v2529_v18 = vadd.f32 %v6522_v4, %v6566_v29 }
 0x88e   : > { %v2631_v34 = vpop.permute.xlu2 %2630 }
 0x88f   : > { %v2669_v5 = vadd.f32 %v2631_v34, %v2525_v41 }
 0x89c   : > { %v2506_v36 = vpop.f32.mrf.mxu3  ;;  %v6575_v6 = vpop.f32.mrf.mxu2 }
 0x89d   : > { %2782 = vrot.lane.b32.xlu2 %v2506_v36, %s5481_s13  ;;  %v2530_v27 = vadd.f32 %v6522_v4, %v6575_v6 }
 0x89e   : > { %v2864_v25 = vpop.permute.xlu1 %2863 }
 0x89f   : > { %4941 = vmatmul.msk.bf16.vlgmr.msra.gmra.mxu0 %vm601_vm0, %v2864_v25  ;;  %4949 = vmatmul.msk.bf16.vlgmr.msra.gmra.mxu1 %vm601_vm0, %v2864_v25 }
 0x8a4   : > { %v2508_v59 = vpop.f32.mrf.mxu3  ;;  %v2459_v13 = vpop.f32.mrf.mxu2 }
 0x8a5   : > { %2642 = vrot.lane.b32.xlu2 %v6575_v6, %s5481_s13  ;;  %v2531_v53 = vadd.f32 %v6522_v4, %v2459_v13 }
 0x8a6   : > { %v2769_v2 = vpop.permute.xlu1 %2768 }
 0x8a7   : > { %v2810_v15 = vadd.f32 %v2769_v2, %v2666_v58 }
 0x8a9   : > { %v2826_v44 = vmax.f32 %v2810_v15, 0.0  ;;  %v2866_v52 = vpop.permute.xlu0 %2865 }
 0x8ab   : > { %v2841_v45 = vpack.c.bf16 %v2827_v19, %v2826_v44 }
 0x8ad   : > { %2869 = vrot.lane.b32.xlu1 %v2841_v45, %s5481_s13 }
 0x8ae   : > { %v2629_v24 = vpop.permute.xlu1 %2628 }
 0x8af   : > { %4942 = vmatmul.msk.bf16.gmra.mxu0 %vm601_vm0, %v2866_v52  ;;  %4950 = vmatmul.msk.bf16.gmra.mxu1 %vm601_vm0, %v2866_v52  ;;  %v2668_v35 = vadd.f32 %v2629_v24, %v2524_v55 }
 0x8b1   : > { %v2773_v7 = vpop.permute.xlu0 %2772 }
 0x8b2   : > { %v2812_v38 = vadd.f32 %v2773_v7, %v2668_v35 }
 0x8b4   : > { %v2828_v63 = vmax.f32 %v2812_v38, 0.0 }
 0x8b5   : > { %2780 = vrot.lane.b32.xlu1 %v2503_v54, %s5481_s13 }
 0x8b6   : > { %v2775_v39 = vpop.permute.xlu1 %2774 }
 0x8b7   : > { %v2813_v21 = vadd.f32 %v2775_v39, %v2669_v5 }
 0x8b9   : > { %v2829_v3 = vmax.f32 %v2813_v21, 0.0  ;;  %v2633_v10 = vpop.permute.xlu0 %2632 }
 0x8ba   : > { %v2670_v62 = vadd.f32 %v2633_v10, %v2526_v22 }
 0x8bb   : > { %v2842_v9 = vpack.c.bf16 %v2829_v3, %v2828_v63 }
 0x8bd   : > { %2640 = vrot.lane.b32.xlu1 %v6566_v29, %s5481_s13  ;;  %2871 = vrot.lane.b32.xlu0 %v2842_v9, %s5481_s13 }
 0x8be   : > { %v2635_v0 = vpop.permute.xlu1 %2634 }
 0x8bf   : > { %v2671_v16 = vadd.f32 %v2635_v0, %v2527_v57 }
 0x8c5   : > { %2786 = vrot.lane.b32.xlu1 %v5482_v50, %s5481_s13  ;;  %2784 = vrot.lane.b32.xlu0 %v2508_v59, %s5481_s13 }
 0x8cf   : > { %v2868_v42 = vpop.permute.xlu2 %2867 }
 0x8d0   : > { %4943 = vmatmul.msk.bf16.gmra.mxu0 %vm601_vm0, %v2868_v42  ;;  %4951 = vmatmul.msk.bf16.gmra.mxu1 %vm601_vm0, %v2868_v42 }
 0x8d7   : > { %v2777_v23 = vpop.permute.xlu2 %2776 }
 0x8d8   : > { %v2814_v14 = vadd.f32 %v2777_v23, %v2670_v62 }
 0x8da   : > { %v2830_v61 = vmax.f32 %v2814_v14, 0.0 }
 0x8df   : > { %v2637_v17 = vpop.permute.xlu2 %2636 }
 0x8e0   : > { %v2672_v51 = vadd.f32 %v2637_v17, %v2528_v20  ;;  %v4986_v17 = vld [vmem:[#allocation2 + $0x178] sm:$0xf0]  ;;  %v5182_v20 = vld [vmem:[#allocation2 + $0x174] sm:$0xf0] }
 0x8ef   : > { %v2779_v33 = vpop.permute.xlu0 %2778 }
 0x8f0   : > { %v2815_v1 = vadd.f32 %v2779_v33, %v2671_v16 }
 0x8f2   : > { %v2831_v40 = vmax.f32 %v2815_v1, 0.0 }
 0x8f4   : > { %v2843_v47 = vpack.c.bf16 %v2831_v40, %v2830_v61 }
 0x8f6   : > { %2873 = vrot.lane.b32.xlu2 %v2843_v47, %s5481_s13 }
 0x8f7   : > { %v2639_v60 = vpop.permute.xlu0 %2638  ;;  %v2783_v32 = vpop.permute.xlu2 %2782 }
 0x8f8   : > { %v2673_v46 = vadd.f32 %v2639_v60, %v2529_v18  ;;  %v4984_v60 = vld [vmem:[#allocation2 + $0x170] sm:$0xf] }
 0x8fa   : > { %v2817_v8 = vadd.f32 %v2783_v32, %v2673_v46  ;;  %v5180_v32 = vld [vmem:[#allocation2 + $0x164] sm:$0xf0] }
 0x8fc   : > { %v2833_v54 = vmax.f32 %v2817_v8, 0.0  ;;  %v4985_v8 = vor.u32 %v5182_v20, %v4984_v60 }
 0x8fe   : > { %3043 = vrot.lane.b32.xlu2 %v5334_v48, %s5481_s13  ;;  %3477 = vmatpush.bf16.msra.mxu2 %v4985_v8 }
 0x8ff   : > { %v2643_v31 = vpop.permute.xlu2 %2642 }
 0x900   : > { %v2675_v58 = vadd.f32 %v2643_v31, %v2531_v53 }
 0x91c   : > { %v3001_v30 = vpop.f32.mrf.mxu1  ;;  %v2952_v56 = vpop.f32.mrf.mxu0 }
 0x91d   : > { %v5181_v30 = vld [vmem:[#allocation2 + $0x174] sm:$0xf] }
 0x91e   : > { %v4989_v46 = vor.u32 %v5181_v30, %v4986_v17 }
 0x91f   : > { %v2870_v12 = vpop.permute.xlu1 %2869 }
 0x920   : > { %4944 = vmatmul.msk.bf16.gmra.mxu0 %vm601_vm0, %v2870_v12  ;;  %4952 = vmatmul.msk.bf16.gmra.mxu1 %vm601_vm0, %v2870_v12 }
 0x921   : > { %3526 = vmatpush.bf16.msra.mxu3 %v4989_v46 }
 0x924   : > { %v3003_v49 = vpop.f32.mrf.mxu1  ;;  %v2954_v4 = vpop.f32.mrf.mxu0 }
 0x925   : > { %v4976_v49 = vld [vmem:[#allocation2 + $0x160] sm:$0xf] }
 0x927   : > { %v2781_v28 = vpop.permute.xlu1 %2780 }
 0x928   : > { %v2816_v26 = vadd.f32 %v2781_v28, %v2672_v51  ;;  %v5179_v28 = vld [vmem:[#allocation2 + $0x164] sm:$0xf] }
 0x92a   : > { %v2832_v37 = vmax.f32 %v2816_v26, 0.0  ;;  %v4978_v26 = vld [vmem:[#allocation2 + $0x168] sm:$0xf0] }
 0x92c   : > { %v2844_v36 = vpack.c.bf16 %v2833_v54, %v2832_v37  ;;  %v3006_v43 = vpop.f32.mrf.mxu1  ;;  %v2957_v6 = vpop.f32.mrf.mxu0  ;;  %v4981_v54 = vor.u32 %v5179_v28, %v4978_v26 }
 0x92e   : > { %2875 = vrot.lane.b32.xlu0 %v2844_v36, %s5481_s13  ;;  %v4977_v36 = vor.u32 %v5180_v32, %v4976_v49  ;;  %3527 = vmatpush.bf16.msra.mxu3 %v4981_v54 }
 0x92f   : > { %v2872_v29 = vpop.permute.xlu0 %2871  ;;  %v2641_v25 = vpop.permute.xlu1 %2640 }
 0x930   : > { %4945 = vmatmul.msk.bf16.gmra.mxu0 %vm601_vm0, %v2872_v29  ;;  %4953 = vmatmul.msk.bf16.gmra.mxu1 %vm601_vm0, %v2872_v29  ;;  %v2674_v2 = vadd.f32 %v2641_v25, %v2530_v27 }
 0x931   : > { %3478 = vmatpush.bf16.msra.mxu2 %v4977_v36 }
 0x934   : > { %v3008_v11 = vpop.f32.mrf.mxu1  ;;  %v2959_v7 = vpop.f32.mrf.mxu0 }
 0x935   : > { %3288 = vrot.lane.b32.xlu2 %v3008_v11, %s5481_s13 }
 0x936   : > { %5271 = vrot.lane.b32.xlu0 %v5482_v50, %s5481_s13 }
 0x937   : > { %v2785_v15 = vpop.permute.xlu0 %2784  ;;  %v2787_v19 = vpop.permute.xlu1 %2786 }
 0x938   : > { %v2818_v44 = vadd.f32 %v2785_v15, %v2674_v2  ;;  %v2819_v52 = vadd.f32 %v2787_v19, %v2675_v58 }
 0x93a   : > { %v2834_v45 = vmax.f32 %v2818_v44, 0.0  ;;  %v2835_v24 = vmax.f32 %v2819_v52, 0.0 }
 0x93c   : > { %v2845_v55 = vpack.c.bf16 %v2835_v24, %v2834_v45  ;;  %v4968_v45 = vld [vmem:[#allocation2 + $0x150] sm:$0xf]  ;;  %v5178_v24 = vld [vmem:[#allocation2 + $0x154] sm:$0xf0] }
 0x93e   : > { %3146 = vrot.lane.b32.xlu0 %v2952_v56, %s5481_s13  ;;  %2877 = vrot.lane.b32.xlu1 %v2845_v55, %s5481_s13  ;;  %v5177_v55 = vld [vmem:[#allocation2 + $0x154] sm:$0xf] }
 0x946   : > { %3286 = vrot.lane.b32.xlu1 %v3006_v43, %s5481_s13 }
 0x94d   : > { %v3011_v35 = vpop.f32.mrf.mxu1  ;;  %v6632_v39 = vpop.f32.mrf.mxu0 }
 0x94e   : > { %3290 = vrot.lane.b32.xlu2 %v3011_v35, %s5481_s13  ;;  %3148 = vrot.lane.b32.xlu1 %v2954_v4, %s5481_s13 }
 0x950   : > { %v2874_v34 = vpop.permute.xlu2 %2873 }
 0x951   : > { %4946 = vmatmul.msk.bf16.gmra.mxu0 %vm601_vm0, %v2874_v34  ;;  %4954 = vmatmul.msk.bf16.gmra.mxu1 %vm601_vm0, %v2874_v34  ;;  %v4960_v34 = vld [vmem:[#allocation2 + $0x140] sm:$0xf] }
 0x955   : > { %v3013_v41 = vpop.f32.mrf.mxu1  ;;  %v6637_v63 = vpop.f32.mrf.mxu0 }
 0x956   : > { %3152 = vrot.lane.b32.xlu2 %v2959_v7, %s5481_s13  ;;  %3292 = vrot.lane.b32.xlu0 %v3013_v41, %s5481_s13  ;;  %v5175_v41 = vld [vmem:[#allocation2 + $0x144] sm:$0xf] }
 0x957   : > { %3150 = vrot.lane.b32.xlu1 %v2957_v6, %s5481_s13 }
 0x958   : > { %v6641_v59 = vpop.permute.xlu2 %3043 }
 0x959   : > { %v3047_v22 = vadd.f32 %v6641_v59, %v2954_v4  ;;  %v3046_v57 = vadd.f32 %v6641_v59, %v2952_v56  ;;  %v3048_v51 = vadd.f32 %v6641_v59, %v2957_v6  ;;  %v3049_v29 = vadd.f32 %v6641_v59, %v2959_v7  ;;  %v4970_v6 = vld [vmem:[#allocation2 + $0x158] sm:$0xf0]  ;;  %v5176_v7 = vld [vmem:[#allocation2 + $0x144] sm:$0xf0] }
 0x95a   : > { %v4969_v4 = vor.u32 %v5178_v24, %v4968_v45  ;;  %v4973_v35 = vor.u32 %v5177_v55, %v4970_v6 }
 0x95c   : > { %3479 = vmatpush.bf16.msra.mxu2 %v4969_v4  ;;  %3528 = vmatpush.bf16.msra.mxu3 %v4973_v35 }
 0x98f   : > { %v3289_v16 = vpop.permute.xlu2 %3288 }
 0x99d   : > { %v3016_v5 = vpop.f32.mrf.mxu1  ;;  %v6649_v12 = vpop.f32.mrf.mxu0 }
 0x99e   : > { %3294 = vrot.lane.b32.xlu0 %v3016_v5, %s5481_s13  ;;  %v4961_v5 = vor.u32 %v5176_v7, %v4960_v34 }
 0x9a0   : > { %v2876_v38 = vpop.permute.xlu0 %2875  ;;  %3480 = vmatpush.bf16.msra.mxu2 %v4961_v5 }
 0x9a1   : > { %4947 = vmatmul.msk.bf16.gmra.mxu0 %vm601_vm0, %v2876_v38  ;;  %4955 = vmatmul.msk.bf16.gmra.mxu1 %vm601_vm0, %v2876_v38  ;;  %v4962_v38 = vld [vmem:[#allocation2 + $0x148] sm:$0xf0] }
 0x9a5   : > { %v3018_v21 = vpop.f32.mrf.mxu1  ;;  %v2969_v11 = vpop.f32.mrf.mxu0 }
 0x9a6   : > { %3154 = vrot.lane.b32.xlu0 %v6632_v39, %s5481_s13  ;;  %3296 = vrot.lane.b32.xlu1 %v3018_v21, %s5481_s13  ;;  %v4965_v21 = vor.u32 %v5175_v41, %v4962_v38 }
 0x9a8   : > { %v5272_v3 = vpop.permute.xlu0 %5271  ;;  %v3291_v25 = vpop.permute.xlu2 %3290  ;;  %3529 = vmatpush.bf16.msra.mxu3 %v4965_v21 }
 0x9a9   : > { %v5274_v42 = vunpack.i.h.bf16 %v5272_v3  ;;  %v5273_v23 = vunpack.i.l.bf16 %v5272_v3 }
 0x9ab   : > { %v3191_v0 = vadd.f32 %v5274_v42, %v3047_v22  ;;  %v3190_v14 = vadd.f32 %v5273_v23, %v3046_v57  ;;  %v3050_v42 = vadd.f32 %v6641_v59, %v6632_v39  ;;  %v3051_v22 = vadd.f32 %v6641_v59, %v6637_v63 }
 0x9ac   : > { %v3053_v39 = vadd.f32 %v6641_v59, %v2969_v11 }
 0x9ad   : > { %v3021_v9 = vpop.f32.mrf.mxu1  ;;  %v3335_v33 = vadd.f32 %v3289_v16, %v3191_v0  ;;  %v6658_v19 = vpop.f32.mrf.mxu0 }
 0x9ae   : > { %3156 = vrot.lane.b32.xlu1 %v6637_v63, %s5481_s13 }
 0x9af   : > { %v3351_v40 = vmax.f32 %v3335_v33, 0.0 }
 0x9b0   : > { %v2878_v10 = vpop.permute.xlu1 %2877  ;;  %v3147_v18 = vpop.permute.xlu0 %3146 }
 0x9b1   : > { %4948 = vmatmul.msk.bf16.gmra.mxu0 %vm601_vm0, %v2878_v10  ;;  %4956 = vmatmul.msk.bf16.gmra.mxu1 %vm601_vm0, %v2878_v10  ;;  %v3192_v37 = vadd.f32 %v3147_v18, %v3048_v51  ;;  %v3153_v9 = vpop.permute.xlu2 %3152 }
 0x9b2   : > { %v3195_v23 = vadd.f32 %v3153_v9, %v3051_v22 }
 0x9b3   : > { %v3336_v13 = vadd.f32 %v3291_v25, %v3192_v37 }
 0x9b5   : > { %v3023_v62 = vpop.f32.mrf.mxu1  ;;  %v3352_v58 = vmax.f32 %v3336_v13, 0.0  ;;  %v6663_v52 = vpop.f32.mrf.mxu0 }
 0x9b6   : > { %5281 = vrot.lane.b32.xlu1 %v5482_v50, %s5481_s13  ;;  %v3055_v11 = vadd.f32 %v6641_v59, %v6663_v52 }
 0x9b8   : > { %v3287_v1 = vpop.permute.xlu1 %3286 }
 0x9b9   : > { %v3334_v61 = vadd.f32 %v3287_v1, %v3190_v14 }
 0x9bb   : > { %v3350_v47 = vmax.f32 %v3334_v61, 0.0 }
 0x9bd   : > { %v3368_v48 = vpack.c.bf16 %v3351_v40, %v3350_v47 }
 0x9bf   : > { %3393 = vrot.lane.b32.xlu2 %v3368_v48, %s5481_s13  ;;  %v3052_v48 = vadd.f32 %v6641_v59, %v6649_v12 }
 0x9c0   : > { %v3149_v43 = vpop.permute.xlu1 %3148 }
 0x9c1   : > { %v3193_v31 = vadd.f32 %v3149_v43, %v3049_v29 }
 0x9c7   : > { %5276 = vrot.lane.b32.xlu2 %v5482_v50, %s5481_s13 }
 0x9c8   : > { %v3293_v27 = vpop.permute.xlu0 %3292 }
 0x9c9   : > { %v3337_v53 = vadd.f32 %v3293_v27, %v3193_v31  ;;  %v3151_v3 = vpop.permute.xlu1 %3150  ;;  %v3054_v31 = vadd.f32 %v6641_v59, %v6658_v19 }
 0x9ca   : > { %v3194_v0 = vadd.f32 %v3151_v3, %v3050_v42 }
 0x9cb   : > { %v3353_v56 = vmax.f32 %v3337_v53, 0.0 }
 0x9cd   : > { %v3369_v2 = vpack.c.bf16 %v3353_v56, %v3352_v58 }
 0x9ce   : > { %v3026_v15 = vpop.f32.mrf.mxu1  ;;  %v2977_v60 = vpop.f32.mrf.mxu0 }
 0x9cf   : > { %3395 = vrot.lane.b32.xlu0 %v3369_v2, %s5481_s13  ;;  %3302 = vrot.lane.b32.xlu2 %v3026_v15, %s5481_s13  ;;  %v3056_v34 = vadd.f32 %v6641_v59, %v2977_v60 }
 0x9d6   : > { %v3028_v44 = vpop.f32.mrf.mxu1  ;;  %v2979_v54 = vpop.f32.mrf.mxu0 }
 0x9d7   : > { %3304 = vrot.lane.b32.xlu0 %v3028_v44, %s5481_s13  ;;  %3162 = vrot.lane.b32.xlu2 %v6658_v19, %s5481_s13  ;;  %v3057_v6 = vadd.f32 %v6641_v59, %v2979_v54 }
 0x9df   : > { %3164 = vrot.lane.b32.xlu0 %v6663_v52, %s5481_s13 }
 0xa10   : > { %v3295_v10 = vpop.permute.xlu0 %3294 }
 0xa11   : > { %v3338_v62 = vadd.f32 %v3295_v10, %v3194_v0 }
 0xa13   : > { %v3354_v33 = vmax.f32 %v3338_v62, 0.0 }
 0xa18   : > { %v3297_v57 = vpop.permute.xlu1 %3296  ;;  %v3155_v47 = vpop.permute.xlu0 %3154 }
 0xa19   : > { %v3339_v16 = vadd.f32 %v3297_v57, %v3195_v23  ;;  %v3394_v14 = vpop.permute.xlu2 %3393  ;;  %v3196_v18 = vadd.f32 %v3155_v47, %v3052_v48 }
 0xa1a   : > { %4990 = vmatmul.msk.bf16.vlgmr.msra.gmra.mxu2 %vm601_vm0, %v3394_v14  ;;  %4998 = vmatmul.msk.bf16.vlgmr.msra.gmra.mxu3 %vm601_vm0, %v3394_v14 }
 0xa1b   : > { %v3355_v1 = vmax.f32 %v3339_v16, 0.0  ;;  %v5335_v16 = vld [vmem:[%s6961_s3 + $0x5] ss:$0 sm:$0xff] }
 0xa1d   : > { %v3370_v61 = vpack.c.bf16 %v3355_v1, %v3354_v33 }
 0xa1e   : > { %v3031_v40 = vpop.f32.mrf.mxu1  ;;  %v2982_v37 = vpop.f32.mrf.mxu0 }
 0xa1f   : > { %3397 = vrot.lane.b32.xlu1 %v3370_v61, %s5481_s13  ;;  %v3058_v62 = vadd.f32 %v6641_v59, %v2982_v37 }
 0xa20   : > { %v3157_v63 = vpop.permute.xlu1 %3156 }
 0xa21   : > { %v3197_v30 = vadd.f32 %v3157_v63, %v3053_v39  ;;  %v5277_v17 = vpop.permute.xlu2 %5276 }
 0xa22   : > { %v5279_v46 = vunpack.i.h.bf16 %v5277_v17  ;;  %v5278_v20 = vunpack.i.l.bf16 %v5277_v17 }
 0xa24   : > { %v3340_v49 = vadd.f32 %v5278_v20, %v3196_v18  ;;  %v3341_v32 = vadd.f32 %v5279_v46, %v3197_v30 }
 0xa26   : > { %v3033_v51 = vpop.f32.mrf.mxu1  ;;  %v3356_v8 = vmax.f32 %v3340_v49, 0.0  ;;  %v3357_v28 = vmax.f32 %v3341_v32, 0.0  ;;  %v2984_v29 = vpop.f32.mrf.mxu0 }
 0xa27   : > { %3308 = vrot.lane.b32.xlu2 %v3033_v51, %s5481_s13  ;;  %3306 = vrot.lane.b32.xlu1 %v3031_v40, %s5481_s13  ;;  %v3059_v61 = vadd.f32 %v6641_v59, %v2984_v29 }
 0xa28   : > { %v3371_v26 = vpack.c.bf16 %v3357_v28, %v3356_v8  ;;  %v5282_v43 = vpop.permute.xlu1 %5281 }
 0xa29   : > { %v5283_v25 = vunpack.i.l.bf16 %v5282_v43  ;;  %v5284_v27 = vunpack.i.h.bf16 %v5282_v43  ;;  %v3303_v58 = vpop.permute.xlu2 %3302 }
 0xa2a   : > { %3399 = vrot.lane.b32.xlu0 %v3371_v26, %s5481_s13 }
 0xa2b   : > { %v3198_v53 = vadd.f32 %v5283_v25, %v3054_v31  ;;  %v3199_v2 = vadd.f32 %v5284_v27, %v3055_v11 }
 0xa2d   : > { %v3342_v56 = vadd.f32 %v3303_v58, %v3198_v53 }
 0xa2e   : > { %v3036_v12 = vpop.f32.mrf.mxu1  ;;  %v2987_v57 = vpop.f32.mrf.mxu0 }
 0xa2f   : > { %3168 = vrot.lane.b32.xlu2 %v2979_v54, %s5481_s13  ;;  %3166 = vrot.lane.b32.xlu1 %v2977_v60, %s5481_s13  ;;  %v3358_v45 = vmax.f32 %v3342_v56, 0.0  ;;  %v3060_v20 = vadd.f32 %v6641_v59, %v2987_v57 }
 0xa31   : > { %v3163_v19 = vpop.permute.xlu2 %3162 }
 0xa32   : > { %3310 = vrot.lane.b32.xlu0 %v3036_v12, %s5481_s13  ;;  %v3200_v41 = vadd.f32 %v3163_v19, %v3056_v34 }
 0xa36   : > { %v3038_v36 = vpop.f32.mrf.mxu1  ;;  %v2989_v60 = vpop.f32.mrf.mxu0 }
 0xa37   : > { %3312 = vrot.lane.b32.xlu1 %v3038_v36, %s5481_s13  ;;  %v3061_v49 = vadd.f32 %v6641_v59, %v2989_v60 }
 0xa3a   : > { %3170 = vrot.lane.b32.xlu0 %v2982_v37, %s5481_s13 }
 0xa3f   : > { %3172 = vrot.lane.b32.xlu1 %v2984_v29, %s5481_s13 }
 0xa41   : > { %v3396_v13 = vpop.permute.xlu0 %3395 }
 0xa42   : > { %4991 = vmatmul.msk.bf16.gmra.mxu2 %vm601_vm0, %v3396_v13  ;;  %4999 = vmatmul.msk.bf16.gmra.mxu3 %vm601_vm0, %v3396_v13 }
 0xa49   : > { %v3305_v15 = vpop.permute.xlu0 %3304 }
 0xa4a   : > { %v3343_v44 = vadd.f32 %v3305_v15, %v3199_v2 }
 0xa4c   : > { %v3359_v24 = vmax.f32 %v3343_v44, 0.0 }
 0xa4e   : > { %v3372_v55 = vpack.c.bf16 %v3359_v24, %v3358_v45 }
 0xa50   : > { %3401 = vrot.lane.b32.xlu2 %v3372_v55, %s5481_s13 }
 0xa51   : > { %v3165_v52 = vpop.permute.xlu0 %3164 }
 0xa52   : > { %v3201_v7 = vadd.f32 %v3165_v52, %v3057_v6 }
 0xa58   : > { %5286 = vrot.lane.b32.xlu2 %v5482_v50, %s5481_s13 }
 0xa81   : > { %v3309_v35 = vpop.permute.xlu2 %3308 }
 0xa82   : > { %v3345_v5 = vadd.f32 %v3309_v35, %v3201_v7 }
 0xa84   : > { %v3361_v3 = vmax.f32 %v3345_v5, 0.0 }
 0xa89   : > { %v3169_v23 = vpop.permute.xlu2 %3168 }
 0xa8a   : > { %v3203_v40 = vadd.f32 %v3169_v23, %v3059_v61 }
 0xa91   : > { %v3398_v4 = vpop.permute.xlu1 %3397 }
 0xa92   : > { %4992 = vmatmul.msk.bf16.gmra.mxu2 %vm601_vm0, %v3398_v4  ;;  %5000 = vmatmul.msk.bf16.gmra.mxu3 %vm601_vm0, %v3398_v4 }
 0xa99   : > { %v3307_v38 = vpop.permute.xlu1 %3306 }
 0xa9a   : > { %v3344_v21 = vadd.f32 %v3307_v38, %v3200_v41 }
 0xa9c   : > { %v3360_v9 = vmax.f32 %v3344_v21, 0.0  ;;  %v3400_v42 = vpop.permute.xlu0 %3399 }
 0xa9d   : > { %v3531_v22 = vpop.f32.mrf.mxu3  ;;  %v3482_v25 = vpop.f32.mrf.mxu2 }
 0xa9e   : > { %v3373_v10 = vpack.c.bf16 %v3361_v3, %v3360_v9 }
 0xaa0   : > { %3403 = vrot.lane.b32.xlu0 %v3373_v10, %s5481_s13 }
 0xaa1   : > { %v3167_v0 = vpop.permute.xlu1 %3166 }
 0xaa2   : > { %4993 = vmatmul.msk.bf16.gmra.mxu2 %vm601_vm0, %v3400_v42  ;;  %5001 = vmatmul.msk.bf16.gmra.mxu3 %vm601_vm0, %v3400_v42  ;;  %v3202_v14 = vadd.f32 %v3167_v0, %v3058_v62 }
 0xaa4   : > { %v3311_v33 = vpop.permute.xlu0 %3310 }
 0xaa5   : > { %v3533_v1 = vpop.f32.mrf.mxu3  ;;  %v3346_v39 = vadd.f32 %v3311_v33, %v3202_v14  ;;  %v3484_v56 = vpop.f32.mrf.mxu2 }
 0xaa7   : > { %v3362_v30 = vmax.f32 %v3346_v39, 0.0 }
 0xaa8   : > { %3573 = vrot.lane.b32.xlu0 %v5335_v16, %s5481_s13 }
 0xaa9   : > { %v3313_v47 = vpop.permute.xlu1 %3312 }
 0xaaa   : > { %v3402_v63 = vpop.permute.xlu2 %3401  ;;  %v3347_v48 = vadd.f32 %v3313_v47, %v3203_v40 }
 0xaac   : > { %v3363_v17 = vmax.f32 %v3347_v48, 0.0  ;;  %v3171_v46 = vpop.permute.xlu0 %3170 }
 0xaad   : > { %v3204_v8 = vadd.f32 %v3171_v46, %v3060_v20 }
 0xaae   : > { %v3374_v18 = vpack.c.bf16 %v3363_v17, %v3362_v30 }
 0xab0   : > { %3405 = vrot.lane.b32.xlu1 %v3374_v18, %s5481_s13 }
 0xab1   : > { %v3173_v32 = vpop.permute.xlu1 %3172 }
 0xab2   : > { %4994 = vmatmul.msk.bf16.gmra.mxu2 %vm601_vm0, %v3402_v63  ;;  %5002 = vmatmul.msk.bf16.gmra.mxu3 %vm601_vm0, %v3402_v63  ;;  %v5287_v51 = vpop.permute.xlu2 %5286  ;;  %v3205_v28 = vadd.f32 %v3173_v32, %v3061_v49 }
 0xab3   : > { %v5289_v26 = vunpack.i.h.bf16 %v5287_v51  ;;  %v5288_v54 = vunpack.i.l.bf16 %v5287_v51 }
 0xab5   : > { %v3349_v12 = vadd.f32 %v5289_v26, %v3205_v28  ;;  %v3348_v37 = vadd.f32 %v5288_v54, %v3204_v8 }
 0xab7   : > { %v3365_v36 = vmax.f32 %v3349_v12, 0.0  ;;  %v3364_v43 = vmax.f32 %v3348_v37, 0.0 }
 0xab8   : > { %5291 = vrot.lane.b32.xlu1 %v5482_v50, %s5481_s13 }
 0xab9   : > { %v3375_v29 = vpack.c.bf16 %v3365_v36, %v3364_v43 }
 0xabb   : > { %3407 = vrot.lane.b32.xlu2 %v3375_v29, %s5481_s13 }
 0xac0   : > { %5296 = vrot.lane.b32.xlu1 %v5482_v50, %s5481_s13 }
 0xac5   : > { %v3536_v59 = vpop.f32.mrf.mxu3  ;;  %v3487_v15 = vpop.f32.mrf.mxu2 }
 0xac8   : > { %3680 = vrot.lane.b32.xlu1 %v3482_v25, %s5481_s13 }
 0xacd   : > { %v3538_v13 = vpop.f32.mrf.mxu3  ;;  %v3489_v24 = vpop.f32.mrf.mxu2 }
 0xace   : > { %v5186_v13 = vld [vmem:[#allocation5 + $0xd8] sm:$0xff] }
 0xacf   : > { %3994 = vmatpush.bf16.msrb.mxu0 %v5186_v13 }
 0xb12   : > { %v3404_v31 = vpop.permute.xlu0 %3403 }
 0xb13   : > { %4995 = vmatmul.msk.bf16.gmra.mxu2 %vm601_vm0, %v3404_v31  ;;  %5003 = vmatmul.msk.bf16.gmra.mxu3 %vm601_vm0, %v3404_v31  ;;  %v5185_v31 = vld [vmem:[#allocation5 + $0xd0] sm:$0xff] }
 0xb14   : > { %3995 = vmatpush.bf16.msrb.mxu0 %v5185_v31  ;;  %v6778_v31 = vld [vmem:[%s6961_s3 + $0x6] ss:$0 sm:$0xff] }
 0xb15   : > { %v3541_v27 = vpop.f32.mrf.mxu3  ;;  %v3408_v44 = vpop.permute.xlu2 %3407 }
 0xb16   : > { %3816 = vrot.lane.b32.xlu2 %v3541_v27, %s5481_s13  ;;  %v3492_v10 = vpop.f32.mrf.mxu2 }
 0xb1a   : > { %v6736_v4 = vpop.permute.xlu0 %3573 }
 0xb1b   : > { %v3576_v35 = vadd.f32 %v6736_v4, %v3482_v25  ;;  %v3577_v41 = vadd.f32 %v6736_v4, %v3484_v56  ;;  %v3578_v16 = vadd.f32 %v6736_v4, %v3487_v15  ;;  %v3579_v1 = vadd.f32 %v6736_v4, %v3489_v24 }
 0xb1c   : > { %v3580_v49 = vadd.f32 %v6736_v4, %v3492_v10 }
 0xb1d   : > { %v3543_v53 = vpop.f32.mrf.mxu3 }
 0xb1e   : > { %3818 = vrot.lane.b32.xlu0 %v3543_v53, %s5481_s13  ;;  %v3494_v40 = vpop.f32.mrf.mxu2 }
 0xb1f   : > { %v3581_v20 = vadd.f32 %v6736_v4, %v3494_v40 }
 0xb22   : > { %v3406_v11 = vpop.permute.xlu1 %3405 }
 0xb23   : > { %4996 = vmatmul.msk.bf16.gmra.mxu2 %vm601_vm0, %v3406_v11  ;;  %5004 = vmatmul.msk.bf16.gmra.mxu3 %vm601_vm0, %v3406_v11 }
 0xb25   : > { %v3546_v58 = vpop.f32.mrf.mxu3 }
 0xb26   : > { %3820 = vrot.lane.b32.xlu2 %v3546_v58, %s5481_s13  ;;  %v3497_v8 = vpop.f32.mrf.mxu2 }
 0xb2a   : > { %v5292_v19 = vpop.permute.xlu1 %5291 }
 0xb2b   : > { %v5293_v52 = vunpack.i.l.bf16 %v5292_v19  ;;  %v5294_v6 = vunpack.i.h.bf16 %v5292_v19 }
 0xb2d   : > { %v3548_v2 = vpop.f32.mrf.mxu3  ;;  %v3720_v7 = vadd.f32 %v5293_v52, %v3576_v35  ;;  %v3721_v38 = vadd.f32 %v5294_v6, %v3577_v41  ;;  %v3582_v52 = vadd.f32 %v6736_v4, %v3497_v8 }
 0xb2e   : > { %3822 = vrot.lane.b32.xlu0 %v3548_v2, %s5481_s13  ;;  %3682 = vrot.lane.b32.xlu2 %v3484_v56, %s5481_s13  ;;  %v3499_v27 = vpop.f32.mrf.mxu2 }
 0xb2f   : > { %v3583_v6 = vadd.f32 %v6736_v4, %v3499_v27 }
 0xb32   : > { %v5297_v0 = vpop.permute.xlu1 %5296 }
 0xb33   : > { %4997 = vmatmul.msk.bf16.gmra.mxu2 %vm601_vm0, %v3408_v44  ;;  %5005 = vmatmul.msk.bf16.gmra.mxu3 %vm601_vm0, %v3408_v44  ;;  %v5298_v62 = vunpack.i.l.bf16 %v5297_v0  ;;  %v5299_v57 = vunpack.i.h.bf16 %v5297_v0  ;;  %v5183_v44 = vld [vmem:[#allocation5 + $0xc0] sm:$0xff] }
 0xb35   : > { %v3551_v45 = vpop.f32.mrf.mxu3  ;;  %v3722_v33 = vadd.f32 %v5298_v62, %v3578_v16  ;;  %v3723_v47 = vadd.f32 %v5299_v57, %v3579_v1 }
 0xb36   : > { %5301 = vrot.lane.b32.xlu0 %v5482_v50, %s5481_s13  ;;  %3684 = vrot.lane.b32.xlu2 %v3487_v15, %s5481_s13  ;;  %v3502_v11 = vpop.f32.mrf.mxu2  ;;  %v5184_v15 = vld [vmem:[#allocation5 + $0xc8] sm:$0xff] }
 0xb37   : > { %3996 = vmatpush.bf16.msrb.mxu0 %v5184_v15  ;;  %v3584_v62 = vadd.f32 %v6736_v4, %v3502_v11 }
 0xb3a   : > { %v3681_v18 = vpop.permute.xlu1 %3680 }
 0xb3b   : > { %v3724_v28 = vadd.f32 %v3681_v18, %v3580_v49  ;;  %3997 = vmatpush.bf16.msrb.mxu0 %v5183_v44 }
 0xb3d   : > { %v3553_v55 = vpop.f32.mrf.mxu3 }
 0xb3e   : > { %3686 = vrot.lane.b32.xlu0 %v3489_v24, %s5481_s13  ;;  %v3504_v56 = vpop.f32.mrf.mxu2 }
 0xb46   : > { %5311 = vrot.lane.b32.xlu0 %v5482_v50, %s5481_s13 }
 0xb70   : > { %v3817_v34 = vpop.permute.xlu2 %3816 }
 0xb71   : > { %v3864_v5 = vadd.f32 %v3817_v34, %v3720_v7 }
 0xb73   : > { %v3880_v9 = vmax.f32 %v3864_v5, 0.0 }
 0xb80   : > { %v3821_v14 = vpop.permute.xlu2 %3820 }
 0xb81   : > { %v3866_v39 = vadd.f32 %v3821_v14, %v3722_v33 }
 0xb83   : > { %v3882_v30 = vmax.f32 %v3866_v39, 0.0 }
 0xb88   : > { %v3683_v46 = vpop.permute.xlu2 %3682 }
 0xb89   : > { %v3725_v26 = vadd.f32 %v3683_v46, %v3581_v20 }
 0xb90   : > { %v3819_v21 = vpop.permute.xlu0 %3818  ;;  %v3685_v45 = vpop.permute.xlu2 %3684 }
 0xb91   : > { %v3865_v3 = vadd.f32 %v3819_v21, %v3721_v38  ;;  %v3726_v7 = vadd.f32 %v3685_v45, %v3582_v52 }
 0xb93   : > { %v3881_v42 = vmax.f32 %v3865_v3, 0.0 }
 0xb95   : > { %v3898_v22 = vpack.c.bf16 %v3881_v42, %v3880_v9  ;;  %v3585_v42 = vadd.f32 %v6736_v4, %v3504_v56 }
 0xb96   : > { %v3556_v23 = vpop.f32.mrf.mxu3  ;;  %v3507_v2 = vpop.f32.mrf.mxu2 }
 0xb97   : > { %3926 = vrot.lane.b32.xlu1 %v3898_v22, %s5481_s13 }
 0xb9e   : > { %v3558_v61 = vpop.f32.mrf.mxu3 }
 0xb9f   : > { %5306 = vrot.lane.b32.xlu1 %v5482_v50, %s5481_s13 }
 0xba0   : > { %v3823_v63 = vpop.permute.xlu0 %3822 }
 0xba1   : > { %v3867_v48 = vadd.f32 %v3823_v63, %v3723_v47 }
 0xba3   : > { %v3883_v17 = vmax.f32 %v3867_v48, 0.0  ;;  %v3509_v48 = vpop.f32.mrf.mxu2 }
 0xba4   : > { %v3587_v20 = vadd.f32 %v6736_v4, %v3509_v48 }
 0xba5   : > { %v3899_v60 = vpack.c.bf16 %v3883_v17, %v3882_v30 }
 0xba6   : > { %v3561_v32 = vpop.f32.mrf.mxu3 }
 0xba7   : > { %3928 = vrot.lane.b32.xlu2 %v3899_v60, %s5481_s13  ;;  %3832 = vrot.lane.b32.xlu1 %v3561_v32, %s5481_s13  ;;  %v3586_v60 = vadd.f32 %v6736_v4, %v3507_v2 }
 0xba8   : > { %v5302_v51 = vpop.permute.xlu0 %5301 }
 0xba9   : > { %v5304_v54 = vunpack.i.h.bf16 %v5302_v51  ;;  %v5303_v12 = vunpack.i.l.bf16 %v5302_v51 }
 0xbab   : > { %v3868_v37 = vadd.f32 %v5303_v12, %v3724_v28  ;;  %v3869_v36 = vadd.f32 %v5304_v54, %v3725_v26 }
 0xbad   : > { %v3884_v43 = vmax.f32 %v3868_v37, 0.0  ;;  %v3885_v29 = vmax.f32 %v3869_v36, 0.0  ;;  %v5189_v37 = vld [vmem:[#allocation5 + $0xf0] sm:$0xff]  ;;  %v5188_v36 = vld [vmem:[#allocation5 + $0xe8] sm:$0xff] }
 0xbae   : > { %v3563_v25 = vpop.f32.mrf.mxu3 }
 0xbaf   : > { %v3900_v59 = vpack.c.bf16 %v3885_v29, %v3884_v43  ;;  %5316 = vrot.lane.b32.xlu1 %v5482_v50, %s5481_s13  ;;  %3834 = vrot.lane.b32.xlu2 %v3563_v25, %s5481_s13  ;;  %v5187_v43 = vld [vmem:[#allocation5 + $0xe0] sm:$0xff]  ;;  %v3512_v29 = vpop.f32.mrf.mxu2 }
 0xbb0   : > { %v3687_v24 = vpop.permute.xlu0 %3686 }
 0xbb1   : > { %3930 = vrot.lane.b32.xlu0 %v3900_v59, %s5481_s13  ;;  %v3727_v41 = vadd.f32 %v3687_v24, %v3583_v6  ;;  %v3588_v24 = vadd.f32 %v6736_v4, %v3512_v29 }
 0xbb6   : > { %v3566_v53 = vpop.f32.mrf.mxu3 }
 0xbb7   : > { %3836 = vrot.lane.b32.xlu2 %v3566_v53, %s5481_s13  ;;  %v3514_v59 = vpop.f32.mrf.mxu2 }
 0xbb8   : > { %v5312_v35 = vpop.permute.xlu0 %5311 }
 0xbb9   : > { %v5314_v21 = vunpack.i.h.bf16 %v5312_v35  ;;  %v5313_v10 = vunpack.i.l.bf16 %v5312_v35 }
 0xbbb   : > { %v3729_v57 = vadd.f32 %v5314_v21, %v3585_v42  ;;  %v3728_v33 = vadd.f32 %v5313_v10, %v3584_v62 }
 0xbbe   : > { %v3568_v58 = vpop.f32.mrf.mxu3 }
 0xbbf   : > { %3696 = vrot.lane.b32.xlu2 %v3502_v11, %s5481_s13  ;;  %3838 = vrot.lane.b32.xlu0 %v3568_v58, %s5481_s13  ;;  %v3517_v11 = vpop.f32.mrf.mxu2 }
 0xbc0   : > { %v3590_v42 = vadd.f32 %v6736_v4, %v3517_v11 }
 0xbc7   : > { %3698 = vrot.lane.b32.xlu0 %v3504_v56, %s5481_s13 }
 0xbcf   : > { %3700 = vrot.lane.b32.xlu0 %v3507_v2, %s5481_s13 }
 0xc01   : > { %v3929_v19 = vpop.permute.xlu2 %3928 }
 0xc09   : > { %v3927_v55 = vpop.permute.xlu1 %3926  ;;  %v3835_v22 = vpop.permute.xlu2 %3834 }
 0xc0a   : > { %5023 = vmatmul.msk.bf16.vlgmr.msrb.gmra.mxu0 %vm601_vm0, %v3927_v55  ;;  %v3873_v14 = vadd.f32 %v3835_v22, %v3729_v57  ;;  %v3589_v55 = vadd.f32 %v6736_v4, %v3514_v59 }
 0xc0c   : > { %v3889_v40 = vmax.f32 %v3873_v14, 0.0 }
 0xc11   : > { %v5307_v34 = vpop.permute.xlu1 %5306  ;;  %v3837_v49 = vpop.permute.xlu2 %3836 }
 0xc12   : > { %v5309_v5 = vunpack.i.h.bf16 %v5307_v34  ;;  %v5308_v38 = vunpack.i.l.bf16 %v5307_v34 }
 0xc14   : > { %v3871_v3 = vadd.f32 %v5309_v5, %v3727_v41  ;;  %v3870_v9 = vadd.f32 %v5308_v38, %v3726_v7 }
 0xc16   : > { %v3887_v0 = vmax.f32 %v3871_v3, 0.0  ;;  %v3886_v23 = vmax.f32 %v3870_v9, 0.0  ;;  %v3519_v3 = vpop.f32.mrf.mxu2 }
 0xc18   : > { %v3901_v16 = vpack.c.bf16 %v3887_v0, %v3886_v23  ;;  %v3591_v23 = vadd.f32 %v6736_v4, %v3519_v3 }
 0xc19   : > { %v3833_v1 = vpop.permute.xlu1 %3832  ;;  %v3697_v25 = vpop.permute.xlu2 %3696 }
 0xc1a   : > { %3932 = vrot.lane.b32.xlu1 %v3901_v16, %s5481_s13  ;;  %5024 = vmatmul.msk.bf16.gmra.mxu0 %vm601_vm0, %v3929_v19  ;;  %v3872_v61 = vadd.f32 %v3833_v1, %v3728_v33  ;;  %v3732_v6 = vadd.f32 %v3697_v25, %v3588_v24 }
 0xc1c   : > { %v3888_v39 = vmax.f32 %v3872_v61, 0.0 }
 0xc1e   : > { %v3902_v47 = vpack.c.bf16 %v3889_v40, %v3888_v39 }
 0xc20   : > { %3934 = vrot.lane.b32.xlu2 %v3902_v47, %s5481_s13 }
 0xc21   : > { %v5317_v63 = vpop.permute.xlu1 %5316 }
 0xc22   : > { %5321 = vrot.lane.b32.xlu1 %v5482_v50, %s5481_s13  ;;  %v5318_v30 = vunpack.i.l.bf16 %v5317_v63  ;;  %v5319_v18 = vunpack.i.h.bf16 %v5317_v63 }
 0xc23   : > { %v3931_v17 = vpop.permute.xlu0 %3930 }
 0xc24   : > { %v3730_v46 = vadd.f32 %v5318_v30, %v3586_v60  ;;  %v3731_v32 = vadd.f32 %v5319_v18, %v3587_v20 }
 0xc26   : > { %v3874_v51 = vadd.f32 %v3837_v49, %v3730_v46 }
 0xc28   : > { %5326 = vrot.lane.b32.xlu2 %v5482_v50, %s5481_s13  ;;  %v3890_v26 = vmax.f32 %v3874_v51, 0.0  ;;  %v5190_v50 = vld [vmem:[#allocation5 + $0xf8] sm:$0xff] }
 0xc29   : > { %4129 = vmatpush.bf16.msrb.mxu1 %v5190_v50  ;;  %v5191_v50 = vld [vmem:[#allocation5 + $0x100] sm:$0xff] }
 0xc2a   : > { %3702 = vrot.lane.b32.xlu1 %v3509_v48, %s5481_s13  ;;  %5025 = vmatmul.msk.bf16.gmra.mxu0 %vm601_vm0, %v3931_v17 }
 0xc2d   : > { %4130 = vmatpush.bf16.msrb.mxu1 %v5189_v37 }
 0xc31   : > { %v3839_v8 = vpop.permute.xlu0 %3838  ;;  %4131 = vmatpush.bf16.msrb.mxu1 %v5188_v36 }
 0xc32   : > { %v3875_v28 = vadd.f32 %v3839_v8, %v3731_v32 }
 0xc34   : > { %v3891_v54 = vmax.f32 %v3875_v28, 0.0 }
 0xc35   : > { %4132 = vmatpush.bf16.msrb.mxu1 %v5187_v43 }
 0xc36   : > { %v3903_v12 = vpack.c.bf16 %v3891_v54, %v3890_v26  ;;  %v5194_v26 = vld [vmem:[#allocation5 + $0x118] sm:$0xff]  ;;  %v5193_v54 = vld [vmem:[#allocation5 + $0x110] sm:$0xff] }
 0xc37   : > { %4264 = vmatpush.bf16.msrb.mxu2 %v5194_v26 }
 0xc38   : > { %3936 = vrot.lane.b32.xlu0 %v3903_v12, %s5481_s13  ;;  %v5192_v12 = vld [vmem:[#allocation5 + $0x108] sm:$0xff] }
 0xc39   : > { %v3699_v58 = vpop.permute.xlu0 %3698 }
 0xc3a   : > { %v3733_v35 = vadd.f32 %v3699_v58, %v3589_v55 }
 0xc3b   : > { %4265 = vmatpush.bf16.msrb.mxu2 %v5193_v54 }
 0xc3f   : > { %4266 = vmatpush.bf16.msrb.mxu2 %v5192_v12 }
 0xc41   : > { %v3701_v9 = vpop.permute.xlu0 %3700 }
 0xc42   : > { %v3734_v62 = vadd.f32 %v3701_v9, %v3590_v42 }
 0xc43   : > { %4267 = vmatpush.bf16.msrb.mxu2 %v5191_v50 }
 0xc7a   : > { %v3935_v27 = vpop.permute.xlu2 %3934 }
 0xc82   : > { %v5327_v41 = vpop.permute.xlu2 %5326 }
 0xc83   : > { %v5328_v10 = vunpack.i.l.bf16 %v5327_v41  ;;  %v5329_v57 = vunpack.i.h.bf16 %v5327_v41 }
 0xc85   : > { %v3878_v33 = vadd.f32 %v5328_v10, %v3734_v62 }
 0xc87   : > { %v3999_v13 = vpop.f32.mrf.mxu0  ;;  %v3894_v63 = vmax.f32 %v3878_v33, 0.0 }
 0xc88   : > { %v4000_v56 = vadd.f32 %v6778_v31, %v3999_v13 }
 0xc8a   : > { %v4039_v44 = vmax.f32 %v4000_v56, 0.0 }
 0xc8c   : > { %v3933_v53 = vpop.permute.xlu1 %3932 }
 0xc8d   : > { %5026 = vmatmul.msk.bf16.gmra.mxu0 %vm601_vm0, %v3933_v53  ;;  %v6804_v53 = vld [vmem:[%s6961_s3 + $0x7] ss:$0 sm:$0xff] }
 0xc8f   : > { %v4001_v2 = vpop.f32.mrf.mxu0 }
 0xc90   : > { %v4002_v15 = vadd.f32 %v6778_v31, %v4001_v2 }
 0xc92   : > { %v4040_v45 = vmax.f32 %v4002_v15, 0.0 }
 0xc94   : > { %v4057_v19 = vpack.c.bf16 %v4040_v45, %v4039_v44  ;;  %v5322_v52 = vpop.permute.xlu1 %5321 }
 0xc95   : > { %v5324_v34 = vunpack.i.h.bf16 %v5322_v52  ;;  %v5323_v7 = vunpack.i.l.bf16 %v5322_v52 }
 0xc96   : > { %5048 = vmatmul.msk.bf16.vlgmr.msrb.gmra.mxu1 %vm601_vm0, %v4057_v19 }
 0xc97   : > { %v3877_v5 = vadd.f32 %v5324_v34, %v3733_v35  ;;  %v3876_v38 = vadd.f32 %v5323_v7, %v3732_v6  ;;  %v4004_v21 = vpop.f32.mrf.mxu0 }
 0xc98   : > { %v4005_v61 = vadd.f32 %v6778_v31, %v4004_v21 }
 0xc99   : > { %v3893_v22 = vmax.f32 %v3877_v5, 0.0  ;;  %v3892_v0 = vmax.f32 %v3876_v38, 0.0 }
 0xc9a   : > { %v4041_v30 = vmax.f32 %v4005_v61, 0.0 }
 0xc9b   : > { %v3904_v16 = vpack.c.bf16 %v3893_v22, %v3892_v0 }
 0xc9c   : > { %v3703_v14 = vpop.permute.xlu1 %3702 }
 0xc9d   : > { %v3735_v1 = vadd.f32 %v3703_v14, %v3591_v23  ;;  %3938 = vrot.lane.b32.xlu1 %v3904_v16, %s5481_s13  ;;  %5027 = vmatmul.msk.bf16.gmra.mxu0 %vm601_vm0, %v3935_v27 }
 0xc9f   : > { %v3879_v40 = vadd.f32 %v5329_v57, %v3735_v1  ;;  %v4006_v39 = vpop.f32.mrf.mxu0 }
 0xca0   : > { %v4007_v47 = vadd.f32 %v6778_v31, %v4006_v39 }
 0xca1   : > { %v3895_v48 = vmax.f32 %v3879_v40, 0.0 }
 0xca2   : > { %v4042_v4 = vmax.f32 %v4007_v47, 0.0 }
 0xca3   : > { %v3905_v17 = vpack.c.bf16 %v3895_v48, %v3894_v63  ;;  %v5198_v63 = vld [vmem:[#allocation5 + $0x138] sm:$0xff]  ;;  %v5197_v48 = vld [vmem:[#allocation5 + $0x130] sm:$0xff] }
 0xca4   : > { %v4058_v60 = vpack.c.bf16 %v4042_v4, %v4041_v30  ;;  %4399 = vmatpush.bf16.msrb.mxu3 %v5198_v63  ;;  %v5196_v30 = vld [vmem:[#allocation5 + $0x128] sm:$0xff] }
 0xca5   : > { %3940 = vrot.lane.b32.xlu2 %v3905_v17, %s5481_s13  ;;  %v5195_v17 = vld [vmem:[#allocation5 + $0x120] sm:$0xff]  ;;  %s5124_s13 = sshll.u32 %s5540_s25, 1 }
 0xca6   : > { %5049 = vmatmul.msk.bf16.gmra.mxu1 %vm601_vm0, %v4058_v60  ;;  %s4584_s18 = scalar_lea.hbm %s6964_s6, %s5124_s13  ;;  %s5423_s13 = scalar_lea.hbm %s6964_s6, 4 }
 0xca7   : > { %v4009_v18 = vpop.f32.mrf.mxu0  ;;  %s4588_s29 = sshll.u32 %s4584_s18, 4  ;;  %s4589_s29 = int_to_ptr.hbm [resolvable:$true] %s4588_s29 }
 0xca8   : > { %v4010_v20 = vadd.f32 %v6778_v31, %v4009_v18  ;;  %4400 = vmatpush.bf16.msrb.mxu3 %v5197_v48  ;;  %s5417_s25 = sshra.s32 %s4589_s29, 4  ;;  %s5418_s25 = int_to_ptr.hbm [resolvable:$true] %s5417_s25 }
 0xca9   : > { %s5419_s9 = scalar_lea.hbm %s5418_s25, 2  ;;  %p5424_p3 = scmp.lt.s32.totalorder %s5418_s25, %s6964_s6 }
 0xcaa   : > { %v3937_v46 = vpop.permute.xlu0 %3936  ;;  %v4043_v51 = vmax.f32 %v4010_v20, 0.0  ;;  %p5420_p0 = scmp.ne.s32.totalorder %s5418_s25, %s5419_s9  ;;  %p5425_p4 = scmp.lt.s32.totalorder %s5423_s13, %s5419_s9 }
 0xcac   : > { %4401 = vmatpush.bf16.msrb.mxu3 %v5196_v30  ;;  %p5421_p1 = pnand %p5420_p0, %p5557_p5  ;;  %p5426_p7 = por %p5425_p4, %p5424_p3 }
 0xcad   : > { %5028 = vmatmul.msk.bf16.gmra.mxu0 %vm601_vm0, %v3937_v46 }
 0xcae   : > { %p5422_p2 = pneg %p5421_p1 }
 0xcaf   : > { %v4011_v49 = vpop.f32.mrf.mxu0 }
 0xcb0   : > { %v4012_v32 = vadd.f32 %v6778_v31, %v4011_v49  ;;  %4402 = vmatpush.bf16.msrb.mxu3 %v5195_v17  ;;  %p5427_p8 = pnand %p5426_p7, %p5422_p2 }
 0xcb2   : > { %v4044_v8 = vmax.f32 %v4012_v32, 0.0 }
 0xcb4   : > { %v4059_v28 = vpack.c.bf16 %v4044_v8, %v4043_v51 }
 0xcb6   : > { %5050 = vmatmul.msk.bf16.gmra.mxu1 %vm601_vm0, %v4059_v28 }
 0xcff   : > { %v3941_v24 = vpop.permute.xlu2 %3940 }
 0xd0a   : > { %v4014_v37 = vpop.f32.mrf.mxu0 }
 0xd0b   : > { %v4015_v43 = vadd.f32 %v6778_v31, %v4014_v37 }
 0xd0d   : > { %v4045_v13 = vmax.f32 %v4015_v43, 0.0 }
 0xd0f   : > { %v3939_v36 = vpop.permute.xlu1 %3938 }
 0xd10   : > { %5029 = vmatmul.msk.bf16.gmra.mxu0 %vm601_vm0, %v3939_v36 }
 0xd12   : > { %v4016_v29 = vpop.f32.mrf.mxu0 }
 0xd13   : > { %v4017_v59 = vadd.f32 %v6778_v31, %v4016_v29  ;;  %v4134_v25 = vpop.f32.mrf.mxu1 }
 0xd14   : > { %v4135_v58 = vadd.f32 %v6804_v53, %v4134_v25 }
 0xd15   : > { %v4046_v27 = vmax.f32 %v4017_v59, 0.0 }
 0xd16   : > { %v4174_v44 = vmax.f32 %v4135_v58, 0.0 }
 0xd17   : > { %v4060_v11 = vpack.c.bf16 %v4046_v27, %v4045_v13 }
 0xd19   : > { %5051 = vmatmul.msk.bf16.gmra.mxu1 %vm601_vm0, %v4060_v11  ;;  %v6834_v11 = vld [vmem:[%s6961_s3 + $0x8] ss:$0 sm:$0xff] }
 0xd1a   : > { %v4019_v56 = vpop.f32.mrf.mxu0 }
 0xd1b   : > { %v4136_v2 = vpop.f32.mrf.mxu1  ;;  %v4020_v19 = vadd.f32 %v6778_v31, %v4019_v56 }
 0xd1c   : > { %v4137_v15 = vadd.f32 %v6804_v53, %v4136_v2 }
 0xd1d   : > { %v4047_v34 = vmax.f32 %v4020_v19, 0.0 }
 0xd1e   : > { %v4175_v45 = vmax.f32 %v4137_v15, 0.0 }
 0xd20   : > { %v4192_v55 = vpack.c.bf16 %v4175_v45, %v4174_v44  ;;  %5030 = vmatmul.msk.bf16.gmra.mxu0 %vm601_vm0, %v3941_v24 }
 0xd22   : > { %v4021_v52 = vpop.f32.mrf.mxu0  ;;  %5073 = vmatmul.msk.bf16.vlgmr.msrb.gmra.mxu2 %vm601_vm0, %v4192_v55 }
 0xd23   : > { %v4022_v6 = vadd.f32 %v6778_v31, %v4021_v52  ;;  %v4139_v35 = vpop.f32.mrf.mxu1 }
 0xd24   : > { %v4140_v5 = vadd.f32 %v6804_v53, %v4139_v35 }
 0xd25   : > { %v4048_v7 = vmax.f32 %v4022_v6, 0.0 }
 0xd26   : > { %v4176_v9 = vmax.f32 %v4140_v5, 0.0 }
 0xd27   : > { %v4061_v41 = vpack.c.bf16 %v4048_v7, %v4047_v34 }
 0xd29   : > { %5052 = vmatmul.msk.bf16.gmra.mxu1 %vm601_vm0, %v4061_v41 }
 0xd2a   : > { %v4024_v38 = vpop.f32.mrf.mxu0 }
 0xd2b   : > { %v4141_v21 = vpop.f32.mrf.mxu1  ;;  %v4025_v22 = vadd.f32 %v6778_v31, %v4024_v38 }
 0xd2c   : > { %v4142_v3 = vadd.f32 %v6804_v53, %v4141_v21 }
 0xd2d   : > { %v4049_v57 = vmax.f32 %v4025_v22, 0.0 }
 0xd2e   : > { %v4177_v42 = vmax.f32 %v4142_v3, 0.0 }
 0xd30   : > { %v4193_v10 = vpack.c.bf16 %v4177_v42, %v4176_v9 }
 0xd32   : > { %v4026_v0 = vpop.f32.mrf.mxu0  ;;  %5074 = vmatmul.msk.bf16.gmra.mxu2 %vm601_vm0, %v4193_v10 }
 0xd33   : > { %v4027_v23 = vadd.f32 %v6778_v31, %v4026_v0  ;;  %v4144_v62 = vpop.f32.mrf.mxu1 }
 0xd34   : > { %v4145_v33 = vadd.f32 %v6804_v53, %v4144_v62 }
 0xd35   : > { %v4050_v16 = vmax.f32 %v4027_v23, 0.0 }
 0xd36   : > { %v4178_v40 = vmax.f32 %v4145_v33, 0.0 }
 0xd37   : > { %v4062_v14 = vpack.c.bf16 %v4050_v16, %v4049_v57 }
 0xd39   : > { %5053 = vmatmul.msk.bf16.gmra.mxu1 %vm601_vm0, %v4062_v14 }
 0xd3b   : > { %v4146_v1 = vpop.f32.mrf.mxu1 }
 0xd3c   : > { %v4147_v61 = vadd.f32 %v6804_v53, %v4146_v1 }
 0xd3e   : > { %v4179_v39 = vmax.f32 %v4147_v61, 0.0 }
 0xd40   : > { %v4194_v47 = vpack.c.bf16 %v4179_v39, %v4178_v40 }
 0xd42   : > { %5075 = vmatmul.msk.bf16.gmra.mxu2 %vm601_vm0, %v4194_v47 }
 0xd8d   : > { %v4029_v4 = vpop.f32.mrf.mxu0 }
 0xd8e   : > { %v4030_v60 = vadd.f32 %v6778_v31, %v4029_v4 }
 0xd90   : > { %v4051_v49 = vmax.f32 %v4030_v60, 0.0 }
 0xd95   : > { %v4031_v18 = vpop.f32.mrf.mxu0 }
 0xd96   : > { %v4032_v46 = vadd.f32 %v6778_v31, %v4031_v18  ;;  %v4149_v20 = vpop.f32.mrf.mxu1 }
 0xd97   : > { %v4150_v8 = vadd.f32 %v6804_v53, %v4149_v20 }
 0xd98   : > { %v4052_v32 = vmax.f32 %v4032_v46, 0.0 }
 0xd99   : > { %v4180_v12 = vmax.f32 %v4150_v8, 0.0 }
 0xd9a   : > { %v4063_v51 = vpack.c.bf16 %v4052_v32, %v4051_v49 }
 0xd9c   : > { %5054 = vmatmul.msk.bf16.gmra.mxu1 %vm601_vm0, %v4063_v51 }
 0xd9d   : > { %v4034_v28 = vpop.f32.mrf.mxu0 }
 0xd9e   : > { %v4151_v26 = vpop.f32.mrf.mxu1  ;;  %v4035_v36 = vadd.f32 %v6778_v31, %v4034_v28 }
 0xd9f   : > { %v4152_v54 = vadd.f32 %v6804_v53, %v4151_v26 }
 0xda0   : > { %v4053_v13 = vmax.f32 %v4035_v36, 0.0 }
 0xda1   : > { %v4181_v50 = vmax.f32 %v4152_v54, 0.0 }
 0xda3   : > { %v4195_v37 = vpack.c.bf16 %v4181_v50, %v4180_v12 }
 0xda5   : > { %v4036_v43 = vpop.f32.mrf.mxu0  ;;  %v4269_v29 = vpop.f32.mrf.mxu2  ;;  %5076 = vmatmul.msk.bf16.gmra.mxu2 %vm601_vm0, %v4195_v37 }
 0xda6   : > { %v4037_v59 = vadd.f32 %v6778_v31, %v4036_v43  ;;  %v4154_v25 = vpop.f32.mrf.mxu1  ;;  %v4270_v56 = vadd.f32 %v6834_v11, %v4269_v29  ;;  %v6863_v43 = vld [vmem:[%s6961_s3 + $0x9] ss:$0 sm:$0xff] }
 0xda7   : > { %v4155_v2 = vadd.f32 %v6804_v53, %v4154_v25 }
 0xda8   : > { %v4054_v27 = vmax.f32 %v4037_v59, 0.0  ;;  %v4309_v24 = vmax.f32 %v4270_v56, 0.0 }
 0xda9   : > { %v4182_v19 = vmax.f32 %v4155_v2, 0.0 }
 0xdaa   : > { %v4064_v58 = vpack.c.bf16 %v4054_v27, %v4053_v13 }
 0xdac   : > { %5055 = vmatmul.msk.bf16.gmra.mxu1 %vm601_vm0, %v4064_v58 }
 0xdad   : > { %v4271_v15 = vpop.f32.mrf.mxu2 }
 0xdae   : > { %v4272_v44 = vadd.f32 %v6834_v11, %v4271_v15  ;;  %v4156_v45 = vpop.f32.mrf.mxu1 }
 0xdaf   : > { %v4157_v31 = vadd.f32 %v6804_v53, %v4156_v45 }
 0xdb0   : > { %v4310_v55 = vmax.f32 %v4272_v44, 0.0 }
 0xdb1   : > { %v4183_v52 = vmax.f32 %v4157_v31, 0.0 }
 0xdb2   : > { %v4327_v6 = vpack.c.bf16 %v4310_v55, %v4309_v24 }
 0xdb3   : > { %v4196_v35 = vpack.c.bf16 %v4183_v52, %v4182_v19 }
 0xdb4   : > { %5098 = vmatmul.msk.bf16.vlgmr.msrb.gmra.mxu3 %vm601_vm0, %v4327_v6 }
 0xdb5   : > { %v4274_v34 = vpop.f32.mrf.mxu2  ;;  %5077 = vmatmul.msk.bf16.gmra.mxu2 %vm601_vm0, %v4196_v35 }
 0xdb6   : > { %v4159_v7 = vpop.f32.mrf.mxu1  ;;  %v4275_v41 = vadd.f32 %v6834_v11, %v4274_v34 }
 0xdb7   : > { %v4160_v5 = vadd.f32 %v6804_v53, %v4159_v7 }
 0xdb8   : > { %v4311_v42 = vmax.f32 %v4275_v41, 0.0 }
 0xdb9   : > { %v4184_v22 = vmax.f32 %v4160_v5, 0.0 }
 0xdbd   : > { %v4276_v38 = vpop.f32.mrf.mxu2 }
 0xdbe   : > { %v4277_v21 = vadd.f32 %v6834_v11, %v4276_v38  ;;  %v4161_v3 = vpop.f32.mrf.mxu1 }
 0xdbf   : > { %v4162_v9 = vadd.f32 %v6804_v53, %v4161_v3 }
 0xdc0   : > { %v4312_v10 = vmax.f32 %v4277_v21, 0.0 }
 0xdc1   : > { %v4185_v0 = vmax.f32 %v4162_v9, 0.0 }
 0xdc2   : > { %v4328_v23 = vpack.c.bf16 %v4312_v10, %v4311_v42 }
 0xdc3   : > { %v4197_v62 = vpack.c.bf16 %v4185_v0, %v4184_v22 }
 0xdc4   : > { %5099 = vmatmul.msk.bf16.gmra.mxu3 %vm601_vm0, %v4328_v23 }
 0xdc5   : > { %v4279_v57 = vpop.f32.mrf.mxu2  ;;  %5078 = vmatmul.msk.bf16.gmra.mxu2 %vm601_vm0, %v4197_v62 }
 0xdc6   : > { %v4280_v16 = vadd.f32 %v6834_v11, %v4279_v57 }
 0xdc8   : > { %v4313_v1 = vmax.f32 %v4280_v16, 0.0 }
 0xdcd   : > { %v4281_v14 = vpop.f32.mrf.mxu2 }
 0xdce   : > { %v4282_v33 = vadd.f32 %v6834_v11, %v4281_v14 }
 0xdd0   : > { %v4314_v61 = vmax.f32 %v4282_v33, 0.0 }
 0xdd2   : > { %v4329_v40 = vpack.c.bf16 %v4314_v61, %v4313_v1 }
 0xdd4   : > { %5100 = vmatmul.msk.bf16.gmra.mxu3 %vm601_vm0, %v4329_v40 }
 0xe19   : > { %v4164_v39 = vpop.f32.mrf.mxu1 }
 0xe1a   : > { %v4165_v47 = vadd.f32 %v6804_v53, %v4164_v39 }
 0xe1c   : > { %v4186_v30 = vmax.f32 %v4165_v47, 0.0 }
 0xe21   : > { %v4166_v63 = vpop.f32.mrf.mxu1 }
 0xe22   : > { %v4167_v48 = vadd.f32 %v6804_v53, %v4166_v63 }
 0xe24   : > { %v4187_v4 = vmax.f32 %v4167_v48, 0.0 }
 0xe26   : > { %v4198_v17 = vpack.c.bf16 %v4187_v4, %v4186_v30 }
 0xe28   : > { %v4284_v60 = vpop.f32.mrf.mxu2  ;;  %5079 = vmatmul.msk.bf16.gmra.mxu2 %vm601_vm0, %v4198_v17 }
 0xe29   : > { %v4169_v18 = vpop.f32.mrf.mxu1  ;;  %v4285_v46 = vadd.f32 %v6834_v11, %v4284_v60 }
 0xe2a   : > { %v4170_v20 = vadd.f32 %v6804_v53, %v4169_v18 }
 0xe2b   : > { %v4315_v28 = vmax.f32 %v4285_v46, 0.0 }
 0xe2c   : > { %v4188_v54 = vmax.f32 %v4170_v20, 0.0 }
 0xe30   : > { %v4286_v49 = vpop.f32.mrf.mxu2 }
 0xe31   : > { %v4287_v32 = vadd.f32 %v6834_v11, %v4286_v49  ;;  %v4171_v51 = vpop.f32.mrf.mxu1 }
 0xe32   : > { %v4172_v8 = vadd.f32 %v6804_v53, %v4171_v51 }
 0xe33   : > { %v4316_v26 = vmax.f32 %v4287_v32, 0.0 }
 0xe34   : > { %v4189_v12 = vmax.f32 %v4172_v8, 0.0 }
 0xe35   : > { %v4330_v50 = vpack.c.bf16 %v4316_v26, %v4315_v28 }
 0xe36   : > { %v4199_v37 = vpack.c.bf16 %v4189_v12, %v4188_v54 }
 0xe37   : > { %v4404_v36 = vpop.f32.mrf.mxu3  ;;  %5101 = vmatmul.msk.bf16.gmra.mxu3 %vm601_vm0, %v4330_v50 }
 0xe38   : > { %v4289_v29 = vpop.f32.mrf.mxu2  ;;  %5080 = vmatmul.msk.bf16.gmra.mxu2 %vm601_vm0, %v4199_v37  ;;  %v4405_v59 = vadd.f32 %v6863_v43, %v4404_v36 }
 0xe39   : > { %v4290_v53 = vadd.f32 %v6834_v11, %v4289_v29 }
 0xe3a   : > { %v4444_v13 = vmax.f32 %v4405_v59, 0.0 }
 0xe3b   : > { %v4317_v15 = vmax.f32 %v4290_v53, 0.0 }
 0xe3c   : > { %v4460_v45 = vsel %vm601_vm0, %v4444_v13, 0.0  ;;  %v5202_v13 = vld [vmem:[%s6962_s4 + $0x18] sm:$0xff] }
 0xe3d   : > { %4563 = vmatpush.bf16.msra.mxu0 %v5202_v13 }
 0xe3f   : > { %v4406_v25 = vpop.f32.mrf.mxu3 }
 0xe40   : > { %v4407_v27 = vadd.f32 %v6863_v43, %v4406_v25  ;;  %v4291_v58 = vpop.f32.mrf.mxu2 }
 0xe41   : > { %v4292_v56 = vadd.f32 %v6834_v11, %v4291_v58 }
 0xe42   : > { %v4445_v2 = vmax.f32 %v4407_v27, 0.0  ;;  %v5201_v27 = vld [vmem:[%s6962_s4 + $0x10] sm:$0xff] }
 0xe43   : > { %v4318_v44 = vmax.f32 %v4292_v56, 0.0  ;;  %4564 = vmatpush.bf16.msra.mxu0 %v5201_v27 }
 0xe44   : > { %v4461_v31 = vsel %vm601_vm0, %v4445_v2, 0.0 }
 0xe45   : > { %v4462_v24 = vadd.f32 %v4461_v31, %v4460_v45  ;;  %v4331_v55 = vpack.c.bf16 %v4318_v44, %v4317_v15  ;;  %v5199_v15 = vld [vmem:[%s6962_s4] sm:$0xff] }
 0xe47   : > { %v4409_v19 = vpop.f32.mrf.mxu3  ;;  %5102 = vmatmul.msk.bf16.gmra.mxu3 %vm601_vm0, %v4331_v55 }
 0xe48   : > { %v4410_v52 = vadd.f32 %v6863_v43, %v4409_v19  ;;  %v4294_v6 = vpop.f32.mrf.mxu2 }
 0xe49   : > { %v4295_v41 = vadd.f32 %v6834_v11, %v4294_v6 }
 0xe4a   : > { %v4446_v35 = vmax.f32 %v4410_v52, 0.0 }
 0xe4b   : > { %v4319_v42 = vmax.f32 %v4295_v41, 0.0 }
 0xe4c   : > { %v4463_v34 = vsel %vm601_vm0, %v4446_v35, 0.0  ;;  %v5483_v35 = vmov 64.0  }
 0xe4d   : > { %v4464_v7 = vadd.f32 %v4463_v34, %v4462_v24  ;;  %5341 = vrcp.f32 %v5483_v35 }
 0xe4f   : > { %v4411_v5 = vpop.f32.mrf.mxu3 }
 0xe50   : > { %v4412_v38 = vadd.f32 %v6863_v43, %v4411_v5  ;;  %v4296_v21 = vpop.f32.mrf.mxu2 }
 0xe51   : > { %v4297_v3 = vadd.f32 %v6834_v11, %v4296_v21 }
 0xe52   : > { %v4447_v9 = vmax.f32 %v4412_v38, 0.0 }
 0xe53   : > { %v4320_v10 = vmax.f32 %v4297_v3, 0.0 }
 0xe54   : > { %v4465_v22 = vsel %vm601_vm0, %v4447_v9, 0.0 }
 0xe55   : > { %v4466_v0 = vadd.f32 %v4465_v22, %v4464_v7  ;;  %v4332_v23 = vpack.c.bf16 %v4320_v10, %v4319_v42 }
 0xe57   : > { %v4414_v62 = vpop.f32.mrf.mxu3  ;;  %5103 = vmatmul.msk.bf16.gmra.mxu3 %vm601_vm0, %v4332_v23  ;;  %v5342_v23 = vpop.eup %5341 }
 0xe58   : > { %v4415_v57 = vadd.f32 %v6863_v43, %v4414_v62  ;;  %vm4507_vm3 = vweird.f32 %v5342_v23 }
 0xe5a   : > { %v4448_v16 = vmax.f32 %v4415_v57, 0.0 }
 0xe5c   : > { %v4467_v14 = vsel %vm601_vm0, %v4448_v16, 0.0 }
 0xe5d   : > { %v4468_v33 = vadd.f32 %v4467_v14, %v4466_v0 }
 0xe5f   : > { %v4416_v61 = vpop.f32.mrf.mxu3 }
 0xe60   : > { %v4417_v39 = vadd.f32 %v6863_v43, %v4416_v61 }
 0xe62   : > { %v4449_v4 = vmax.f32 %v4417_v39, 0.0 }
 0xe64   : > { %v4469_v18 = vsel %vm601_vm0, %v4449_v4, 0.0 }
 0xe65   : > { %v4470_v32 = vadd.f32 %v4469_v18, %v4468_v33 }
 0xeab   : > { %v4299_v1 = vpop.f32.mrf.mxu2 }
 0xeac   : > { %v4300_v40 = vadd.f32 %v6834_v11, %v4299_v1  ;;  %v4503_v1 = vmul.f32 64.0, %v5342_v23 }
 0xeae   : > { %v4321_v48 = vmax.f32 %v4300_v40, 0.0  ;;  %v4504_v4 = vsub.f32 1.0, %v4503_v1 }
 0xeb3   : > { %v4301_v47 = vpop.f32.mrf.mxu2 }
 0xeb4   : > { %v4302_v63 = vadd.f32 %v6834_v11, %v4301_v47 }
 0xeb6   : > { %v4322_v30 = vmax.f32 %v4302_v63, 0.0 }
 0xeb8   : > { %v4333_v17 = vpack.c.bf16 %v4322_v30, %v4321_v48 }
 0xeba   : > { %v4419_v60 = vpop.f32.mrf.mxu3  ;;  %5104 = vmatmul.msk.bf16.gmra.mxu3 %vm601_vm0, %v4333_v17 }
 0xebb   : > { %v4420_v46 = vadd.f32 %v6863_v43, %v4419_v60  ;;  %v4304_v20 = vpop.f32.mrf.mxu2 }
 0xebc   : > { %v4305_v28 = vadd.f32 %v6834_v11, %v4304_v20 }
 0xebd   : > { %v4450_v49 = vmax.f32 %v4420_v46, 0.0 }
 0xebe   : > { %v4323_v36 = vmax.f32 %v4305_v28, 0.0 }
 0xebf   : > { %v4471_v51 = vsel %vm601_vm0, %v4450_v49, 0.0 }
 0xec0   : > { %v4472_v8 = vadd.f32 %v4471_v51, %v4470_v32  ;;  %v4505_v32 = vmul.f32 %v5342_v23, %v4504_v4 }
 0xec2   : > { %v4421_v26 = vpop.f32.mrf.mxu3 }
 0xec3   : > { %v4422_v54 = vadd.f32 %v6863_v43, %v4421_v26  ;;  %v4306_v12 = vpop.f32.mrf.mxu2 }
 0xec4   : > { %v4307_v50 = vadd.f32 %v6834_v11, %v4306_v12  ;;  %v5200_v11 = vld [vmem:[%s6962_s4 + $0x8] sm:$0xff] }
 0xec5   : > { %v4451_v37 = vmax.f32 %v4422_v54, 0.0  ;;  %4565 = vmatpush.bf16.msra.mxu0 %v5200_v11  ;;  %v4506_v54 = vadd.f32 %v5342_v23, %v4505_v32 }
 0xec6   : > { %v4324_v29 = vmax.f32 %v4307_v50, 0.0 }
 0xec7   : > { %v4473_v59 = vsel %vm601_vm0, %v4451_v37, 0.0 }
 0xec8   : > { %v4474_v53 = vadd.f32 %v4473_v59, %v4472_v8  ;;  %v4334_v25 = vpack.c.bf16 %v4324_v29, %v4323_v36  ;;  %v4508_v36 = vsel %vm4507_vm3, %v5342_v23, %v4506_v54 }
 0xec9   : > { %4566 = vmatpush.bf16.msra.mxu0 %v5199_v15  ;;  %v5340_v15 = vld [vmem:[%s6963_s5] ss:$0 sm:$0xff] }
 0xeca   : > { %5105 = vmatmul.msk.bf16.gmra.mxu3 %vm601_vm0, %v4334_v25  ;;  %v4424_v58 = vpop.f32.mrf.mxu3  ;;  %v4475_v3 = vrot.slane %v4474_v53, 4 }
 0xecb   : > { %v4425_v55 = vadd.f32 %v6863_v43, %v4424_v58 }
 0xecc   : > { %v4476_v14 = vadd.f32 %v4475_v3, %v4474_v53 }
 0xecd   : > { %v4452_v34 = vmax.f32 %v4425_v55, 0.0 }
 0xece   : > { %v4477_v63 = vrot.slane %v4476_v14, 2 }
 0xecf   : > { %v4481_v42 = vsel %vm601_vm0, %v4452_v34, 0.0 }
 0xed0   : > { %v4478_v20 = vadd.f32 %v4477_v63, %v4476_v14 }
 0xed2   : > { %v4426_v56 = vpop.f32.mrf.mxu3  ;;  %v4479_v28 = vrot.slane %v4478_v20, 1 }
 0xed3   : > { %v4427_v31 = vadd.f32 %v6863_v43, %v4426_v56 }
 0xed4   : > { %v4480_v50 = vadd.f32 %v4479_v28, %v4478_v20 }
 0xed5   : > { %v4453_v52 = vmax.f32 %v4427_v31, 0.0 }
 0xed7   : > { %v4482_v5 = vsel %vm601_vm0, %v4453_v52, 0.0 }
 0xed8   : > { %v4483_v62 = vadd.f32 %v4482_v5, %v4481_v42 }
 0xeda   : > { %v4429_v2 = vpop.f32.mrf.mxu3 }
 0xedb   : > { %v4430_v19 = vadd.f32 %v6863_v43, %v4429_v2 }
 0xedd   : > { %v4454_v7 = vmax.f32 %v4430_v19, 0.0 }
 0xedf   : > { %v4484_v10 = vsel %vm601_vm0, %v4454_v7, 0.0 }
 0xee0   : > { %v4485_v33 = vadd.f32 %v4484_v10, %v4483_v62 }
 0xee2   : > { %v4431_v44 = vpop.f32.mrf.mxu3 }
 0xee3   : > { %v4432_v6 = vadd.f32 %v6863_v43, %v4431_v44 }
 0xee5   : > { %v4455_v38 = vmax.f32 %v4432_v6, 0.0 }
 0xee7   : > { %v4486_v57 = vsel %vm601_vm0, %v4455_v38, 0.0 }
 0xee8   : > { %v4487_v39 = vadd.f32 %v4486_v57, %v4485_v33 }
 0xf3d   : > { %v4434_v45 = vpop.f32.mrf.mxu3 }
 0xf3e   : > { %v4435_v41 = vadd.f32 %v6863_v43, %v4434_v45 }
 0xf40   : > { %v4456_v22 = vmax.f32 %v4435_v41, 0.0 }
 0xf42   : > { %v4488_v61 = vsel %vm601_vm0, %v4456_v22, 0.0 }
 0xf43   : > { %v4489_v48 = vadd.f32 %v4488_v61, %v4487_v39 }
 0xf45   : > { %v4436_v24 = vpop.f32.mrf.mxu3 }
 0xf46   : > { %v4437_v21 = vadd.f32 %v6863_v43, %v4436_v24 }
 0xf48   : > { %v4457_v16 = vmax.f32 %v4437_v21, 0.0 }
 0xf4a   : > { %v4490_v47 = vsel %vm601_vm0, %v4457_v16, 0.0 }
 0xf4b   : > { %v4491_v18 = vadd.f32 %v4490_v47, %v4489_v48 }
 0xf4d   : > { %v4439_v9 = vpop.f32.mrf.mxu3 }
 0xf4e   : > { %v4440_v0 = vadd.f32 %v6863_v43, %v4439_v9 }
 0xf50   : > { %v4458_v40 = vmax.f32 %v4440_v0, 0.0 }
 0xf52   : > { %v4492_v17 = vsel %vm601_vm0, %v4458_v40, 0.0 }
 0xf53   : > { %v4493_v49 = vadd.f32 %v4492_v17, %v4491_v18 }
 0xf55   : > { %v4441_v30 = vpop.f32.mrf.mxu3 }
 0xf56   : > { %v4442_v60 = vadd.f32 %v6863_v43, %v4441_v30  ;;  %v4509_v43 = vmul.f32 %v4508_v36, %v4480_v50 }
 0xf58   : > { %v4459_v46 = vmax.f32 %v4442_v60, 0.0  ;;  %v4511_v25 = vpack.c.bf16 %v4509_v43, %v4509_v43 }
 0xf5a   : > { %v4494_v51 = vsel %vm601_vm0, %v4459_v46, 0.0  ;;  %v4527_v11 = vunpack.c.l.b16 %v4511_v25 }
 0xf5b   : > { %v4495_v8 = vadd.f32 %v4494_v51, %v4493_v49 }
 0xf5d   : > { %v4496_v26 = vrot.slane %v4495_v8, 4 }
 0xf5f   : > { %v4497_v12 = vadd.f32 %v4496_v26, %v4495_v8 }
 0xf61   : > { %v4498_v37 = vrot.slane %v4497_v12, 2 }
 0xf63   : > { %v4499_v29 = vadd.f32 %v4498_v37, %v4497_v12 }
 0xf65   : > { %v4500_v59 = vrot.slane %v4499_v29, 1 }
 0xf67   : > { %v4501_v53 = vadd.f32 %v4500_v59, %v4499_v29 }
 0xf69   : > { %v4510_v13 = vmul.f32 %v4508_v36, %v4501_v53 }
 0xf6b   : > { %v4512_v27 = vpack.c.bf16 %v4510_v13, %v4510_v13 }
 0xf6d   : > { %v4528_v58 = vunpack.c.l.b16 %v4512_v27 }
 0xf6f   : > { %v4530_v56 = vsel %vm4529_vm4, %v4528_v58, %v4527_v11 }
 0xf70   : > { %v4531_v2 = vpack.c.b16 %v4530_v56, %v4530_v56 }
 0xf72   : > { %5122 = vmatmul.msk.bf16.vlgmr.msra.gmra.mxu0 %vm601_vm0, %v4531_v2 }
 0xfef   : > { %v4568_v44 = vpop.f32.mrf.mxu0 }
 0xff0   : > { %v4569_v45 = vadd.f32 %v5340_v15, %v4568_v44 }
 0xff2   : > { %4572 = vst [vmem:[%s279_s26] sm:$0x3] %v4569_v45 }
 0xff3   : > { %5430 = shalt.err (!%p5427_p8)
}
 0xff4   : > { %5211 = dma.vmem_to_hbm [thread:$0]  (%p5557_p5), %s4587_s28, 32, %s4589_s29, %s4574_s10  }
 0xff7   : > { %v4570_v31 = vpop.f32.mrf.mxu0 }
 0xff8 PF: > { %p5228_p9 = scmp.ge.s32.totalorder %s5473_s24, 2  ;;  %s4600_s14 = sand.u32 1, %s5461_s21  }
 0xff9   : > { %s4601_s17 = scalar_lea.sflag [#allocation4], %s4600_s14 }
 0xffa   : > { %p5221_p10 = pnand %p5228_p9, %p5561_p6 }
 0xffc   : > { %p5222_p11 = pneg %p5221_p10 }
 0xffe   : > { %5456 = dma.done.wait (%p5222_p11), %s4601_s17, 32  }
 0xfff   : > { %5458 = vsyncadd (%p5222_p11), %s4601_s17, 4294967264  ;;  %p18_p12 = scmp.ge.s32.totalorder %s5544_s27, 4   ;;  %s6968_s21 = smov %s5465_s22 }
0x1000   : > { %s6969_s22 = smov %s5469_s23  ;;  %s6970_s23 = smov %s5555_s30 }
0x1001   : > { %s6971_s24 = smov %s5544_s27  ;;  %20 = sbr.rel (!%p18_p12) target bundleno = 5 (0x5), region = 106 }
0x1006   :  { %4607 = vsyncpa [#allocation3], 1 }
0x1007   :  { %4609 = vsyncpa [#allocation3 + $0x1], 1 }
0x1008   :  { %4610 = vsyncpa [#allocation6], 1 }
0x1009   :  { %4611 = vsyncpa [#allocation4], 1 }
0x100a   :  { %4613 = vsyncpa [#allocation4 + $0x1], 1 }

</bundles_post_ra>
